<compile_context>
chip_gen: v6e
topology: v6e:2x2x1
jax: 0.10.0
libtpu: 0.0.40
codegen_flags: <defaults>
</compile_context>

<pallas_src>
import functools

import jax
import jax.numpy as jnp
from jax.experimental import pallas as pl
from jax.experimental.pallas import tpu as pltpu


# (cout, kernel, stride) for the six convs; kept static (outside params) so the
# whole forward can be jitted without tracing python ints used in slicing.
CONV_DEFS = (
    (8, 4, 2),
    (16, 3, 2),
    (32, 3, 2),
    (64, 3, 2),
    (128, 3, 1),
    (256, 3, 1),
)


# ----------------------------------------------------------------------------
# Kernel 1: tiled  out = [relu](x @ w + b)  for the big im2col convs.
#   x tile (tm, K) bf16, w (K, N) bf16 (VMEM-resident), b (1, N) f32.
# ----------------------------------------------------------------------------
def _matmul_bias_kernel(x_ref, w_ref, b_ref, o_ref, *, relu):
    acc = jnp.dot(x_ref[...], w_ref[...], preferred_element_type=jnp.float32)
    acc = acc + b_ref[...]                       # (1, N) broadcasts over rows
    if relu:
        acc = jnp.maximum(acc, 0.0)
    o_ref[...] = acc.astype(o_ref.dtype)


def _round_up(x, m):
    return ((x + m - 1) // m) * m


def _choose_row_tiling(m, target=1024):
    """Pick (tm, m_pad, num_tiles).

    Large M: big tiles (few grid steps, each ~0.35us overhead) but at least two
    so v7x's two TensorCores both get work.  Tiny M: a single tile rounded up to
    a multiple of 16 rows (bf16 sublane packing) instead of padding to 128.
    """
    if m > 128:
        num = max(2, pl.cdiv(m, target))
    else:
        num = 1
    tm = _round_up(pl.cdiv(m, num), 16)
    return tm, tm * num, num


def matmul_bias_pallas(x, w, b, *, relu):
    """x: (M, K) f32, w: (K, N) f32, b: (N,) f32 -> (M, N) f32."""
    m, k = x.shape
    n = w.shape[1]
    tm, m_pad, num = _choose_row_tiling(m)
    if m_pad != m:
        x = jnp.pad(x, ((0, m_pad - m), (0, 0)))
    out = pl.pallas_call(
        functools.partial(_matmul_bias_kernel, relu=relu),
        out_shape=jax.ShapeDtypeStruct((m_pad, n), jnp.float32),
        grid=(num,),
        in_specs=[
            pl.BlockSpec((tm, k), lambda i: (i, 0)),   # row tile of patches
            pl.BlockSpec((k, n), lambda i: (0, 0)),    # weight, VMEM-resident
            pl.BlockSpec((1, n), lambda i: (0, 0)),    # bias
        ],
        out_specs=pl.BlockSpec((tm, n), lambda i: (i, 0)),
        compiler_params=pltpu.CompilerParams(
            dimension_semantics=("parallel",)),
    )(x.astype(jnp.bfloat16), w.astype(jnp.bfloat16),
      b.reshape(1, n).astype(jnp.float32))
    return out[:m]


# ----------------------------------------------------------------------------
# im2col (plain JAX) + conv wrapper for convs 1-4.
# ----------------------------------------------------------------------------
def _im2col(x_nhwc, kh, kw, stride):
    """x: (B, H, W, C) -> (B, OH, OW, kh*kw, C) patches, plus (OH, OW)."""
    _, h, w, _ = x_nhwc.shape
    oh = (h - kh) // stride + 1
    ow = (w - kw) // stride + 1
    cols = []
    for i in range(kh):
        for j in range(kw):
            cols.append(
                x_nhwc[:, i:i + stride * oh:stride, j:j + stride * ow:stride, :])
    return jnp.stack(cols, axis=3), oh, ow


def conv2d_relu_pallas(x_nhwc, w_oihw, b, *, stride):
    """PyTorch-semantics Conv2d (valid padding) + ReLU -> (B, OH, OW, Cout)."""
    batch = x_nhwc.shape[0]
    cout, cin, kh, kw = w_oihw.shape
    p, oh, ow = _im2col(x_nhwc, kh, kw, stride)
    patches = p.reshape(batch * oh * ow, kh * kw * cin)
    # patch feature ordering (i*kw + j)*Cin + cin  <->  weight transpose (2,3,1,0)
    w_mat = jnp.transpose(w_oihw, (2, 3, 1, 0)).reshape(kh * kw * cin, cout)
    out = matmul_bias_pallas(patches, w_mat, b, relu=True)
    return out.reshape(batch, oh, ow, cout)


# ----------------------------------------------------------------------------
# Kernel 2: fused tail  conv5 -> conv6 -> [reduce_dim] -> fc1 -> ReLU -> fc2.
# Grid over batch; every weight has a constant index map (VMEM-resident); the
# intermediate activations (at most (9, 576) floats) never leave VMEM.
# ----------------------------------------------------------------------------
def _tail_kernel(*refs, has_a):
    if has_a:
        (p5_ref, a_ref, w5_ref, b5_ref, w6_ref, b6_ref,
         wrm_ref, wra_ref, br_ref,
         w1_ref, b1_ref, w2_ref, b2_ref, o_ref) = refs
    else:
        (p5_ref, w5_ref, b5_ref, w6_ref, b6_ref,
         w1_ref, b1_ref, w2_ref, b2_ref, o_ref) = refs

    f32 = jnp.float32

    # conv5: im2col patches (9, 576) @ (576, 128) + b -> ReLU  (3x3 x 128ch)
    h5 = jnp.dot(p5_ref[0], w5_ref[...], preferred_element_type=f32)
    h5 = jnp.maximum(h5 + b5_ref[...], 0.0)                     # (9, 128)

    # conv6 (3x3, stride 1, single 1x1 output): sum of 9 per-offset matmuls on
    # the VMEM-resident h5 (avoids any sublane->lane reshape).
    acc = b6_ref[...].astype(f32)                               # (1, 256)
    for k in range(9):
        acc = acc + jnp.dot(h5[k:k + 1, :], w6_ref[k],
                            preferred_element_type=f32)
    feat = jnp.maximum(acc, 0.0)                                # (1, 256)

    if has_a:
        # cat([feat, a]) @ Wr + br  ==  feat @ Wr[:256] + a @ Wr[256:] + br
        a_val = a_ref[0]                                        # (1, da)
        if wra_ref.shape[0] == 1:
            a_contrib = a_val * wra_ref[...]
        else:
            a_contrib = jnp.dot(a_val, wra_ref[...],
                                preferred_element_type=f32)
        z = (jnp.dot(feat, wrm_ref[...], preferred_element_type=f32)
             + a_contrib + br_ref[...])
    else:
        z = feat

    h = jnp.maximum(jnp.dot(z, w1_ref[...], preferred_element_type=f32)
                    + b1_ref[...], 0.0)
    out = jnp.dot(h, w2_ref[...], preferred_element_type=f32) + b2_ref[...]
    o_ref[...] = out.reshape(o_ref.shape).astype(o_ref.dtype)


def tail_forward_pallas(x4_nhwc, a, params):
    """Fused conv5..fc2. x4_nhwc: (B, 5, 5, 64) conv4 output; a: (B, da) or None."""
    batch = x4_nhwc.shape[0]

    # conv5 im2col is tiny ((B, 9, 576) ~ 40 KB) -> build it in plain JAX.
    p, oh, ow = _im2col(x4_nhwc, 3, 3, 1)
    assert (oh, ow) == (3, 3), (oh, ow)
    p5 = p.reshape(batch, 9, 9 * 64).astype(jnp.float32)

    c5, c6 = params["convs"][4], params["convs"][5]
    w5 = jnp.transpose(c5["w"], (2, 3, 1, 0)).reshape(9 * 64, 128)
    b5 = c5["b"].reshape(1, 128)
    w6 = jnp.transpose(c6["w"], (2, 3, 1, 0)).reshape(9, 128, 256)
    b6 = c6["b"].reshape(1, 256)
    w1 = params["fc1"]["w"]
    b1 = params["fc1"]["b"].reshape(1, -1)
    w2 = params["fc2"]["w"]
    b2 = params["fc2"]["b"].reshape(1, -1)
    action_dim = w2.shape[1]

    inputs = [p5]
    in_specs = [pl.BlockSpec((1, 9, 9 * 64), lambda bi: (bi, 0, 0))]

    if a is not None:
        da = a.shape[1]
        cat_width = 256 + da
        assert cat_width in (257, 259), f"Output shape: ({batch}, {cat_width})"
        red_key = "reduce_dim2" if cat_width == 257 else "reduce_dim"
        wr = params[red_key]["w"]
        wrm, wra = wr[:256, :], wr[256:, :]
        br = params[red_key]["b"].reshape(1, 256)
        inputs.append(a.reshape(batch, 1, da).astype(jnp.float32))
        in_specs.append(pl.BlockSpec((1, 1, da), lambda bi: (bi, 0, 0)))
        consts = [w5, b5, w6, b6, wrm, wra, br, w1, b1, w2, b2]
    else:
        consts = [w5, b5, w6, b6, w1, b1, w2, b2]

    for c in consts:
        c = c.astype(jnp.float32)
        inputs.append(c)
        in_specs.append(
            pl.BlockSpec(c.shape, lambda bi, n=c.ndim: (0,) * n))

    out = pl.pallas_call(
        functools.partial(_tail_kernel, has_a=a is not None),
        out_shape=jax.ShapeDtypeStruct((batch, 1, action_dim), jnp.float32),
        grid=(batch,),
        in_specs=in_specs,
        out_specs=pl.BlockSpec((1, 1, action_dim), lambda bi: (bi, 0, 0)),
        compiler_params=pltpu.CompilerParams(
            dimension_semantics=("parallel",)),
    )(*inputs)
    return out.reshape(batch, action_dim)


# ----------------------------------------------------------------------------
# Parameter construction (deterministic, synthetic).
# ----------------------------------------------------------------------------
def init_params(key, input_channels, hidden_dim, action_dim):
    params = {"convs": []}
    cin = input_channels
    for (cout, k, _stride) in CONV_DEFS:
        key, wk = jax.random.split(key)
        w = jax.random.normal(wk, (cout, cin, k, k), jnp.float32) * 0.05
        b = jnp.full((cout,), 0.1, jnp.float32)
        params["convs"].append({"w": w, "b": b})
        cin = cout

    def linear(key, fan_in, fan_out):
        key, wk = jax.random.split(key)
        w = jax.random.normal(wk, (fan_in, fan_out), jnp.float32) * 0.05
        b = jnp.zeros((fan_out,), jnp.float32)
        return key, {"w": w, "b": b}

    key, params["reduce_dim"] = linear(key, 259, 256)
    key, params["reduce_dim2"] = linear(key, 257, 256)
    key, params["fc1"] = linear(key, 256, hidden_dim)
    key, params["fc2"] = linear(key, hidden_dim, action_dim)
    return params


# ----------------------------------------------------------------------------
# Forward pass (mirrors CNN.forward).
# ----------------------------------------------------------------------------
def cnn_forward(params, x_nchw, a=None):
    # NCHW (PyTorch) -> NHWC (kernel layout)
    x = jnp.transpose(x_nchw, (0, 2, 3, 1)).astype(jnp.float32)
    # convs 1-4: im2col + Pallas matmul+bias+ReLU per layer.
    for layer, (_cout, _k, stride) in zip(params["convs"][:4], CONV_DEFS[:4]):
        x = conv2d_relu_pallas(x, layer["w"], layer["b"], stride=stride)
    # conv5 -> conv6 -> [reduce_dim] -> fc1 -> ReLU -> fc2, fused in one kernel.
    # (conv6 output is spatially 1x1, so flatten order is irrelevant.)
    return tail_forward_pallas(x, a, params)


if __name__ == "__main__":
    batch, input_channels, hidden_dim, action_dim = 2, 3, 32, 1

    key = jax.random.PRNGKey(0)
    key, kx, ka = jax.random.split(key, 3)
    x = jax.random.normal(kx, (batch, input_channels, 96, 96), jnp.float32)
    a = jax.random.normal(ka, (batch, 1), jnp.float32)   # 257 -> reduce_dim2 path

    params = init_params(jax.random.PRNGKey(42), input_channels,
                         hidden_dim, action_dim)

    fwd = jax.jit(cnn_forward)
    out = fwd(params, x, a)
    jax.block_until_ready(out)
    assert out.shape == (batch, action_dim), out.shape
    print("KERNEL_OK")
</pallas_src>

<mosaic_0001>
module attributes {stable_mosaic.version = 11 : i64} {
  func.func @_matmul_bias_kernel(%arg0: i32, %arg1: memref<896x48xbf16, #tpu.memory_space<vmem>>, %arg2: memref<48x8xbf16, #tpu.memory_space<vmem>>, %arg3: memref<1x8xf32, #tpu.memory_space<vmem>>, %arg4: memref<896x8xf32, #tpu.memory_space<vmem>>) attributes {dimension_semantics = [#tpu.dimension_semantics<parallel>], iteration_bounds = array<i64: 5>, scalar_prefetch = 0 : i64, scratch_operands = 0 : i64, tpu.core_type = #tpu.core_type<tc>, window_params = [{transform_indices = @transform_0, window_bounds = array<i64: 896, 48>}, {pipeline_mode = #tpu.pipeline_mode<synchronous>, transform_indices = @transform_1, window_bounds = array<i64: 48, 8>}, {pipeline_mode = #tpu.pipeline_mode<synchronous>, transform_indices = @transform_2, window_bounds = array<i64: 1, 8>}, {transform_indices = @transform_3, window_bounds = array<i64: 896, 8>}]} {
    %c0 = arith.constant 0 : index
    %c0_0 = arith.constant 0 : index
    %0 = vector.load %arg1[%c0, %c0_0] : memref<896x48xbf16, #tpu.memory_space<vmem>>, vector<896x48xbf16>
    %c0_1 = arith.constant 0 : index
    %c0_2 = arith.constant 0 : index
    %1 = vector.load %arg2[%c0_1, %c0_2] : memref<48x8xbf16, #tpu.memory_space<vmem>>, vector<48x8xbf16>
    %cst = arith.constant dense<0.000000e+00> : vector<896x8xf32>
    %2 = tpu.matmul %0, %1, %cst {dimension_numbers = #tpu.dot_dimension_numbers<[1], [0], [0], [1], [0, 0, 1, 1], [], []>} : vector<896x48xbf16>, vector<48x8xbf16>, vector<896x8xf32> -> vector<896x8xf32>
    %c0_3 = arith.constant 0 : index
    %c0_4 = arith.constant 0 : index
    %3 = vector.load %arg3[%c0_3, %c0_4] : memref<1x8xf32, #tpu.memory_space<vmem>>, vector<1x8xf32>
    %4 = vector.broadcast %3 : vector<1x8xf32> to vector<896x8xf32>
    %5 = arith.addf %2, %4 : vector<896x8xf32>
    %cst_5 = arith.constant 0.000000e+00 : f32
    %6 = vector.broadcast %cst_5 : f32 to vector<896x8xf32>
    %7 = arith.maximumf %5, %6 : vector<896x8xf32>
    %c0_6 = arith.constant 0 : index
    %c0_7 = arith.constant 0 : index
    %8 = vector.load %arg4[%c0_6, %c0_7] : memref<896x8xf32, #tpu.memory_space<vmem>>, vector<896x8xf32>
    tpu.vector_store %arg4[%c0_6, %c0_7], %7 {strides = array<i32>} : memref<896x8xf32, #tpu.memory_space<vmem>>, vector<896x8xf32>,
    return
  }
  func.func @transform_0(%arg0: i32) -> (i32, i32) {
    %c0_i32 = arith.constant 0 : i32
    %c0_i32_0 = arith.constant 0 : i32
    return %arg0, %c0_i32 : i32, i32
  }
  func.func @transform_1(%arg0: i32) -> (i32, i32) {
    %c0_i32 = arith.constant 0 : i32
    %c0_i32_0 = arith.constant 0 : i32
    %c0_i32_1 = arith.constant 0 : i32
    return %c0_i32, %c0_i32_0 : i32, i32
  }
  func.func @transform_2(%arg0: i32) -> (i32, i32) {
    %c0_i32 = arith.constant 0 : i32
    %c0_i32_0 = arith.constant 0 : i32
    %c0_i32_1 = arith.constant 0 : i32
    return %c0_i32, %c0_i32_0 : i32, i32
  }
  func.func @transform_3(%arg0: i32) -> (i32, i32) {
    %c0_i32 = arith.constant 0 : i32
    %c0_i32_0 = arith.constant 0 : i32
    return %arg0, %c0_i32 : i32, i32
  }
}

module attributes {stable_mosaic.version = 11 : i64} {
  func.func @_matmul_bias_kernel(%arg0: i32, %arg1: memref<544x72xbf16, #tpu.memory_space<vmem>>, %arg2: memref<72x16xbf16, #tpu.memory_space<vmem>>, %arg3: memref<1x16xf32, #tpu.memory_space<vmem>>, %arg4: memref<544x16xf32, #tpu.memory_space<vmem>>) attributes {dimension_semantics = [#tpu.dimension_semantics<parallel>], iteration_bounds = array<i64: 2>, scalar_prefetch = 0 : i64, scratch_operands = 0 : i64, tpu.core_type = #tpu.core_type<tc>, window_params = [{transform_indices = @transform_0, window_bounds = array<i64: 544, 72>}, {pipeline_mode = #tpu.pipeline_mode<synchronous>, transform_indices = @transform_1, window_bounds = array<i64: 72, 16>}, {pipeline_mode = #tpu.pipeline_mode<synchronous>, transform_indices = @transform_2, window_bounds = array<i64: 1, 16>}, {transform_indices = @transform_3, window_bounds = array<i64: 544, 16>}]} {
    %c0 = arith.constant 0 : index
    %c0_0 = arith.constant 0 : index
    %0 = vector.load %arg1[%c0, %c0_0] : memref<544x72xbf16, #tpu.memory_space<vmem>>, vector<544x72xbf16>
    %c0_1 = arith.constant 0 : index
    %c0_2 = arith.constant 0 : index
    %1 = vector.load %arg2[%c0_1, %c0_2] : memref<72x16xbf16, #tpu.memory_space<vmem>>, vector<72x16xbf16>
    %cst = arith.constant dense<0.000000e+00> : vector<544x16xf32>
    %2 = tpu.matmul %0, %1, %cst {dimension_numbers = #tpu.dot_dimension_numbers<[1], [0], [0], [1], [0, 0, 1, 1], [], []>} : vector<544x72xbf16>, vector<72x16xbf16>, vector<544x16xf32> -> vector<544x16xf32>
    %c0_3 = arith.constant 0 : index
    %c0_4 = arith.constant 0 : index
    %3 = vector.load %arg3[%c0_3, %c0_4] : memref<1x16xf32, #tpu.memory_space<vmem>>, vector<1x16xf32>
    %4 = vector.broadcast %3 : vector<1x16xf32> to vector<544x16xf32>
    %5 = arith.addf %2, %4 : vector<544x16xf32>
    %cst_5 = arith.constant 0.000000e+00 : f32
    %6 = vector.broadcast %cst_5 : f32 to vector<544x16xf32>
    %7 = arith.maximumf %5, %6 : vector<544x16xf32>
    %c0_6 = arith.constant 0 : index
    %c0_7 = arith.constant 0 : index
    %8 = vector.load %arg4[%c0_6, %c0_7] : memref<544x16xf32, #tpu.memory_space<vmem>>, vector<544x16xf32>
    tpu.vector_store %arg4[%c0_6, %c0_7], %7 {strides = array<i32>} : memref<544x16xf32, #tpu.memory_space<vmem>>, vector<544x16xf32>,
    return
  }
  func.func @transform_0(%arg0: i32) -> (i32, i32) {
    %c0_i32 = arith.constant 0 : i32
    %c0_i32_0 = arith.constant 0 : i32
    return %arg0, %c0_i32 : i32, i32
  }
  func.func @transform_1(%arg0: i32) -> (i32, i32) {
    %c0_i32 = arith.constant 0 : i32
    %c0_i32_0 = arith.constant 0 : i32
    %c0_i32_1 = arith.constant 0 : i32
    return %c0_i32, %c0_i32_0 : i32, i32
  }
  func.func @transform_2(%arg0: i32) -> (i32, i32) {
    %c0_i32 = arith.constant 0 : i32
    %c0_i32_0 = arith.constant 0 : i32
    %c0_i32_1 = arith.constant 0 : i32
    return %c0_i32, %c0_i32_0 : i32, i32
  }
  func.func @transform_3(%arg0: i32) -> (i32, i32) {
    %c0_i32 = arith.constant 0 : i32
    %c0_i32_0 = arith.constant 0 : i32
    return %arg0, %c0_i32 : i32, i32
  }
}

module attributes {stable_mosaic.version = 11 : i64} {
  func.func @_matmul_bias_kernel(%arg0: i32, %arg1: memref<128x144xbf16, #tpu.memory_space<vmem>>, %arg2: memref<144x32xbf16, #tpu.memory_space<vmem>>, %arg3: memref<1x32xf32, #tpu.memory_space<vmem>>, %arg4: memref<128x32xf32, #tpu.memory_space<vmem>>) attributes {dimension_semantics = [#tpu.dimension_semantics<parallel>], iteration_bounds = array<i64: 2>, scalar_prefetch = 0 : i64, scratch_operands = 0 : i64, tpu.core_type = #tpu.core_type<tc>, window_params = [{transform_indices = @transform_0, window_bounds = array<i64: 128, 144>}, {pipeline_mode = #tpu.pipeline_mode<synchronous>, transform_indices = @transform_1, window_bounds = array<i64: 144, 32>}, {pipeline_mode = #tpu.pipeline_mode<synchronous>, transform_indices = @transform_2, window_bounds = array<i64: 1, 32>}, {transform_indices = @transform_3, window_bounds = array<i64: 128, 32>}]} {
    %c0 = arith.constant 0 : index
    %c0_0 = arith.constant 0 : index
    %0 = vector.load %arg1[%c0, %c0_0] : memref<128x144xbf16, #tpu.memory_space<vmem>>, vector<128x144xbf16>
    %c0_1 = arith.constant 0 : index
    %c0_2 = arith.constant 0 : index
    %1 = vector.load %arg2[%c0_1, %c0_2] : memref<144x32xbf16, #tpu.memory_space<vmem>>, vector<144x32xbf16>
    %cst = arith.constant dense<0.000000e+00> : vector<128x32xf32>
    %2 = tpu.matmul %0, %1, %cst {dimension_numbers = #tpu.dot_dimension_numbers<[1], [0], [0], [1], [0, 0, 1, 1], [], []>} : vector<128x144xbf16>, vector<144x32xbf16>, vector<128x32xf32> -> vector<128x32xf32>
    %c0_3 = arith.constant 0 : index
    %c0_4 = arith.constant 0 : index
    %3 = vector.load %arg3[%c0_3, %c0_4] : memref<1x32xf32, #tpu.memory_space<vmem>>, vector<1x32xf32>
    %4 = vector.broadcast %3 : vector<1x32xf32> to vector<128x32xf32>
    %5 = arith.addf %2, %4 : vector<128x32xf32>
    %cst_5 = arith.constant 0.000000e+00 : f32
    %6 = vector.broadcast %cst_5 : f32 to vector<128x32xf32>
    %7 = arith.maximumf %5, %6 : vector<128x32xf32>
    %c0_6 = arith.constant 0 : index
    %c0_7 = arith.constant 0 : index
    %8 = vector.load %arg4[%c0_6, %c0_7] : memref<128x32xf32, #tpu.memory_space<vmem>>, vector<128x32xf32>
    tpu.vector_store %arg4[%c0_6, %c0_7], %7 {strides = array<i32>} : memref<128x32xf32, #tpu.memory_space<vmem>>, vector<128x32xf32>,
    return
  }
  func.func @transform_0(%arg0: i32) -> (i32, i32) {
    %c0_i32 = arith.constant 0 : i32
    %c0_i32_0 = arith.constant 0 : i32
    return %arg0, %c0_i32 : i32, i32
  }
  func.func @transform_1(%arg0: i32) -> (i32, i32) {
    %c0_i32 = arith.constant 0 : i32
    %c0_i32_0 = arith.constant 0 : i32
    %c0_i32_1 = arith.constant 0 : i32
    return %c0_i32, %c0_i32_0 : i32, i32
  }
  func.func @transform_2(%arg0: i32) -> (i32, i32) {
    %c0_i32 = arith.constant 0 : i32
    %c0_i32_0 = arith.constant 0 : i32
    %c0_i32_1 = arith.constant 0 : i32
    return %c0_i32, %c0_i32_0 : i32, i32
  }
  func.func @transform_3(%arg0: i32) -> (i32, i32) {
    %c0_i32 = arith.constant 0 : i32
    %c0_i32_0 = arith.constant 0 : i32
    return %arg0, %c0_i32 : i32, i32
  }
}

module attributes {stable_mosaic.version = 11 : i64} {
  func.func @_matmul_bias_kernel(%arg0: i32, %arg1: memref<64x288xbf16, #tpu.memory_space<vmem>>, %arg2: memref<288x64xbf16, #tpu.memory_space<vmem>>, %arg3: memref<1x64xf32, #tpu.memory_space<vmem>>, %arg4: memref<64x64xf32, #tpu.memory_space<vmem>>) attributes {dimension_semantics = [#tpu.dimension_semantics<parallel>], iteration_bounds = array<i64: 1>, scalar_prefetch = 0 : i64, scratch_operands = 0 : i64, tpu.core_type = #tpu.core_type<tc>, window_params = [{transform_indices = @transform_0, window_bounds = array<i64: 64, 288>}, {pipeline_mode = #tpu.pipeline_mode<synchronous>, transform_indices = @transform_1, window_bounds = array<i64: 288, 64>}, {pipeline_mode = #tpu.pipeline_mode<synchronous>, transform_indices = @transform_2, window_bounds = array<i64: 1, 64>}, {transform_indices = @transform_3, window_bounds = array<i64: 64, 64>}]} {
    %c0 = arith.constant 0 : index
    %c0_0 = arith.constant 0 : index
    %0 = vector.load %arg1[%c0, %c0_0] : memref<64x288xbf16, #tpu.memory_space<vmem>>, vector<64x288xbf16>
    %c0_1 = arith.constant 0 : index
    %c0_2 = arith.constant 0 : index
    %1 = vector.load %arg2[%c0_1, %c0_2] : memref<288x64xbf16, #tpu.memory_space<vmem>>, vector<288x64xbf16>
    %cst = arith.constant dense<0.000000e+00> : vector<64x64xf32>
    %2 = tpu.matmul %0, %1, %cst {dimension_numbers = #tpu.dot_dimension_numbers<[1], [0], [0], [1], [0, 0, 1, 1], [], []>} : vector<64x288xbf16>, vector<288x64xbf16>, vector<64x64xf32> -> vector<64x64xf32>
    %c0_3 = arith.constant 0 : index
    %c0_4 = arith.constant 0 : index
    %3 = vector.load %arg3[%c0_3, %c0_4] : memref<1x64xf32, #tpu.memory_space<vmem>>, vector<1x64xf32>
    %4 = vector.broadcast %3 : vector<1x64xf32> to vector<64x64xf32>
    %5 = arith.addf %2, %4 : vector<64x64xf32>
    %cst_5 = arith.constant 0.000000e+00 : f32
    %6 = vector.broadcast %cst_5 : f32 to vector<64x64xf32>
    %7 = arith.maximumf %5, %6 : vector<64x64xf32>
    %c0_6 = arith.constant 0 : index
    %c0_7 = arith.constant 0 : index
    %8 = vector.load %arg4[%c0_6, %c0_7] : memref<64x64xf32, #tpu.memory_space<vmem>>, vector<64x64xf32>
    tpu.vector_store %arg4[%c0_6, %c0_7], %7 {strides = array<i32>} : memref<64x64xf32, #tpu.memory_space<vmem>>, vector<64x64xf32>,
    return
  }
  func.func @transform_0(%arg0: i32) -> (i32, i32) {
    %c0_i32 = arith.constant 0 : i32
    %c0_i32_0 = arith.constant 0 : i32
    return %arg0, %c0_i32 : i32, i32
  }
  func.func @transform_1(%arg0: i32) -> (i32, i32) {
    %c0_i32 = arith.constant 0 : i32
    %c0_i32_0 = arith.constant 0 : i32
    %c0_i32_1 = arith.constant 0 : i32
    return %c0_i32, %c0_i32_0 : i32, i32
  }
  func.func @transform_2(%arg0: i32) -> (i32, i32) {
    %c0_i32 = arith.constant 0 : i32
    %c0_i32_0 = arith.constant 0 : i32
    %c0_i32_1 = arith.constant 0 : i32
    return %c0_i32, %c0_i32_0 : i32, i32
  }
  func.func @transform_3(%arg0: i32) -> (i32, i32) {
    %c0_i32 = arith.constant 0 : i32
    %c0_i32_0 = arith.constant 0 : i32
    return %arg0, %c0_i32 : i32, i32
  }
}

module attributes {stable_mosaic.version = 11 : i64} {
  func.func @_tail_kernel(%arg0: i32, %arg1: memref<1x9x576xf32, #tpu.memory_space<vmem>>, %arg2: memref<1x1x1xf32, #tpu.memory_space<vmem>>, %arg3: memref<576x128xf32, #tpu.memory_space<vmem>>, %arg4: memref<1x128xf32, #tpu.memory_space<vmem>>, %arg5: memref<9x128x256xf32, #tpu.memory_space<vmem>>, %arg6: memref<1x256xf32, #tpu.memory_space<vmem>>, %arg7: memref<256x256xf32, #tpu.memory_space<vmem>>, %arg8: memref<1x256xf32, #tpu.memory_space<vmem>>, %arg9: memref<1x256xf32, #tpu.memory_space<vmem>>, %arg10: memref<256x32xf32, #tpu.memory_space<vmem>>, %arg11: memref<1x32xf32, #tpu.memory_space<vmem>>, %arg12: memref<32x1xf32, #tpu.memory_space<vmem>>, %arg13: memref<1x1xf32, #tpu.memory_space<vmem>>, %arg14: memref<1x1x1xf32, #tpu.memory_space<vmem>>) attributes {dimension_semantics = [#tpu.dimension_semantics<parallel>], iteration_bounds = array<i64: 2>, scalar_prefetch = 0 : i64, scratch_operands = 0 : i64, tpu.core_type = #tpu.core_type<tc>, window_params = [{transform_indices = @transform_0, window_bounds = array<i64: 1, 9, 576>}, {transform_indices = @transform_1, window_bounds = array<i64: 1, 1, 1>}, {pipeline_mode = #tpu.pipeline_mode<synchronous>, transform_indices = @transform_2, window_bounds = array<i64: 576, 128>}, {pipeline_mode = #tpu.pipeline_mode<synchronous>, transform_indices = @transform_3, window_bounds = array<i64: 1, 128>}, {pipeline_mode = #tpu.pipeline_mode<synchronous>, transform_indices = @transform_4, window_bounds = array<i64: 9, 128, 256>}, {pipeline_mode = #tpu.pipeline_mode<synchronous>, transform_indices = @transform_5, window_bounds = array<i64: 1, 256>}, {pipeline_mode = #tpu.pipeline_mode<synchronous>, transform_indices = @transform_6, window_bounds = array<i64: 256, 256>}, {pipeline_mode = #tpu.pipeline_mode<synchronous>, transform_indices = @transform_7, window_bounds = array<i64: 1, 256>}, {pipeline_mode = #tpu.pipeline_mode<synchronous>, transform_indices = @transform_8, window_bounds = array<i64: 1, 256>}, {pipeline_mode = #tpu.pipeline_mode<synchronous>, transform_indices = @transform_9, window_bounds = array<i64: 256, 32>}, {pipeline_mode = #tpu.pipeline_mode<synchronous>, transform_indices = @transform_10, window_bounds = array<i64: 1, 32>}, {pipeline_mode = #tpu.pipeline_mode<synchronous>, transform_indices = @transform_11, window_bounds = array<i64: 32, 1>}, {pipeline_mode = #tpu.pipeline_mode<synchronous>, transform_indices = @transform_12, window_bounds = array<i64: 1, 1>}, {transform_indices = @transform_13, window_bounds = array<i64: 1, 1, 1>}]} {
    %c0 = arith.constant 0 : index
    %c0_0 = arith.constant 0 : index
    %c0_1 = arith.constant 0 : index
    %0 = vector.load %arg1[%c0, %c0_0, %c0_1] : memref<1x9x576xf32, #tpu.memory_space<vmem>>, vector<1x9x576xf32>
    %1 = vector.shape_cast %0 : vector<1x9x576xf32> to vector<9x576xf32>
    %c0_2 = arith.constant 0 : index
    %c0_3 = arith.constant 0 : index
    %2 = vector.load %arg3[%c0_2, %c0_3] : memref<576x128xf32, #tpu.memory_space<vmem>>, vector<576x128xf32>
    %cst = arith.constant dense<0.000000e+00> : vector<9x128xf32>
    %3 = tpu.matmul %1, %2, %cst {dimension_numbers = #tpu.dot_dimension_numbers<[1], [0], [0], [1], [0, 0, 1, 1], [], []>} : vector<9x576xf32>, vector<576x128xf32>, vector<9x128xf32> -> vector<9x128xf32>
    %c0_4 = arith.constant 0 : index
    %c0_5 = arith.constant 0 : index
    %4 = vector.load %arg4[%c0_4, %c0_5] : memref<1x128xf32, #tpu.memory_space<vmem>>, vector<1x128xf32>
    %5 = vector.broadcast %4 : vector<1x128xf32> to vector<9x128xf32>
    %6 = arith.addf %3, %5 : vector<9x128xf32>
    %cst_6 = arith.constant 0.000000e+00 : f32
    %7 = vector.broadcast %cst_6 : f32 to vector<9x128xf32>
    %8 = arith.maximumf %6, %7 : vector<9x128xf32>
    %c0_7 = arith.constant 0 : index
    %c0_8 = arith.constant 0 : index
    %9 = vector.load %arg6[%c0_7, %c0_8] : memref<1x256xf32, #tpu.memory_space<vmem>>, vector<1x256xf32>
    %10 = vector.extract_strided_slice %8 {offsets = [0, 0], sizes = [1, 128], strides = [1, 1]} : vector<9x128xf32> to vector<1x128xf32>
    %c0_9 = arith.constant 0 : index
    %c0_10 = arith.constant 0 : index
    %c0_11 = arith.constant 0 : index
    %11 = vector.load %arg5[%c0_9, %c0_10, %c0_11] : memref<9x128x256xf32, #tpu.memory_space<vmem>>, vector<1x128x256xf32>
    %12 = vector.shape_cast %11 : vector<1x128x256xf32> to vector<128x256xf32>
    %cst_12 = arith.constant dense<0.000000e+00> : vector<1x256xf32>
    %13 = tpu.matmul %10, %12, %cst_12 {dimension_numbers = #tpu.dot_dimension_numbers<[1], [0], [0], [1], [0, 0, 1, 1], [], []>} : vector<1x128xf32>, vector<128x256xf32>, vector<1x256xf32> -> vector<1x256xf32>
    %14 = arith.addf %9, %13 : vector<1x256xf32>
    %15 = vector.extract_strided_slice %8 {offsets = [1, 0], sizes = [1, 128], strides = [1, 1]} : vector<9x128xf32> to vector<1x128xf32>
    %c1 = arith.constant 1 : index
    %c0_13 = arith.constant 0 : index
    %c0_14 = arith.constant 0 : index
    %16 = vector.load %arg5[%c1, %c0_13, %c0_14] : memref<9x128x256xf32, #tpu.memory_space<vmem>>, vector<1x128x256xf32>
    %17 = vector.shape_cast %16 : vector<1x128x256xf32> to vector<128x256xf32>
    %cst_15 = arith.constant dense<0.000000e+00> : vector<1x256xf32>
    %18 = tpu.matmul %15, %17, %cst_15 {dimension_numbers = #tpu.dot_dimension_numbers<[1], [0], [0], [1], [0, 0, 1, 1], [], []>} : vector<1x128xf32>, vector<128x256xf32>, vector<1x256xf32> -> vector<1x256xf32>
    %19 = arith.addf %14, %18 : vector<1x256xf32>
    %20 = vector.extract_strided_slice %8 {offsets = [2, 0], sizes = [1, 128], strides = [1, 1]} : vector<9x128xf32> to vector<1x128xf32>
    %c2 = arith.constant 2 : index
    %c0_16 = arith.constant 0 : index
    %c0_17 = arith.constant 0 : index
    %21 = vector.load %arg5[%c2, %c0_16, %c0_17] : memref<9x128x256xf32, #tpu.memory_space<vmem>>, vector<1x128x256xf32>
    %22 = vector.shape_cast %21 : vector<1x128x256xf32> to vector<128x256xf32>
    %cst_18 = arith.constant dense<0.000000e+00> : vector<1x256xf32>
    %23 = tpu.matmul %20, %22, %cst_18 {dimension_numbers = #tpu.dot_dimension_numbers<[1], [0], [0], [1], [0, 0, 1, 1], [], []>} : vector<1x128xf32>, vector<128x256xf32>, vector<1x256xf32> -> vector<1x256xf32>
    %24 = arith.addf %19, %23 : vector<1x256xf32>
    %25 = vector.extract_strided_slice %8 {offsets = [3, 0], sizes = [1, 128], strides = [1, 1]} : vector<9x128xf32> to vector<1x128xf32>
    %c3 = arith.constant 3 : index
    %c0_19 = arith.constant 0 : index
    %c0_20 = arith.constant 0 : index
    %26 = vector.load %arg5[%c3, %c0_19, %c0_20] : memref<9x128x256xf32, #tpu.memory_space<vmem>>, vector<1x128x256xf32>
    %27 = vector.shape_cast %26 : vector<1x128x256xf32> to vector<128x256xf32>
    %cst_21 = arith.constant dense<0.000000e+00> : vector<1x256xf32>
    %28 = tpu.matmul %25, %27, %cst_21 {dimension_numbers = #tpu.dot_dimension_numbers<[1], [0], [0], [1], [0, 0, 1, 1], [], []>} : vector<1x128xf32>, vector<128x256xf32>, vector<1x256xf32> -> vector<1x256xf32>
    %29 = arith.addf %24, %28 : vector<1x256xf32>
    %30 = vector.extract_strided_slice %8 {offsets = [4, 0], sizes = [1, 128], strides = [1, 1]} : vector<9x128xf32> to vector<1x128xf32>
    %c4 = arith.constant 4 : index
    %c0_22 = arith.constant 0 : index
    %c0_23 = arith.constant 0 : index
    %31 = vector.load %arg5[%c4, %c0_22, %c0_23] : memref<9x128x256xf32, #tpu.memory_space<vmem>>, vector<1x128x256xf32>
    %32 = vector.shape_cast %31 : vector<1x128x256xf32> to vector<128x256xf32>
    %cst_24 = arith.constant dense<0.000000e+00> : vector<1x256xf32>
    %33 = tpu.matmul %30, %32, %cst_24 {dimension_numbers = #tpu.dot_dimension_numbers<[1], [0], [0], [1], [0, 0, 1, 1], [], []>} : vector<1x128xf32>, vector<128x256xf32>, vector<1x256xf32> -> vector<1x256xf32>
    %34 = arith.addf %29, %33 : vector<1x256xf32>
    %35 = vector.extract_strided_slice %8 {offsets = [5, 0], sizes = [1, 128], strides = [1, 1]} : vector<9x128xf32> to vector<1x128xf32>
    %c5 = arith.constant 5 : index
    %c0_25 = arith.constant 0 : index
    %c0_26 = arith.constant 0 : index
    %36 = vector.load %arg5[%c5, %c0_25, %c0_26] : memref<9x128x256xf32, #tpu.memory_space<vmem>>, vector<1x128x256xf32>
    %37 = vector.shape_cast %36 : vector<1x128x256xf32> to vector<128x256xf32>
    %cst_27 = arith.constant dense<0.000000e+00> : vector<1x256xf32>
    %38 = tpu.matmul %35, %37, %cst_27 {dimension_numbers = #tpu.dot_dimension_numbers<[1], [0], [0], [1], [0, 0, 1, 1], [], []>} : vector<1x128xf32>, vector<128x256xf32>, vector<1x256xf32> -> vector<1x256xf32>
    %39 = arith.addf %34, %38 : vector<1x256xf32>
    %40 = vector.extract_strided_slice %8 {offsets = [6, 0], sizes = [1, 128], strides = [1, 1]} : vector<9x128xf32> to vector<1x128xf32>
    %c6 = arith.constant 6 : index
    %c0_28 = arith.constant 0 : index
    %c0_29 = arith.constant 0 : index
    %41 = vector.load %arg5[%c6, %c0_28, %c0_29] : memref<9x128x256xf32, #tpu.memory_space<vmem>>, vector<1x128x256xf32>
    %42 = vector.shape_cast %41 : vector<1x128x256xf32> to vector<128x256xf32>
    %cst_30 = arith.constant dense<0.000000e+00> : vector<1x256xf32>
    %43 = tpu.matmul %40, %42, %cst_30 {dimension_numbers = #tpu.dot_dimension_numbers<[1], [0], [0], [1], [0, 0, 1, 1], [], []>} : vector<1x128xf32>, vector<128x256xf32>, vector<1x256xf32> -> vector<1x256xf32>
    %44 = arith.addf %39, %43 : vector<1x256xf32>
    %45 = vector.extract_strided_slice %8 {offsets = [7, 0], sizes = [1, 128], strides = [1, 1]} : vector<9x128xf32> to vector<1x128xf32>
    %c7 = arith.constant 7 : index
    %c0_31 = arith.constant 0 : index
    %c0_32 = arith.constant 0 : index
    %46 = vector.load %arg5[%c7, %c0_31, %c0_32] : memref<9x128x256xf32, #tpu.memory_space<vmem>>, vector<1x128x256xf32>
    %47 = vector.shape_cast %46 : vector<1x128x256xf32> to vector<128x256xf32>
    %cst_33 = arith.constant dense<0.000000e+00> : vector<1x256xf32>
    %48 = tpu.matmul %45, %47, %cst_33 {dimension_numbers = #tpu.dot_dimension_numbers<[1], [0], [0], [1], [0, 0, 1, 1], [], []>} : vector<1x128xf32>, vector<128x256xf32>, vector<1x256xf32> -> vector<1x256xf32>
    %49 = arith.addf %44, %48 : vector<1x256xf32>
    %50 = vector.extract_strided_slice %8 {offsets = [8, 0], sizes = [1, 128], strides = [1, 1]} : vector<9x128xf32> to vector<1x128xf32>
    %c8 = arith.constant 8 : index
    %c0_34 = arith.constant 0 : index
    %c0_35 = arith.constant 0 : index
    %51 = vector.load %arg5[%c8, %c0_34, %c0_35] : memref<9x128x256xf32, #tpu.memory_space<vmem>>, vector<1x128x256xf32>
    %52 = vector.shape_cast %51 : vector<1x128x256xf32> to vector<128x256xf32>
    %cst_36 = arith.constant dense<0.000000e+00> : vector<1x256xf32>
    %53 = tpu.matmul %50, %52, %cst_36 {dimension_numbers = #tpu.dot_dimension_numbers<[1], [0], [0], [1], [0, 0, 1, 1], [], []>} : vector<1x128xf32>, vector<128x256xf32>, vector<1x256xf32> -> vector<1x256xf32>
    %54 = arith.addf %49, %53 : vector<1x256xf32>
    %cst_37 = arith.constant 0.000000e+00 : f32
    %55 = vector.broadcast %cst_37 : f32 to vector<1x256xf32>
    %56 = arith.maximumf %54, %55 : vector<1x256xf32>
    %c0_38 = arith.constant 0 : index
    %c0_39 = arith.constant 0 : index
    %c0_40 = arith.constant 0 : index
    %57 = vector.load %arg2[%c0_38, %c0_39, %c0_40] : memref<1x1x1xf32, #tpu.memory_space<vmem>>, vector<1x1x1xf32>
    %58 = vector.shape_cast %57 : vector<1x1x1xf32> to vector<1x1xf32>
    %c0_41 = arith.constant 0 : index
    %c0_42 = arith.constant 0 : index
    %59 = vector.load %arg8[%c0_41, %c0_42] : memref<1x256xf32, #tpu.memory_space<vmem>>, vector<1x256xf32>
    %60 = vector.broadcast %58 : vector<1x1xf32> to vector<1x256xf32>
    %61 = arith.mulf %60, %59 : vector<1x256xf32>
    %c0_43 = arith.constant 0 : index
    %c0_44 = arith.constant 0 : index
    %62 = vector.load %arg7[%c0_43, %c0_44] : memref<256x256xf32, #tpu.memory_space<vmem>>, vector<256x256xf32>
    %cst_45 = arith.constant dense<0.000000e+00> : vector<1x256xf32>
    %63 = tpu.matmul %56, %62, %cst_45 {dimension_numbers = #tpu.dot_dimension_numbers<[1], [0], [0], [1], [0, 0, 1, 1], [], []>} : vector<1x256xf32>, vector<256x256xf32>, vector<1x256xf32> -> vector<1x256xf32>
    %64 = arith.addf %63, %61 : vector<1x256xf32>
    %c0_46 = arith.constant 0 : index
    %c0_47 = arith.constant 0 : index
    %65 = vector.load %arg9[%c0_46, %c0_47] : memref<1x256xf32, #tpu.memory_space<vmem>>, vector<1x256xf32>
    %66 = arith.addf %64, %65 : vector<1x256xf32>
    %c0_48 = arith.constant 0 : index
    %c0_49 = arith.constant 0 : index
    %67 = vector.load %arg10[%c0_48, %c0_49] : memref<256x32xf32, #tpu.memory_space<vmem>>, vector<256x32xf32>
    %cst_50 = arith.constant dense<0.000000e+00> : vector<1x32xf32>
    %68 = tpu.matmul %66, %67, %cst_50 {dimension_numbers = #tpu.dot_dimension_numbers<[1], [0], [0], [1], [0, 0, 1, 1], [], []>} : vector<1x256xf32>, vector<256x32xf32>, vector<1x32xf32> -> vector<1x32xf32>
    %c0_51 = arith.constant 0 : index
    %c0_52 = arith.constant 0 : index
    %69 = vector.load %arg11[%c0_51, %c0_52] : memref<1x32xf32, #tpu.memory_space<vmem>>, vector<1x32xf32>
    %70 = arith.addf %68, %69 : vector<1x32xf32>
    %cst_53 = arith.constant 0.000000e+00 : f32
    %71 = vector.broadcast %cst_53 : f32 to vector<1x32xf32>
    %72 = arith.maximumf %70, %71 : vector<1x32xf32>
    %c0_54 = arith.constant 0 : index
    %c0_55 = arith.constant 0 : index
    %73 = vector.load %arg12[%c0_54, %c0_55] : memref<32x1xf32, #tpu.memory_space<vmem>>, vector<32x1xf32>
    %cst_56 = arith.constant dense<0.000000e+00> : vector<1x1xf32>
    %74 = tpu.matmul %72, %73, %cst_56 {dimension_numbers = #tpu.dot_dimension_numbers<[1], [0], [0], [1], [0, 0, 1, 1], [], []>} : vector<1x32xf32>, vector<32x1xf32>, vector<1x1xf32> -> vector<1x1xf32>
    %c0_57 = arith.constant 0 : index
    %c0_58 = arith.constant 0 : index
    %75 = vector.load %arg13[%c0_57, %c0_58] : memref<1x1xf32, #tpu.memory_space<vmem>>, vector<1x1xf32>
    %76 = arith.addf %74, %75 : vector<1x1xf32>
    %77 = vector.shape_cast %76 : vector<1x1xf32> to vector<1x1x1xf32>
    %c0_59 = arith.constant 0 : index
    %c0_60 = arith.constant 0 : index
    %c0_61 = arith.constant 0 : index
    %78 = vector.load %arg14[%c0_59, %c0_60, %c0_61] : memref<1x1x1xf32, #tpu.memory_space<vmem>>, vector<1x1x1xf32>
    tpu.vector_store %arg14[%c0_59, %c0_60, %c0_61], %77 {strides = array<i32>} : memref<1x1x1xf32, #tpu.memory_space<vmem>>, vector<1x1x1xf32>,
    return
  }
  func.func @transform_0(%arg0: i32) -> (i32, i32, i32) {
    %c0_i32 = arith.constant 0 : i32
    %c0_i32_0 = arith.constant 0 : i32
    %c0_i32_1 = arith.constant 0 : i32
    return %arg0, %c0_i32, %c0_i32_0 : i32, i32, i32
  }
  func.func @transform_1(%arg0: i32) -> (i32, i32, i32) {
    %c0_i32 = arith.constant 0 : i32
    %c0_i32_0 = arith.constant 0 : i32
    %c0_i32_1 = arith.constant 0 : i32
    return %arg0, %c0_i32, %c0_i32_0 : i32, i32, i32
  }
  func.func @transform_2(%arg0: i32) -> (i32, i32) {
    %c0_i32 = arith.constant 0 : i32
    %c0_i32_0 = arith.constant 0 : i32
    %c0_i32_1 = arith.constant 0 : i32
    return %c0_i32, %c0_i32_0 : i32, i32
  }
  func.func @transform_3(%arg0: i32) -> (i32, i32) {
    %c0_i32 = arith.constant 0 : i32
    %c0_i32_0 = arith.constant 0 : i32
    %c0_i32_1 = arith.constant 0 : i32
    return %c0_i32, %c0_i32_0 : i32, i32
  }
  func.func @transform_4(%arg0: i32) -> (i32, i32, i32) {
    %c0_i32 = arith.constant 0 : i32
    %c0_i32_0 = arith.constant 0 : i32
    %c0_i32_1 = arith.constant 0 : i32
    %c0_i32_2 = arith.constant 0 : i32
    return %c0_i32, %c0_i32_0, %c0_i32_1 : i32, i32, i32
  }
  func.func @transform_5(%arg0: i32) -> (i32, i32) {
    %c0_i32 = arith.constant 0 : i32
    %c0_i32_0 = arith.constant 0 : i32
    %c0_i32_1 = arith.constant 0 : i32
    return %c0_i32, %c0_i32_0 : i32, i32
  }
  func.func @transform_6(%arg0: i32) -> (i32, i32) {
    %c0_i32 = arith.constant 0 : i32
    %c0_i32_0 = arith.constant 0 : i32
    %c0_i32_1 = arith.constant 0 : i32
    return %c0_i32, %c0_i32_0 : i32, i32
  }
  func.func @transform_7(%arg0: i32) -> (i32, i32) {
    %c0_i32 = arith.constant 0 : i32
    %c0_i32_0 = arith.constant 0 : i32
    %c0_i32_1 = arith.constant 0 : i32
    return %c0_i32, %c0_i32_0 : i32, i32
  }
  func.func @transform_8(%arg0: i32) -> (i32, i32) {
    %c0_i32 = arith.constant 0 : i32
    %c0_i32_0 = arith.constant 0 : i32
    %c0_i32_1 = arith.constant 0 : i32
    return %c0_i32, %c0_i32_0 : i32, i32
  }
  func.func @transform_9(%arg0: i32) -> (i32, i32) {
    %c0_i32 = arith.constant 0 : i32
    %c0_i32_0 = arith.constant 0 : i32
    %c0_i32_1 = arith.constant 0 : i32
    return %c0_i32, %c0_i32_0 : i32, i32
  }
  func.func @transform_10(%arg0: i32) -> (i32, i32) {
    %c0_i32 = arith.constant 0 : i32
    %c0_i32_0 = arith.constant 0 : i32
    %c0_i32_1 = arith.constant 0 : i32
    return %c0_i32, %c0_i32_0 : i32, i32
  }
  func.func @transform_11(%arg0: i32) -> (i32, i32) {
    %c0_i32 = arith.constant 0 : i32
    %c0_i32_0 = arith.constant 0 : i32
    %c0_i32_1 = arith.constant 0 : i32
    return %c0_i32, %c0_i32_0 : i32, i32
  }
  func.func @transform_12(%arg0: i32) -> (i32, i32) {
    %c0_i32 = arith.constant 0 : i32
    %c0_i32_0 = arith.constant 0 : i32
    %c0_i32_1 = arith.constant 0 : i32
    return %c0_i32, %c0_i32_0 : i32, i32
  }
  func.func @transform_13(%arg0: i32) -> (i32, i32, i32) {
    %c0_i32 = arith.constant 0 : i32
    %c0_i32_0 = arith.constant 0 : i32
    %c0_i32_1 = arith.constant 0 : i32
    return %arg0, %c0_i32, %c0_i32_0 : i32, i32, i32
  }
}

</mosaic_0001>

<bundles_post_ra>
// kernel: cnn_forward.5
= control target key start
LH: loop header
LB: loop body
LE: loop exit
PB: predicated region body
PF: predicated region fallthrough
CT: control target
= control target key end

     0   :  { %s1932_s12 = smov 0   ;;  %s2419_s0 = inlined_call_operand.vmem [shape: bf16[4480,48], index: 0, kind: input, shape index: {}]   ;;  %s2420_s1 = inlined_call_operand.vmem [shape: bf16[48,8], index: 1, kind: input, shape index: {}]   ;;  %s2421_s2 = inlined_call_operand.vmem [shape: f32[1,8], index: 2, kind: input, shape index: {}]   ;;  %s2422_s3 = inlined_call_operand.vmem [shape: f32[4480,8], index: 3, kind: output, shape index: {}]  }
   0x1 LB: > { %s1529_s13 = sadd.s32 4294967295, %s1910_s12   ;;  %p1533_p0 = scmp.ge.s32.totalorder %s1910_s12, 1  ;;  %s1910_s12 = sphi %s1932_s12, %s13_s12  }
   0x2   : > { %p138_p1 = scmp.lt.s32.totalorder %s1910_s12, 6 }
   0x4   : > { %p139_p2 = pnand %p1533_p0, %p138_p1 }
   0x5   : > { %s162_s16 = smul.u32 (!%p139_p2), 112, %s1529_s13 }
   0x6   : > { %142 = sbr.rel (%p139_p2) target bundleno = 332 (0x14c), region = 32 }
   0x7   : > { %p163_p3 = scmp.lt.s32.totalorder (!%p139_p2), %s162_s16, 559 }
   0xb   : > { %v1845_v0 = vld [vmem:[%s2420_s1 + $0x10] sm:$0xff]   ;;  %v1846_v1 = vld [vmem:[%s2420_s1 + $0x8] sm:$0xff]   ;;  %v1847_v2 = vld [vmem:[%s2420_s1] sm:$0xff]   ;;  %s2424_s16 = smov (!%p163_p3, %s162_s16), 559  ;;  %vm598_vm0 = vcmask 392192   ;;  %vm1360_vm1 = vcmask 64512  }
   0xc   : > { %1713 = vmatprep.subr.bf16.mxu0 %v1845_v0  ;;  %1831 = vmatprep.subr.bf16.mxu1 %v1845_v0  ;;  %s1534_s21 = sshll.u32 %s2424_s16, 2  ;;  %v2072_v59 = vld [vmem:[%s2421_s2] ss:$0 sm:$0xff]  ;;  %s1535_s27 = sshll.u32 %s2424_s16, 3 }
   0xd   : > { %1714 = vmatpush3.bf16.msra.mxu0 %v1845_v0  ;;  %1834 = vmatpush3.bf16.msra.mxu1 %v1845_v0  ;;  %s1955_s24 = scalar_lea.vmem %s2419_s0, %s1534_s21  ;;  %s2080_s30 = scalar_lea.vmem %s2422_s3, %s1535_s27 }
   0xe   : > { %1715 = vmatprep.subr.bf16.mxu0 %v1846_v1  ;;  %1832 = vmatprep.subr.bf16.mxu1 %v1846_v1  ;;  %v1848_v3 = vld [vmem:[%s1955_s24] sm:$0xff]   ;;  %v1850_v5 = vld [vmem:[%s1955_s24 + $0x8] sm:$0xff]   ;;  %v1852_v7 = vld [vmem:[%s1955_s24 + $0x10] sm:$0xff]  }
   0xf   : > { %v1849_v4 = vld [vmem:[%s1955_s24 + $0xe0] sm:$0xff]   ;;  %1719 = vmatprep.mubr.msk.bf16.mxu0 %vm598_vm0, %v1848_v3  ;;  %v1851_v6 = vld [vmem:[%s1955_s24 + $0xe8] sm:$0xff]   ;;  %v1853_v8 = vld [vmem:[%s1955_s24 + $0xf0] sm:$0xff]  }
  0x10   : > { %1775 = vmatprep.mubr.msk.bf16.mxu1 %vm598_vm0, %v1849_v4  ;;  %v1854_v9 = vld [vmem:[%s1955_s24 + $0x18] sm:$0xff]   ;;  %v1856_v11 = vld [vmem:[%s1955_s24 + $0x20] sm:$0xff]   ;;  %v1858_v13 = vld [vmem:[%s1955_s24 + $0x28] sm:$0xff]  }
  0x11   : > { %1716 = vmatpush3.bf16.msra.mxu0 %v1846_v1  ;;  %1835 = vmatpush3.bf16.msra.mxu1 %v1846_v1  ;;  %v1855_v10 = vld [vmem:[%s1955_s24 + $0xf8] sm:$0xff]   ;;  %v1857_v12 = vld [vmem:[%s1955_s24 + $0x100] sm:$0xff]   ;;  %v1859_v14 = vld [vmem:[%s1955_s24 + $0x108] sm:$0xff]  }
  0x12   : > { %1717 = vmatprep.subr.bf16.mxu0 %v1847_v2  ;;  %1833 = vmatprep.subr.bf16.mxu1 %v1847_v2  ;;  %v1860_v15 = vld [vmem:[%s1955_s24 + $0x30] sm:$0xff]   ;;  %v1862_v17 = vld [vmem:[%s1955_s24 + $0x38] sm:$0xff]   ;;  %v1864_v19 = vld [vmem:[%s1955_s24 + $0x40] sm:$0xff]  }
  0x13   : > { %v1861_v16 = vld [vmem:[%s1955_s24 + $0x110] sm:$0xff]   ;;  %v1863_v18 = vld [vmem:[%s1955_s24 + $0x118] sm:$0xff]   ;;  %v1865_v20 = vld [vmem:[%s1955_s24 + $0x120] sm:$0xff]  }
  0x14   : > { %v1866_v21 = vld [vmem:[%s1955_s24 + $0x48] sm:$0xff]   ;;  %v1868_v23 = vld [vmem:[%s1955_s24 + $0x50] sm:$0xff]   ;;  %v1870_v25 = vld [vmem:[%s1955_s24 + $0x58] sm:$0xff]  }
  0x15   : > { %1718 = vmatpush3.bf16.msra.mxu0 %v1847_v2  ;;  %1836 = vmatpush3.bf16.msra.mxu1 %v1847_v2  ;;  %v1867_v22 = vld [vmem:[%s1955_s24 + $0x128] sm:$0xff]   ;;  %v1869_v24 = vld [vmem:[%s1955_s24 + $0x130] sm:$0xff]   ;;  %v1871_v26 = vld [vmem:[%s1955_s24 + $0x138] sm:$0xff]  }
  0x16   : > { %v1872_v27 = vld [vmem:[%s1955_s24 + $0x60] sm:$0xff]   ;;  %v1874_v29 = vld [vmem:[%s1955_s24 + $0x68] sm:$0xff]   ;;  %v1876_v31 = vld [vmem:[%s1955_s24 + $0x70] sm:$0xff]  }
  0x17   : > { %v1873_v28 = vld [vmem:[%s1955_s24 + $0x140] sm:$0xff]   ;;  %v1875_v30 = vld [vmem:[%s1955_s24 + $0x148] sm:$0xff]   ;;  %v1877_v32 = vld [vmem:[%s1955_s24 + $0x150] sm:$0xff]  }
  0x18   : > { %1720 = vmatmul.mubr.msk.bf16.vlgmr.msra.gmra.mxu0 %vm598_vm0, %v1850_v5  ;;  %1776 = vmatmul.mubr.msk.bf16.vlgmr.msra.gmra.mxu1 %vm598_vm0, %v1851_v6  ;;  %v1878_v33 = vld [vmem:[%s1955_s24 + $0x78] sm:$0xff]   ;;  %v1880_v35 = vld [vmem:[%s1955_s24 + $0x80] sm:$0xff]   ;;  %v1882_v37 = vld [vmem:[%s1955_s24 + $0x88] sm:$0xff]  }
  0x19   : > { %1723 = vmatprep.mubr.msk.bf16.mxu0 %vm598_vm0, %v1852_v7  ;;  %1779 = vmatprep.mubr.msk.bf16.mxu1 %vm598_vm0, %v1853_v8  ;;  %v1879_v34 = vld [vmem:[%s1955_s24 + $0x158] sm:$0xff]   ;;  %v1881_v36 = vld [vmem:[%s1955_s24 + $0x160] sm:$0xff]   ;;  %v1883_v38 = vld [vmem:[%s1955_s24 + $0x168] sm:$0xff]  }
  0x1a   : > { %v1884_v39 = vld [vmem:[%s1955_s24 + $0x90] sm:$0xff]   ;;  %v1886_v41 = vld [vmem:[%s1955_s24 + $0x98] sm:$0xff]   ;;  %v1888_v43 = vld [vmem:[%s1955_s24 + $0xa0] sm:$0xff]  }
  0x1b   : > { %v1885_v40 = vld [vmem:[%s1955_s24 + $0x170] sm:$0xff]   ;;  %v1887_v42 = vld [vmem:[%s1955_s24 + $0x178] sm:$0xff]   ;;  %v1889_v44 = vld [vmem:[%s1955_s24 + $0x180] sm:$0xff]  }
  0x1c   : > { %v1890_v45 = vld [vmem:[%s1955_s24 + $0xa8] sm:$0xff]   ;;  %v1892_v47 = vld [vmem:[%s1955_s24 + $0xb0] sm:$0xff]   ;;  %v1894_v49 = vld [vmem:[%s1955_s24 + $0xb8] sm:$0xff]  }
  0x1d   : > { %v1891_v46 = vld [vmem:[%s1955_s24 + $0x188] sm:$0xff]   ;;  %v1893_v48 = vld [vmem:[%s1955_s24 + $0x190] sm:$0xff]   ;;  %v1895_v50 = vld [vmem:[%s1955_s24 + $0x198] sm:$0xff]  }
  0x1e   : > { %v1896_v51 = vld [vmem:[%s1955_s24 + $0xc0] sm:$0xff]   ;;  %v1898_v53 = vld [vmem:[%s1955_s24 + $0xc8] sm:$0xff]   ;;  %v1900_v55 = vld [vmem:[%s1955_s24 + $0xd0] sm:$0xff]  }
  0x1f   : > { %v1897_v52 = vld [vmem:[%s1955_s24 + $0x1a0] sm:$0xff]   ;;  %v1899_v54 = vld [vmem:[%s1955_s24 + $0x1a8] sm:$0xff]   ;;  %v1901_v56 = vld [vmem:[%s1955_s24 + $0x1b0] sm:$0xff]  }
  0x20   : > { %1724 = vmatmul.mubr.msk.bf16.gmra.mxu0 %vm598_vm0, %v1854_v9  ;;  %1780 = vmatmul.mubr.msk.bf16.gmra.mxu1 %vm598_vm0, %v1855_v10  ;;  %v1902_v57 = vld [vmem:[%s1955_s24 + $0xd8] sm:$0xff]  }
  0x21   : > { %1727 = vmatprep.mubr.msk.bf16.mxu0 %vm598_vm0, %v1856_v11  ;;  %1783 = vmatprep.mubr.msk.bf16.mxu1 %vm598_vm0, %v1857_v12  ;;  %v1903_v58 = vld [vmem:[%s1955_s24 + $0x1b8] sm:$0xff]  }
  0x28   : > { %1728 = vmatmul.mubr.msk.bf16.gmra.mxu0 %vm598_vm0, %v1858_v13  ;;  %1784 = vmatmul.mubr.msk.bf16.gmra.mxu1 %vm598_vm0, %v1859_v14 }
  0x29   : > { %1731 = vmatprep.mubr.msk.bf16.mxu0 %vm598_vm0, %v1860_v15  ;;  %1787 = vmatprep.mubr.msk.bf16.mxu1 %vm598_vm0, %v1861_v16 }
  0x30   : > { %1732 = vmatmul.mubr.msk.bf16.gmra.mxu0 %vm598_vm0, %v1862_v17  ;;  %1788 = vmatmul.mubr.msk.bf16.gmra.mxu1 %vm598_vm0, %v1863_v18 }
  0x31   : > { %1735 = vmatprep.mubr.msk.bf16.mxu0 %vm598_vm0, %v1864_v19  ;;  %1791 = vmatprep.mubr.msk.bf16.mxu1 %vm598_vm0, %v1865_v20 }
  0x38   : > { %1736 = vmatmul.mubr.msk.bf16.gmra.mxu0 %vm598_vm0, %v1866_v21  ;;  %1792 = vmatmul.mubr.msk.bf16.gmra.mxu1 %vm598_vm0, %v1867_v22 }
  0x39   : > { %1739 = vmatprep.mubr.msk.bf16.mxu0 %vm598_vm0, %v1868_v23  ;;  %1795 = vmatprep.mubr.msk.bf16.mxu1 %vm598_vm0, %v1869_v24 }
  0x40   : > { %1740 = vmatmul.mubr.msk.bf16.gmra.mxu0 %vm598_vm0, %v1870_v25  ;;  %1796 = vmatmul.mubr.msk.bf16.gmra.mxu1 %vm598_vm0, %v1871_v26 }
  0x41   : > { %1743 = vmatprep.mubr.msk.bf16.mxu0 %vm598_vm0, %v1872_v27  ;;  %1799 = vmatprep.mubr.msk.bf16.mxu1 %vm598_vm0, %v1873_v28 }
  0x48   : > { %1744 = vmatmul.mubr.msk.bf16.gmra.mxu0 %vm598_vm0, %v1874_v29  ;;  %1800 = vmatmul.mubr.msk.bf16.gmra.mxu1 %vm598_vm0, %v1875_v30 }
  0x49   : > { %1747 = vmatprep.mubr.msk.bf16.mxu0 %vm598_vm0, %v1876_v31  ;;  %1803 = vmatprep.mubr.msk.bf16.mxu1 %vm598_vm0, %v1877_v32 }
  0x50   : > { %1748 = vmatmul.mubr.msk.bf16.gmra.mxu0 %vm598_vm0, %v1878_v33  ;;  %1804 = vmatmul.mubr.msk.bf16.gmra.mxu1 %vm598_vm0, %v1879_v34 }
  0x51   : > { %1751 = vmatprep.mubr.msk.bf16.mxu0 %vm598_vm0, %v1880_v35  ;;  %1807 = vmatprep.mubr.msk.bf16.mxu1 %vm598_vm0, %v1881_v36 }
  0x58   : > { %1752 = vmatmul.mubr.msk.bf16.gmra.mxu0 %vm598_vm0, %v1882_v37  ;;  %1808 = vmatmul.mubr.msk.bf16.gmra.mxu1 %vm598_vm0, %v1883_v38 }
  0x59   : > { %1755 = vmatprep.mubr.msk.bf16.mxu0 %vm598_vm0, %v1884_v39  ;;  %1811 = vmatprep.mubr.msk.bf16.mxu1 %vm598_vm0, %v1885_v40 }
  0x60   : > { %1756 = vmatmul.mubr.msk.bf16.gmra.mxu0 %vm598_vm0, %v1886_v41  ;;  %1812 = vmatmul.mubr.msk.bf16.gmra.mxu1 %vm598_vm0, %v1887_v42 }
  0x61   : > { %1759 = vmatprep.mubr.msk.bf16.mxu0 %vm598_vm0, %v1888_v43  ;;  %1815 = vmatprep.mubr.msk.bf16.mxu1 %vm598_vm0, %v1889_v44 }
  0x68   : > { %1760 = vmatmul.mubr.msk.bf16.gmra.mxu0 %vm598_vm0, %v1890_v45  ;;  %1816 = vmatmul.mubr.msk.bf16.gmra.mxu1 %vm598_vm0, %v1891_v46 }
  0x69   : > { %1763 = vmatprep.mubr.msk.bf16.mxu0 %vm598_vm0, %v1892_v47  ;;  %1819 = vmatprep.mubr.msk.bf16.mxu1 %vm598_vm0, %v1893_v48 }
  0x70   : > { %1764 = vmatmul.mubr.msk.bf16.gmra.mxu0 %vm598_vm0, %v1894_v49  ;;  %1820 = vmatmul.mubr.msk.bf16.gmra.mxu1 %vm598_vm0, %v1895_v50 }
  0x71   : > { %1767 = vmatprep.mubr.msk.bf16.mxu0 %vm598_vm0, %v1896_v51  ;;  %1823 = vmatprep.mubr.msk.bf16.mxu1 %vm598_vm0, %v1897_v52 }
  0x78   : > { %1768 = vmatmul.mubr.msk.bf16.gmra.mxu0 %vm598_vm0, %v1898_v53  ;;  %1824 = vmatmul.mubr.msk.bf16.gmra.mxu1 %vm598_vm0, %v1899_v54 }
  0x79   : > { %1771 = vmatprep.mubr.msk.bf16.mxu0 %vm598_vm0, %v1900_v55  ;;  %1827 = vmatprep.mubr.msk.bf16.mxu1 %vm598_vm0, %v1901_v56 }
  0x80   : > { %1772 = vmatmul.mubr.msk.bf16.gmra.mxu0 %vm598_vm0, %v1902_v57  ;;  %1828 = vmatmul.mubr.msk.bf16.gmra.mxu1 %vm598_vm0, %v1903_v58 }
  0xd8   : > { %v1721_v60 = vpop.f32.mrf.mxu0  ;;  %v1777_v61 = vpop.f32.mrf.mxu1 }
  0xd9   : > { %v810_v62 = vadd.f32 %v1721_v60, %v2072_v59  ;;  %v1034_v63 = vadd.f32 %v1777_v61, %v2072_v59 }
  0xda   : > { %v801_v0 = vpop.f32.mrf.mxu0  ;;  %v1025_v1 = vpop.f32.mrf.mxu1 }
  0xdb   : > { %v1250_v2 = vmax.f32 %v810_v62, 0.0  ;;  %v1306_v3 = vmax.f32 %v1034_v63, 0.0  ;;  %v802_v4 = vadd.f32 %v2072_v59, %v801_v0  ;;  %v1026_v5 = vadd.f32 %v2072_v59, %v1025_v1 }
  0xdc   : > { %v1722_v6 = vpop.f32.mrf.mxu0  ;;  %v1778_v7 = vpop.f32.mrf.mxu1 }
  0xdd   : > { %1363 = vst.msk [vmem:[%s2080_s30 + $0x10] sm:$0xff] %vm1360_vm1, %v1250_v2  ;;  %1419 = vst.msk [vmem:[%s2080_s30 + $0x1d0] sm:$0xff] %vm1360_vm1, %v1306_v3  ;;  %v1248_v8 = vmax.f32 %v802_v4, 0.0  ;;  %v1304_v9 = vmax.f32 %v1026_v5, 0.0  ;;  %v813_v10 = vadd.f32 %v1722_v6, %v2072_v59  ;;  %v1037_v11 = vadd.f32 %v1778_v7, %v2072_v59 }
  0xde   : > { %v804_v12 = vpop.f32.mrf.mxu0  ;;  %v1028_v13 = vpop.f32.mrf.mxu1 }
  0xdf   : > { %1361 = vst.msk [vmem:[%s2080_s30] sm:$0xff] %vm1360_vm1, %v1248_v8  ;;  %1417 = vst.msk [vmem:[%s2080_s30 + $0x1c0] sm:$0xff] %vm1360_vm1, %v1304_v9  ;;  %v1251_v14 = vmax.f32 %v813_v10, 0.0  ;;  %v1307_v15 = vmax.f32 %v1037_v11, 0.0  ;;  %v805_v16 = vadd.f32 %v2072_v59, %v804_v12  ;;  %v1029_v17 = vadd.f32 %v2072_v59, %v1028_v13 }
  0xe0   : > { %v1725_v18 = vpop.f32.mrf.mxu0  ;;  %v1781_v19 = vpop.f32.mrf.mxu1 }
  0xe1   : > { %1364 = vst.msk [vmem:[%s2080_s30 + $0x18] sm:$0xff] %vm1360_vm1, %v1251_v14  ;;  %1420 = vst.msk [vmem:[%s2080_s30 + $0x1d8] sm:$0xff] %vm1360_vm1, %v1307_v15  ;;  %v1249_v20 = vmax.f32 %v805_v16, 0.0  ;;  %v1305_v21 = vmax.f32 %v1029_v17, 0.0  ;;  %v826_v22 = vadd.f32 %v1725_v18, %v2072_v59  ;;  %v1050_v23 = vadd.f32 %v1781_v19, %v2072_v59 }
  0xe2   : > { %v817_v24 = vpop.f32.mrf.mxu0  ;;  %v1041_v25 = vpop.f32.mrf.mxu1 }
  0xe3   : > { %1362 = vst.msk [vmem:[%s2080_s30 + $0x8] sm:$0xff] %vm1360_vm1, %v1249_v20  ;;  %1418 = vst.msk [vmem:[%s2080_s30 + $0x1c8] sm:$0xff] %vm1360_vm1, %v1305_v21  ;;  %v1254_v26 = vmax.f32 %v826_v22, 0.0  ;;  %v1310_v27 = vmax.f32 %v1050_v23, 0.0  ;;  %v818_v28 = vadd.f32 %v2072_v59, %v817_v24  ;;  %v1042_v29 = vadd.f32 %v2072_v59, %v1041_v25 }
  0xe4   : > { %v1726_v30 = vpop.f32.mrf.mxu0  ;;  %v1782_v31 = vpop.f32.mrf.mxu1 }
  0xe5   : > { %1367 = vst.msk [vmem:[%s2080_s30 + $0x30] sm:$0xff] %vm1360_vm1, %v1254_v26  ;;  %1423 = vst.msk [vmem:[%s2080_s30 + $0x1f0] sm:$0xff] %vm1360_vm1, %v1310_v27  ;;  %v1252_v32 = vmax.f32 %v818_v28, 0.0  ;;  %v1308_v33 = vmax.f32 %v1042_v29, 0.0  ;;  %v829_v34 = vadd.f32 %v1726_v30, %v2072_v59  ;;  %v1053_v35 = vadd.f32 %v1782_v31, %v2072_v59 }
  0xe6   : > { %v820_v36 = vpop.f32.mrf.mxu0  ;;  %v1044_v37 = vpop.f32.mrf.mxu1 }
  0xe7   : > { %1365 = vst.msk [vmem:[%s2080_s30 + $0x20] sm:$0xff] %vm1360_vm1, %v1252_v32  ;;  %1421 = vst.msk [vmem:[%s2080_s30 + $0x1e0] sm:$0xff] %vm1360_vm1, %v1308_v33  ;;  %v1255_v38 = vmax.f32 %v829_v34, 0.0  ;;  %v1311_v39 = vmax.f32 %v1053_v35, 0.0  ;;  %v821_v40 = vadd.f32 %v2072_v59, %v820_v36  ;;  %v1045_v41 = vadd.f32 %v2072_v59, %v1044_v37 }
  0xe8   : > { %v1729_v42 = vpop.f32.mrf.mxu0  ;;  %v1785_v43 = vpop.f32.mrf.mxu1 }
  0xe9   : > { %1368 = vst.msk [vmem:[%s2080_s30 + $0x38] sm:$0xff] %vm1360_vm1, %v1255_v38  ;;  %1424 = vst.msk [vmem:[%s2080_s30 + $0x1f8] sm:$0xff] %vm1360_vm1, %v1311_v39  ;;  %v1253_v44 = vmax.f32 %v821_v40, 0.0  ;;  %v1309_v45 = vmax.f32 %v1045_v41, 0.0  ;;  %v842_v46 = vadd.f32 %v1729_v42, %v2072_v59  ;;  %v1066_v47 = vadd.f32 %v1785_v43, %v2072_v59 }
  0xea   : > { %v833_v48 = vpop.f32.mrf.mxu0  ;;  %v1057_v49 = vpop.f32.mrf.mxu1 }
  0xeb   : > { %1366 = vst.msk [vmem:[%s2080_s30 + $0x28] sm:$0xff] %vm1360_vm1, %v1253_v44  ;;  %1422 = vst.msk [vmem:[%s2080_s30 + $0x1e8] sm:$0xff] %vm1360_vm1, %v1309_v45  ;;  %v1258_v50 = vmax.f32 %v842_v46, 0.0  ;;  %v1314_v51 = vmax.f32 %v1066_v47, 0.0  ;;  %v834_v52 = vadd.f32 %v2072_v59, %v833_v48  ;;  %v1058_v53 = vadd.f32 %v2072_v59, %v1057_v49 }
  0xec   : > { %v1730_v54 = vpop.f32.mrf.mxu0  ;;  %v1786_v55 = vpop.f32.mrf.mxu1 }
  0xed   : > { %1371 = vst.msk [vmem:[%s2080_s30 + $0x50] sm:$0xff] %vm1360_vm1, %v1258_v50  ;;  %1427 = vst.msk [vmem:[%s2080_s30 + $0x210] sm:$0xff] %vm1360_vm1, %v1314_v51  ;;  %v1256_v56 = vmax.f32 %v834_v52, 0.0  ;;  %v1312_v57 = vmax.f32 %v1058_v53, 0.0  ;;  %v845_v58 = vadd.f32 %v1730_v54, %v2072_v59  ;;  %v1069_v60 = vadd.f32 %v1786_v55, %v2072_v59 }
  0xee   : > { %v836_v61 = vpop.f32.mrf.mxu0  ;;  %v1060_v62 = vpop.f32.mrf.mxu1 }
  0xef   : > { %1369 = vst.msk [vmem:[%s2080_s30 + $0x40] sm:$0xff] %vm1360_vm1, %v1256_v56  ;;  %1425 = vst.msk [vmem:[%s2080_s30 + $0x200] sm:$0xff] %vm1360_vm1, %v1312_v57  ;;  %v1259_v63 = vmax.f32 %v845_v58, 0.0  ;;  %v1315_v0 = vmax.f32 %v1069_v60, 0.0  ;;  %v837_v1 = vadd.f32 %v2072_v59, %v836_v61  ;;  %v1061_v2 = vadd.f32 %v2072_v59, %v1060_v62 }
  0xf0   : > { %v1733_v3 = vpop.f32.mrf.mxu0  ;;  %v1789_v4 = vpop.f32.mrf.mxu1 }
  0xf1   : > { %1372 = vst.msk [vmem:[%s2080_s30 + $0x58] sm:$0xff] %vm1360_vm1, %v1259_v63  ;;  %1428 = vst.msk [vmem:[%s2080_s30 + $0x218] sm:$0xff] %vm1360_vm1, %v1315_v0  ;;  %v1257_v5 = vmax.f32 %v837_v1, 0.0  ;;  %v1313_v6 = vmax.f32 %v1061_v2, 0.0  ;;  %v858_v7 = vadd.f32 %v1733_v3, %v2072_v59  ;;  %v1082_v8 = vadd.f32 %v1789_v4, %v2072_v59 }
  0xf2   : > { %v849_v9 = vpop.f32.mrf.mxu0  ;;  %v1073_v10 = vpop.f32.mrf.mxu1 }
  0xf3   : > { %1370 = vst.msk [vmem:[%s2080_s30 + $0x48] sm:$0xff] %vm1360_vm1, %v1257_v5  ;;  %1426 = vst.msk [vmem:[%s2080_s30 + $0x208] sm:$0xff] %vm1360_vm1, %v1313_v6  ;;  %v1262_v11 = vmax.f32 %v858_v7, 0.0  ;;  %v1318_v12 = vmax.f32 %v1082_v8, 0.0  ;;  %v850_v13 = vadd.f32 %v2072_v59, %v849_v9  ;;  %v1074_v14 = vadd.f32 %v2072_v59, %v1073_v10 }
  0xf4   : > { %v1734_v15 = vpop.f32.mrf.mxu0  ;;  %v1790_v16 = vpop.f32.mrf.mxu1 }
  0xf5   : > { %1375 = vst.msk [vmem:[%s2080_s30 + $0x70] sm:$0xff] %vm1360_vm1, %v1262_v11  ;;  %1431 = vst.msk [vmem:[%s2080_s30 + $0x230] sm:$0xff] %vm1360_vm1, %v1318_v12  ;;  %v1260_v17 = vmax.f32 %v850_v13, 0.0  ;;  %v1316_v18 = vmax.f32 %v1074_v14, 0.0  ;;  %v861_v19 = vadd.f32 %v1734_v15, %v2072_v59  ;;  %v1085_v20 = vadd.f32 %v1790_v16, %v2072_v59 }
  0xf6   : > { %v852_v21 = vpop.f32.mrf.mxu0  ;;  %v1076_v22 = vpop.f32.mrf.mxu1 }
  0xf7   : > { %1373 = vst.msk [vmem:[%s2080_s30 + $0x60] sm:$0xff] %vm1360_vm1, %v1260_v17  ;;  %1429 = vst.msk [vmem:[%s2080_s30 + $0x220] sm:$0xff] %vm1360_vm1, %v1316_v18  ;;  %v1263_v23 = vmax.f32 %v861_v19, 0.0  ;;  %v1319_v24 = vmax.f32 %v1085_v20, 0.0  ;;  %v853_v25 = vadd.f32 %v2072_v59, %v852_v21  ;;  %v1077_v26 = vadd.f32 %v2072_v59, %v1076_v22 }
  0xf8   : > { %v1737_v27 = vpop.f32.mrf.mxu0  ;;  %v1793_v28 = vpop.f32.mrf.mxu1 }
  0xf9   : > { %1376 = vst.msk [vmem:[%s2080_s30 + $0x78] sm:$0xff] %vm1360_vm1, %v1263_v23  ;;  %1432 = vst.msk [vmem:[%s2080_s30 + $0x238] sm:$0xff] %vm1360_vm1, %v1319_v24  ;;  %v1261_v29 = vmax.f32 %v853_v25, 0.0  ;;  %v1317_v30 = vmax.f32 %v1077_v26, 0.0  ;;  %v874_v31 = vadd.f32 %v1737_v27, %v2072_v59  ;;  %v1098_v32 = vadd.f32 %v1793_v28, %v2072_v59 }
  0xfa   : > { %v865_v33 = vpop.f32.mrf.mxu0  ;;  %v1089_v34 = vpop.f32.mrf.mxu1 }
  0xfb   : > { %1374 = vst.msk [vmem:[%s2080_s30 + $0x68] sm:$0xff] %vm1360_vm1, %v1261_v29  ;;  %1430 = vst.msk [vmem:[%s2080_s30 + $0x228] sm:$0xff] %vm1360_vm1, %v1317_v30  ;;  %v1266_v35 = vmax.f32 %v874_v31, 0.0  ;;  %v1322_v36 = vmax.f32 %v1098_v32, 0.0  ;;  %v866_v37 = vadd.f32 %v2072_v59, %v865_v33  ;;  %v1090_v38 = vadd.f32 %v2072_v59, %v1089_v34 }
  0xfc   : > { %v1738_v39 = vpop.f32.mrf.mxu0  ;;  %v1794_v40 = vpop.f32.mrf.mxu1 }
  0xfd   : > { %1379 = vst.msk [vmem:[%s2080_s30 + $0x90] sm:$0xff] %vm1360_vm1, %v1266_v35  ;;  %1435 = vst.msk [vmem:[%s2080_s30 + $0x250] sm:$0xff] %vm1360_vm1, %v1322_v36  ;;  %v1264_v41 = vmax.f32 %v866_v37, 0.0  ;;  %v1320_v42 = vmax.f32 %v1090_v38, 0.0  ;;  %v877_v43 = vadd.f32 %v1738_v39, %v2072_v59  ;;  %v1101_v44 = vadd.f32 %v1794_v40, %v2072_v59 }
  0xfe   : > { %v868_v45 = vpop.f32.mrf.mxu0  ;;  %v1092_v46 = vpop.f32.mrf.mxu1 }
  0xff   : > { %1377 = vst.msk [vmem:[%s2080_s30 + $0x80] sm:$0xff] %vm1360_vm1, %v1264_v41  ;;  %1433 = vst.msk [vmem:[%s2080_s30 + $0x240] sm:$0xff] %vm1360_vm1, %v1320_v42  ;;  %v1267_v47 = vmax.f32 %v877_v43, 0.0  ;;  %v1323_v48 = vmax.f32 %v1101_v44, 0.0  ;;  %v869_v49 = vadd.f32 %v2072_v59, %v868_v45  ;;  %v1093_v50 = vadd.f32 %v2072_v59, %v1092_v46 }
 0x100   : > { %v1741_v51 = vpop.f32.mrf.mxu0  ;;  %v1797_v52 = vpop.f32.mrf.mxu1 }
 0x101   : > { %1380 = vst.msk [vmem:[%s2080_s30 + $0x98] sm:$0xff] %vm1360_vm1, %v1267_v47  ;;  %1436 = vst.msk [vmem:[%s2080_s30 + $0x258] sm:$0xff] %vm1360_vm1, %v1323_v48  ;;  %v1265_v53 = vmax.f32 %v869_v49, 0.0  ;;  %v1321_v54 = vmax.f32 %v1093_v50, 0.0  ;;  %v890_v55 = vadd.f32 %v1741_v51, %v2072_v59  ;;  %v1114_v56 = vadd.f32 %v1797_v52, %v2072_v59 }
 0x102   : > { %v881_v57 = vpop.f32.mrf.mxu0  ;;  %v1105_v58 = vpop.f32.mrf.mxu1 }
 0x103   : > { %1378 = vst.msk [vmem:[%s2080_s30 + $0x88] sm:$0xff] %vm1360_vm1, %v1265_v53  ;;  %1434 = vst.msk [vmem:[%s2080_s30 + $0x248] sm:$0xff] %vm1360_vm1, %v1321_v54  ;;  %v1270_v60 = vmax.f32 %v890_v55, 0.0  ;;  %v1326_v61 = vmax.f32 %v1114_v56, 0.0  ;;  %v882_v62 = vadd.f32 %v2072_v59, %v881_v57  ;;  %v1106_v63 = vadd.f32 %v2072_v59, %v1105_v58 }
 0x104   : > { %v1742_v0 = vpop.f32.mrf.mxu0  ;;  %v1798_v1 = vpop.f32.mrf.mxu1 }
 0x105   : > { %1383 = vst.msk [vmem:[%s2080_s30 + $0xb0] sm:$0xff] %vm1360_vm1, %v1270_v60  ;;  %1439 = vst.msk [vmem:[%s2080_s30 + $0x270] sm:$0xff] %vm1360_vm1, %v1326_v61  ;;  %v1268_v2 = vmax.f32 %v882_v62, 0.0  ;;  %v1324_v3 = vmax.f32 %v1106_v63, 0.0  ;;  %v893_v4 = vadd.f32 %v1742_v0, %v2072_v59  ;;  %v1117_v5 = vadd.f32 %v1798_v1, %v2072_v59 }
 0x106   : > { %v884_v6 = vpop.f32.mrf.mxu0  ;;  %v1108_v7 = vpop.f32.mrf.mxu1 }
 0x107   : > { %1381 = vst.msk [vmem:[%s2080_s30 + $0xa0] sm:$0xff] %vm1360_vm1, %v1268_v2  ;;  %1437 = vst.msk [vmem:[%s2080_s30 + $0x260] sm:$0xff] %vm1360_vm1, %v1324_v3  ;;  %v1271_v8 = vmax.f32 %v893_v4, 0.0  ;;  %v1327_v9 = vmax.f32 %v1117_v5, 0.0  ;;  %v885_v10 = vadd.f32 %v2072_v59, %v884_v6  ;;  %v1109_v11 = vadd.f32 %v2072_v59, %v1108_v7 }
 0x108   : > { %v1745_v12 = vpop.f32.mrf.mxu0  ;;  %v1801_v13 = vpop.f32.mrf.mxu1 }
 0x109   : > { %1384 = vst.msk [vmem:[%s2080_s30 + $0xb8] sm:$0xff] %vm1360_vm1, %v1271_v8  ;;  %1440 = vst.msk [vmem:[%s2080_s30 + $0x278] sm:$0xff] %vm1360_vm1, %v1327_v9  ;;  %v1269_v14 = vmax.f32 %v885_v10, 0.0  ;;  %v1325_v15 = vmax.f32 %v1109_v11, 0.0  ;;  %v906_v16 = vadd.f32 %v1745_v12, %v2072_v59  ;;  %v1130_v17 = vadd.f32 %v1801_v13, %v2072_v59 }
 0x10a   : > { %v897_v18 = vpop.f32.mrf.mxu0  ;;  %v1121_v19 = vpop.f32.mrf.mxu1 }
 0x10b   : > { %1382 = vst.msk [vmem:[%s2080_s30 + $0xa8] sm:$0xff] %vm1360_vm1, %v1269_v14  ;;  %1438 = vst.msk [vmem:[%s2080_s30 + $0x268] sm:$0xff] %vm1360_vm1, %v1325_v15  ;;  %v1274_v20 = vmax.f32 %v906_v16, 0.0  ;;  %v1330_v21 = vmax.f32 %v1130_v17, 0.0  ;;  %v898_v22 = vadd.f32 %v2072_v59, %v897_v18  ;;  %v1122_v23 = vadd.f32 %v2072_v59, %v1121_v19 }
 0x10c   : > { %v1746_v24 = vpop.f32.mrf.mxu0  ;;  %v1802_v25 = vpop.f32.mrf.mxu1 }
 0x10d   : > { %1387 = vst.msk [vmem:[%s2080_s30 + $0xd0] sm:$0xff] %vm1360_vm1, %v1274_v20  ;;  %1443 = vst.msk [vmem:[%s2080_s30 + $0x290] sm:$0xff] %vm1360_vm1, %v1330_v21  ;;  %v1272_v26 = vmax.f32 %v898_v22, 0.0  ;;  %v1328_v27 = vmax.f32 %v1122_v23, 0.0  ;;  %v909_v28 = vadd.f32 %v1746_v24, %v2072_v59  ;;  %v1133_v29 = vadd.f32 %v1802_v25, %v2072_v59 }
 0x10e   : > { %v900_v30 = vpop.f32.mrf.mxu0  ;;  %v1124_v31 = vpop.f32.mrf.mxu1 }
 0x10f   : > { %1385 = vst.msk [vmem:[%s2080_s30 + $0xc0] sm:$0xff] %vm1360_vm1, %v1272_v26  ;;  %1441 = vst.msk [vmem:[%s2080_s30 + $0x280] sm:$0xff] %vm1360_vm1, %v1328_v27  ;;  %v1275_v32 = vmax.f32 %v909_v28, 0.0  ;;  %v1331_v33 = vmax.f32 %v1133_v29, 0.0  ;;  %v901_v34 = vadd.f32 %v2072_v59, %v900_v30  ;;  %v1125_v35 = vadd.f32 %v2072_v59, %v1124_v31 }
 0x110   : > { %v1749_v36 = vpop.f32.mrf.mxu0  ;;  %v1805_v37 = vpop.f32.mrf.mxu1 }
 0x111   : > { %1388 = vst.msk [vmem:[%s2080_s30 + $0xd8] sm:$0xff] %vm1360_vm1, %v1275_v32  ;;  %1444 = vst.msk [vmem:[%s2080_s30 + $0x298] sm:$0xff] %vm1360_vm1, %v1331_v33  ;;  %v1273_v38 = vmax.f32 %v901_v34, 0.0  ;;  %v1329_v39 = vmax.f32 %v1125_v35, 0.0  ;;  %v922_v40 = vadd.f32 %v1749_v36, %v2072_v59  ;;  %v1146_v41 = vadd.f32 %v1805_v37, %v2072_v59 }
 0x112   : > { %v913_v42 = vpop.f32.mrf.mxu0  ;;  %v1137_v43 = vpop.f32.mrf.mxu1 }
 0x113   : > { %1386 = vst.msk [vmem:[%s2080_s30 + $0xc8] sm:$0xff] %vm1360_vm1, %v1273_v38  ;;  %1442 = vst.msk [vmem:[%s2080_s30 + $0x288] sm:$0xff] %vm1360_vm1, %v1329_v39  ;;  %v1278_v44 = vmax.f32 %v922_v40, 0.0  ;;  %v1334_v45 = vmax.f32 %v1146_v41, 0.0  ;;  %v914_v46 = vadd.f32 %v2072_v59, %v913_v42  ;;  %v1138_v47 = vadd.f32 %v2072_v59, %v1137_v43 }
 0x114   : > { %v1750_v48 = vpop.f32.mrf.mxu0  ;;  %v1806_v49 = vpop.f32.mrf.mxu1 }
 0x115   : > { %1391 = vst.msk [vmem:[%s2080_s30 + $0xf0] sm:$0xff] %vm1360_vm1, %v1278_v44  ;;  %1447 = vst.msk [vmem:[%s2080_s30 + $0x2b0] sm:$0xff] %vm1360_vm1, %v1334_v45  ;;  %v1276_v50 = vmax.f32 %v914_v46, 0.0  ;;  %v1332_v51 = vmax.f32 %v1138_v47, 0.0  ;;  %v925_v52 = vadd.f32 %v1750_v48, %v2072_v59  ;;  %v1149_v53 = vadd.f32 %v1806_v49, %v2072_v59 }
 0x116   : > { %v916_v54 = vpop.f32.mrf.mxu0  ;;  %v1140_v55 = vpop.f32.mrf.mxu1 }
 0x117   : > { %1389 = vst.msk [vmem:[%s2080_s30 + $0xe0] sm:$0xff] %vm1360_vm1, %v1276_v50  ;;  %1445 = vst.msk [vmem:[%s2080_s30 + $0x2a0] sm:$0xff] %vm1360_vm1, %v1332_v51  ;;  %v1279_v56 = vmax.f32 %v925_v52, 0.0  ;;  %v1335_v57 = vmax.f32 %v1149_v53, 0.0  ;;  %v917_v58 = vadd.f32 %v2072_v59, %v916_v54  ;;  %v1141_v60 = vadd.f32 %v2072_v59, %v1140_v55 }
 0x118   : > { %v1753_v61 = vpop.f32.mrf.mxu0  ;;  %v1809_v62 = vpop.f32.mrf.mxu1 }
 0x119   : > { %1392 = vst.msk [vmem:[%s2080_s30 + $0xf8] sm:$0xff] %vm1360_vm1, %v1279_v56  ;;  %1448 = vst.msk [vmem:[%s2080_s30 + $0x2b8] sm:$0xff] %vm1360_vm1, %v1335_v57  ;;  %v1277_v63 = vmax.f32 %v917_v58, 0.0  ;;  %v1333_v0 = vmax.f32 %v1141_v60, 0.0  ;;  %v938_v1 = vadd.f32 %v1753_v61, %v2072_v59  ;;  %v1162_v2 = vadd.f32 %v1809_v62, %v2072_v59 }
 0x11a   : > { %v929_v3 = vpop.f32.mrf.mxu0  ;;  %v1153_v4 = vpop.f32.mrf.mxu1 }
 0x11b   : > { %1390 = vst.msk [vmem:[%s2080_s30 + $0xe8] sm:$0xff] %vm1360_vm1, %v1277_v63  ;;  %1446 = vst.msk [vmem:[%s2080_s30 + $0x2a8] sm:$0xff] %vm1360_vm1, %v1333_v0  ;;  %v1282_v5 = vmax.f32 %v938_v1, 0.0  ;;  %v1338_v6 = vmax.f32 %v1162_v2, 0.0  ;;  %v930_v7 = vadd.f32 %v2072_v59, %v929_v3  ;;  %v1154_v8 = vadd.f32 %v2072_v59, %v1153_v4 }
 0x11c   : > { %v1754_v9 = vpop.f32.mrf.mxu0  ;;  %v1810_v10 = vpop.f32.mrf.mxu1 }
 0x11d   : > { %1395 = vst.msk [vmem:[%s2080_s30 + $0x110] sm:$0xff] %vm1360_vm1, %v1282_v5  ;;  %1451 = vst.msk [vmem:[%s2080_s30 + $0x2d0] sm:$0xff] %vm1360_vm1, %v1338_v6  ;;  %v1280_v11 = vmax.f32 %v930_v7, 0.0  ;;  %v1336_v12 = vmax.f32 %v1154_v8, 0.0  ;;  %v941_v13 = vadd.f32 %v1754_v9, %v2072_v59  ;;  %v1165_v14 = vadd.f32 %v1810_v10, %v2072_v59 }
 0x11e   : > { %v932_v15 = vpop.f32.mrf.mxu0  ;;  %v1156_v16 = vpop.f32.mrf.mxu1 }
 0x11f   : > { %1393 = vst.msk [vmem:[%s2080_s30 + $0x100] sm:$0xff] %vm1360_vm1, %v1280_v11  ;;  %1449 = vst.msk [vmem:[%s2080_s30 + $0x2c0] sm:$0xff] %vm1360_vm1, %v1336_v12  ;;  %v1283_v17 = vmax.f32 %v941_v13, 0.0  ;;  %v1339_v18 = vmax.f32 %v1165_v14, 0.0  ;;  %v933_v19 = vadd.f32 %v2072_v59, %v932_v15  ;;  %v1157_v20 = vadd.f32 %v2072_v59, %v1156_v16 }
 0x120   : > { %v1757_v21 = vpop.f32.mrf.mxu0  ;;  %v1813_v22 = vpop.f32.mrf.mxu1 }
 0x121   : > { %1396 = vst.msk [vmem:[%s2080_s30 + $0x118] sm:$0xff] %vm1360_vm1, %v1283_v17  ;;  %1452 = vst.msk [vmem:[%s2080_s30 + $0x2d8] sm:$0xff] %vm1360_vm1, %v1339_v18  ;;  %v1281_v23 = vmax.f32 %v933_v19, 0.0  ;;  %v1337_v24 = vmax.f32 %v1157_v20, 0.0  ;;  %v954_v25 = vadd.f32 %v1757_v21, %v2072_v59  ;;  %v1178_v26 = vadd.f32 %v1813_v22, %v2072_v59 }
 0x122   : > { %v945_v27 = vpop.f32.mrf.mxu0  ;;  %v1169_v28 = vpop.f32.mrf.mxu1 }
 0x123   : > { %1394 = vst.msk [vmem:[%s2080_s30 + $0x108] sm:$0xff] %vm1360_vm1, %v1281_v23  ;;  %1450 = vst.msk [vmem:[%s2080_s30 + $0x2c8] sm:$0xff] %vm1360_vm1, %v1337_v24  ;;  %v1286_v29 = vmax.f32 %v954_v25, 0.0  ;;  %v1342_v30 = vmax.f32 %v1178_v26, 0.0  ;;  %v946_v31 = vadd.f32 %v2072_v59, %v945_v27  ;;  %v1170_v32 = vadd.f32 %v2072_v59, %v1169_v28 }
 0x124   : > { %v1758_v33 = vpop.f32.mrf.mxu0  ;;  %v1814_v34 = vpop.f32.mrf.mxu1 }
 0x125   : > { %1399 = vst.msk [vmem:[%s2080_s30 + $0x130] sm:$0xff] %vm1360_vm1, %v1286_v29  ;;  %1455 = vst.msk [vmem:[%s2080_s30 + $0x2f0] sm:$0xff] %vm1360_vm1, %v1342_v30  ;;  %v1284_v35 = vmax.f32 %v946_v31, 0.0  ;;  %v1340_v36 = vmax.f32 %v1170_v32, 0.0  ;;  %v957_v37 = vadd.f32 %v1758_v33, %v2072_v59  ;;  %v1181_v38 = vadd.f32 %v1814_v34, %v2072_v59 }
 0x126   : > { %v948_v39 = vpop.f32.mrf.mxu0  ;;  %v1172_v40 = vpop.f32.mrf.mxu1 }
 0x127   : > { %1397 = vst.msk [vmem:[%s2080_s30 + $0x120] sm:$0xff] %vm1360_vm1, %v1284_v35  ;;  %1453 = vst.msk [vmem:[%s2080_s30 + $0x2e0] sm:$0xff] %vm1360_vm1, %v1340_v36  ;;  %v1287_v41 = vmax.f32 %v957_v37, 0.0  ;;  %v1343_v42 = vmax.f32 %v1181_v38, 0.0  ;;  %v949_v43 = vadd.f32 %v2072_v59, %v948_v39  ;;  %v1173_v44 = vadd.f32 %v2072_v59, %v1172_v40 }
 0x128   : > { %v1761_v45 = vpop.f32.mrf.mxu0  ;;  %v1817_v46 = vpop.f32.mrf.mxu1 }
 0x129   : > { %1400 = vst.msk [vmem:[%s2080_s30 + $0x138] sm:$0xff] %vm1360_vm1, %v1287_v41  ;;  %1456 = vst.msk [vmem:[%s2080_s30 + $0x2f8] sm:$0xff] %vm1360_vm1, %v1343_v42  ;;  %v1285_v47 = vmax.f32 %v949_v43, 0.0  ;;  %v1341_v48 = vmax.f32 %v1173_v44, 0.0  ;;  %v970_v49 = vadd.f32 %v1761_v45, %v2072_v59  ;;  %v1194_v50 = vadd.f32 %v1817_v46, %v2072_v59 }
 0x12a   : > { %v961_v51 = vpop.f32.mrf.mxu0  ;;  %v1185_v52 = vpop.f32.mrf.mxu1 }
 0x12b   : > { %1398 = vst.msk [vmem:[%s2080_s30 + $0x128] sm:$0xff] %vm1360_vm1, %v1285_v47  ;;  %1454 = vst.msk [vmem:[%s2080_s30 + $0x2e8] sm:$0xff] %vm1360_vm1, %v1341_v48  ;;  %v1290_v53 = vmax.f32 %v970_v49, 0.0  ;;  %v1346_v54 = vmax.f32 %v1194_v50, 0.0  ;;  %v962_v55 = vadd.f32 %v2072_v59, %v961_v51  ;;  %v1186_v56 = vadd.f32 %v2072_v59, %v1185_v52 }
 0x12c   : > { %v1762_v57 = vpop.f32.mrf.mxu0  ;;  %v1818_v58 = vpop.f32.mrf.mxu1 }
 0x12d   : > { %1403 = vst.msk [vmem:[%s2080_s30 + $0x150] sm:$0xff] %vm1360_vm1, %v1290_v53  ;;  %1459 = vst.msk [vmem:[%s2080_s30 + $0x310] sm:$0xff] %vm1360_vm1, %v1346_v54  ;;  %v1288_v60 = vmax.f32 %v962_v55, 0.0  ;;  %v1344_v61 = vmax.f32 %v1186_v56, 0.0  ;;  %v973_v62 = vadd.f32 %v1762_v57, %v2072_v59  ;;  %v1197_v63 = vadd.f32 %v1818_v58, %v2072_v59 }
 0x12e   : > { %v964_v0 = vpop.f32.mrf.mxu0  ;;  %v1188_v1 = vpop.f32.mrf.mxu1 }
 0x12f   : > { %1401 = vst.msk [vmem:[%s2080_s30 + $0x140] sm:$0xff] %vm1360_vm1, %v1288_v60  ;;  %1457 = vst.msk [vmem:[%s2080_s30 + $0x300] sm:$0xff] %vm1360_vm1, %v1344_v61  ;;  %v1291_v2 = vmax.f32 %v973_v62, 0.0  ;;  %v1347_v3 = vmax.f32 %v1197_v63, 0.0  ;;  %v965_v4 = vadd.f32 %v2072_v59, %v964_v0  ;;  %v1189_v5 = vadd.f32 %v2072_v59, %v1188_v1 }
 0x130   : > { %v1765_v6 = vpop.f32.mrf.mxu0  ;;  %v1821_v7 = vpop.f32.mrf.mxu1 }
 0x131   : > { %1404 = vst.msk [vmem:[%s2080_s30 + $0x158] sm:$0xff] %vm1360_vm1, %v1291_v2  ;;  %1460 = vst.msk [vmem:[%s2080_s30 + $0x318] sm:$0xff] %vm1360_vm1, %v1347_v3  ;;  %v1289_v8 = vmax.f32 %v965_v4, 0.0  ;;  %v1345_v9 = vmax.f32 %v1189_v5, 0.0  ;;  %v986_v10 = vadd.f32 %v1765_v6, %v2072_v59  ;;  %v1210_v11 = vadd.f32 %v1821_v7, %v2072_v59 }
 0x132   : > { %v977_v12 = vpop.f32.mrf.mxu0  ;;  %v1201_v13 = vpop.f32.mrf.mxu1 }
 0x133   : > { %1402 = vst.msk [vmem:[%s2080_s30 + $0x148] sm:$0xff] %vm1360_vm1, %v1289_v8  ;;  %1458 = vst.msk [vmem:[%s2080_s30 + $0x308] sm:$0xff] %vm1360_vm1, %v1345_v9  ;;  %v1294_v14 = vmax.f32 %v986_v10, 0.0  ;;  %v1350_v15 = vmax.f32 %v1210_v11, 0.0  ;;  %v978_v16 = vadd.f32 %v2072_v59, %v977_v12  ;;  %v1202_v17 = vadd.f32 %v2072_v59, %v1201_v13 }
 0x134   : > { %v1766_v18 = vpop.f32.mrf.mxu0  ;;  %v1822_v19 = vpop.f32.mrf.mxu1 }
 0x135   : > { %1407 = vst.msk [vmem:[%s2080_s30 + $0x170] sm:$0xff] %vm1360_vm1, %v1294_v14  ;;  %1463 = vst.msk [vmem:[%s2080_s30 + $0x330] sm:$0xff] %vm1360_vm1, %v1350_v15  ;;  %v1292_v20 = vmax.f32 %v978_v16, 0.0  ;;  %v1348_v21 = vmax.f32 %v1202_v17, 0.0  ;;  %v989_v22 = vadd.f32 %v1766_v18, %v2072_v59  ;;  %v1213_v23 = vadd.f32 %v1822_v19, %v2072_v59 }
 0x136   : > { %v980_v24 = vpop.f32.mrf.mxu0  ;;  %v1204_v25 = vpop.f32.mrf.mxu1 }
 0x137   : > { %1405 = vst.msk [vmem:[%s2080_s30 + $0x160] sm:$0xff] %vm1360_vm1, %v1292_v20  ;;  %1461 = vst.msk [vmem:[%s2080_s30 + $0x320] sm:$0xff] %vm1360_vm1, %v1348_v21  ;;  %v1295_v26 = vmax.f32 %v989_v22, 0.0  ;;  %v1351_v27 = vmax.f32 %v1213_v23, 0.0  ;;  %v981_v28 = vadd.f32 %v2072_v59, %v980_v24  ;;  %v1205_v29 = vadd.f32 %v2072_v59, %v1204_v25 }
 0x138   : > { %v1769_v30 = vpop.f32.mrf.mxu0  ;;  %v1825_v31 = vpop.f32.mrf.mxu1 }
 0x139   : > { %1408 = vst.msk [vmem:[%s2080_s30 + $0x178] sm:$0xff] %vm1360_vm1, %v1295_v26  ;;  %1464 = vst.msk [vmem:[%s2080_s30 + $0x338] sm:$0xff] %vm1360_vm1, %v1351_v27  ;;  %v1293_v32 = vmax.f32 %v981_v28, 0.0  ;;  %v1349_v33 = vmax.f32 %v1205_v29, 0.0  ;;  %v1002_v34 = vadd.f32 %v1769_v30, %v2072_v59  ;;  %v1226_v35 = vadd.f32 %v1825_v31, %v2072_v59 }
 0x13a   : > { %v993_v36 = vpop.f32.mrf.mxu0  ;;  %v1217_v37 = vpop.f32.mrf.mxu1 }
 0x13b   : > { %1406 = vst.msk [vmem:[%s2080_s30 + $0x168] sm:$0xff] %vm1360_vm1, %v1293_v32  ;;  %1462 = vst.msk [vmem:[%s2080_s30 + $0x328] sm:$0xff] %vm1360_vm1, %v1349_v33  ;;  %v1298_v38 = vmax.f32 %v1002_v34, 0.0  ;;  %v1354_v39 = vmax.f32 %v1226_v35, 0.0  ;;  %v994_v40 = vadd.f32 %v2072_v59, %v993_v36  ;;  %v1218_v41 = vadd.f32 %v2072_v59, %v1217_v37 }
 0x13c   : > { %v1770_v42 = vpop.f32.mrf.mxu0  ;;  %v1826_v43 = vpop.f32.mrf.mxu1 }
 0x13d   : > { %1411 = vst.msk [vmem:[%s2080_s30 + $0x190] sm:$0xff] %vm1360_vm1, %v1298_v38  ;;  %1467 = vst.msk [vmem:[%s2080_s30 + $0x350] sm:$0xff] %vm1360_vm1, %v1354_v39  ;;  %v1296_v44 = vmax.f32 %v994_v40, 0.0  ;;  %v1352_v45 = vmax.f32 %v1218_v41, 0.0  ;;  %v1005_v46 = vadd.f32 %v1770_v42, %v2072_v59  ;;  %v1229_v47 = vadd.f32 %v1826_v43, %v2072_v59 }
 0x13e   : > { %v996_v48 = vpop.f32.mrf.mxu0  ;;  %v1220_v49 = vpop.f32.mrf.mxu1 }
 0x13f   : > { %1409 = vst.msk [vmem:[%s2080_s30 + $0x180] sm:$0xff] %vm1360_vm1, %v1296_v44  ;;  %1465 = vst.msk [vmem:[%s2080_s30 + $0x340] sm:$0xff] %vm1360_vm1, %v1352_v45  ;;  %v1299_v50 = vmax.f32 %v1005_v46, 0.0  ;;  %v1355_v51 = vmax.f32 %v1229_v47, 0.0  ;;  %v997_v52 = vadd.f32 %v2072_v59, %v996_v48  ;;  %v1221_v53 = vadd.f32 %v2072_v59, %v1220_v49 }
 0x140   : > { %v1773_v54 = vpop.f32.mrf.mxu0  ;;  %v1829_v55 = vpop.f32.mrf.mxu1 }
 0x141   : > { %1412 = vst.msk [vmem:[%s2080_s30 + $0x198] sm:$0xff] %vm1360_vm1, %v1299_v50  ;;  %1468 = vst.msk [vmem:[%s2080_s30 + $0x358] sm:$0xff] %vm1360_vm1, %v1355_v51  ;;  %v1297_v56 = vmax.f32 %v997_v52, 0.0  ;;  %v1353_v57 = vmax.f32 %v1221_v53, 0.0  ;;  %v1018_v58 = vadd.f32 %v1773_v54, %v2072_v59  ;;  %v1242_v60 = vadd.f32 %v1829_v55, %v2072_v59 }
 0x142   : > { %v1009_v61 = vpop.f32.mrf.mxu0  ;;  %v1233_v62 = vpop.f32.mrf.mxu1 }
 0x143   : > { %1410 = vst.msk [vmem:[%s2080_s30 + $0x188] sm:$0xff] %vm1360_vm1, %v1297_v56  ;;  %1466 = vst.msk [vmem:[%s2080_s30 + $0x348] sm:$0xff] %vm1360_vm1, %v1353_v57  ;;  %v1302_v63 = vmax.f32 %v1018_v58, 0.0  ;;  %v1358_v0 = vmax.f32 %v1242_v60, 0.0  ;;  %v1010_v1 = vadd.f32 %v2072_v59, %v1009_v61  ;;  %v1234_v2 = vadd.f32 %v2072_v59, %v1233_v62 }
 0x144   : > { %v1774_v3 = vpop.f32.mrf.mxu0  ;;  %v1830_v4 = vpop.f32.mrf.mxu1 }
 0x145   : > { %1415 = vst.msk [vmem:[%s2080_s30 + $0x1b0] sm:$0xff] %vm1360_vm1, %v1302_v63  ;;  %1471 = vst.msk [vmem:[%s2080_s30 + $0x370] sm:$0xff] %vm1360_vm1, %v1358_v0  ;;  %v1300_v5 = vmax.f32 %v1010_v1, 0.0  ;;  %v1356_v6 = vmax.f32 %v1234_v2, 0.0  ;;  %v1021_v7 = vadd.f32 %v1774_v3, %v2072_v59  ;;  %v1245_v8 = vadd.f32 %v1830_v4, %v2072_v59 }
 0x146   : > { %v1012_v9 = vpop.f32.mrf.mxu0  ;;  %v1236_v10 = vpop.f32.mrf.mxu1 }
 0x147   : > { %1413 = vst.msk [vmem:[%s2080_s30 + $0x1a0] sm:$0xff] %vm1360_vm1, %v1300_v5  ;;  %1469 = vst.msk [vmem:[%s2080_s30 + $0x360] sm:$0xff] %vm1360_vm1, %v1356_v6  ;;  %v1303_v11 = vmax.f32 %v1021_v7, 0.0  ;;  %v1359_v12 = vmax.f32 %v1245_v8, 0.0  ;;  %v1013_v13 = vadd.f32 %v2072_v59, %v1012_v9  ;;  %v1237_v14 = vadd.f32 %v2072_v59, %v1236_v10 }
 0x149   : > { %1416 = vst.msk [vmem:[%s2080_s30 + $0x1b8] sm:$0xff] %vm1360_vm1, %v1303_v11  ;;  %1472 = vst.msk [vmem:[%s2080_s30 + $0x378] sm:$0xff] %vm1360_vm1, %v1359_v12  ;;  %v1301_v15 = vmax.f32 %v1013_v13, 0.0  ;;  %v1357_v16 = vmax.f32 %v1237_v14, 0.0 }
 0x14b   : > { %1414 = vst.msk [vmem:[%s2080_s30 + $0x1a8] sm:$0xff] %vm1360_vm1, %v1301_v15  ;;  %1470 = vst.msk [vmem:[%s2080_s30 + $0x368] sm:$0xff] %vm1360_vm1, %v1357_v16 }
 0x14c PF: > { %s13_s12 = sadd.s32 1, %s1910_s12  }
 0x14d   : > { %p10_p4 = scmp.ge.s32.totalorder %s13_s12, 7  }
 0x14f   :  { %12 = sbr.rel (!%p10_p4) target bundleno = 1 (0x1), region = 62 }

// kernel: cnn_forward.6
= control target key start
LH: loop header
LB: loop body
LE: loop exit
PB: predicated region body
PF: predicated region fallthrough
CT: control target
= control target key end

     0   :  { %s1348_s12 = smov 0   ;;  %s1665_s0 = inlined_call_operand.vmem [shape: bf16[1088,72], index: 0, kind: input, shape index: {}]   ;;  %s1666_s1 = inlined_call_operand.vmem [shape: bf16[72,16], index: 1, kind: input, shape index: {}]   ;;  %s1667_s2 = inlined_call_operand.vmem [shape: f32[1,16], index: 2, kind: input, shape index: {}]   ;;  %s1668_s3 = inlined_call_operand.vmem [shape: f32[1088,16], index: 3, kind: output, shape index: {}]  }
   0x1 LB: > { %s1061_s13 = sadd.s32 4294967295, %s1326_s12   ;;  %p1065_p0 = scmp.ge.s32.totalorder %s1326_s12, 1  ;;  %s1326_s12 = sphi %s1348_s12, %s13_s12  }
   0x2   : > { %p138_p1 = scmp.lt.s32.totalorder %s1326_s12, 3 }
   0x4   : > { %p139_p2 = pnand %p1065_p0, %p138_p1 }
   0x5   : > { %s162_s18 = smul.u32 (!%p139_p2), 68, %s1061_s13 }
   0x6   : > { %142 = sbr.rel (%p139_p2) target bundleno = 300 (0x12c), region = 32 }
   0x7   : > { %p163_p3 = scmp.lt.s32.totalorder (!%p139_p2), %s162_s18, 135 }
   0xb   : > { %v1281_v0 = vld [vmem:[%s1666_s1 + $0x20] ss:$0 sps:$4 sm:$0xff]   ;;  %vm559_vm0 = vcmask 1043456   ;;  %v1282_v1 = vld [vmem:[%s1666_s1 + $0x18] sm:$0xff]   ;;  %v1283_v3 = vld [vmem:[%s1666_s1 + $0x10] sm:$0xff]   ;;  %s1670_s18 = smov (!%p163_p3, %s162_s18), 135 }
   0xc   : > { %1271 = vmatprep.subr.msk.bf16.mxu0 %vm559_vm0, %v1281_v0  ;;  %v561_v2 = vsel %vm559_vm0, %v1281_v0, 0  ;;  %1272 = vmatprep.subr.msk.bf16.mxu1 %vm559_vm0, %v1281_v0  ;;  %v1284_v4 = vld [vmem:[%s1666_s1 + $0x8] sm:$0xff]   ;;  %s1066_s23 = sshll.u32 %s1670_s18, 2  ;;  %vm456_vm1 = vcmask 588800   ;;  %v1285_v6 = vld [vmem:[%s1666_s1] sm:$0xff]   ;;  %s1067_s4 = sshll.u32 %s1670_s18, 3 }
   0xd   : > { %1184 = vmatpush3.bf16.msra.mxu0 %v561_v2  ;;  %1266 = vmatpush3.bf16.msra.mxu1 %v561_v2  ;;  %s1374_s26 = scalar_lea.vmem %s1665_s0, %s1066_s23  ;;  %v1450_v40 = vld [vmem:[%s1667_s2] ss:$0 sm:$0xff]  ;;  %s1458_s7 = scalar_lea.vmem %s1668_s3, %s1067_s4  ;;  %vm936_vm2 = vcmask 130048  }
   0xe   : > { %1185 = vmatprep.subr.bf16.mxu0 %v1282_v1  ;;  %1262 = vmatprep.subr.bf16.mxu1 %v1282_v1  ;;  %v1286_v5 = vld [vmem:[%s1374_s26] sm:$0xff]   ;;  %v1288_v7 = vld [vmem:[%s1374_s26 + $0x90] sm:$0xff]   ;;  %v1287_v8 = vld [vmem:[%s1374_s26 + $0x8] sm:$0xff]  }
   0xf   : > { %1193 = vmatprep.mubr.msk.bf16.mxu0 %vm456_vm1, %v1286_v5  ;;  %1229 = vmatprep.mubr.msk.bf16.mxu1 %vm456_vm1, %v1288_v7  ;;  %v1289_v9 = vld [vmem:[%s1374_s26 + $0x98] sm:$0xff]   ;;  %v1290_v10 = vld [vmem:[%s1374_s26 + $0x10] sm:$0xff]   ;;  %v1292_v11 = vld [vmem:[%s1374_s26 + $0xa0] sm:$0xff]  }
  0x10   : > { %v1291_v12 = vld [vmem:[%s1374_s26 + $0x18] sm:$0xff]   ;;  %v1293_v13 = vld [vmem:[%s1374_s26 + $0xa8] sm:$0xff]   ;;  %v1294_v14 = vld [vmem:[%s1374_s26 + $0x20] sm:$0xff]  }
  0x11   : > { %1186 = vmatpush3.bf16.msra.mxu0 %v1282_v1  ;;  %1267 = vmatpush3.bf16.msra.mxu1 %v1282_v1  ;;  %v1296_v15 = vld [vmem:[%s1374_s26 + $0xb0] sm:$0xff]   ;;  %v1295_v16 = vld [vmem:[%s1374_s26 + $0x28] sm:$0xff]   ;;  %v1297_v17 = vld [vmem:[%s1374_s26 + $0xb8] sm:$0xff]  }
  0x12   : > { %1187 = vmatprep.subr.bf16.mxu0 %v1283_v3  ;;  %1263 = vmatprep.subr.bf16.mxu1 %v1283_v3  ;;  %v1298_v18 = vld [vmem:[%s1374_s26 + $0x30] sm:$0xff]   ;;  %v1300_v19 = vld [vmem:[%s1374_s26 + $0xc0] sm:$0xff]   ;;  %v1299_v20 = vld [vmem:[%s1374_s26 + $0x38] sm:$0xff]  }
  0x13   : > { %v1301_v21 = vld [vmem:[%s1374_s26 + $0xc8] sm:$0xff]   ;;  %v1302_v22 = vld [vmem:[%s1374_s26 + $0x40] sm:$0xff]   ;;  %v1304_v23 = vld [vmem:[%s1374_s26 + $0xd0] sm:$0xff]  }
  0x14   : > { %v1303_v24 = vld [vmem:[%s1374_s26 + $0x48] sm:$0xff]   ;;  %v1305_v25 = vld [vmem:[%s1374_s26 + $0xd8] sm:$0xff]   ;;  %v1306_v26 = vld [vmem:[%s1374_s26 + $0x50] sm:$0xff]  }
  0x15   : > { %1188 = vmatpush3.bf16.msra.mxu0 %v1283_v3  ;;  %1268 = vmatpush3.bf16.msra.mxu1 %v1283_v3  ;;  %v1308_v27 = vld [vmem:[%s1374_s26 + $0xe0] sm:$0xff]   ;;  %v1307_v28 = vld [vmem:[%s1374_s26 + $0x58] sm:$0xff]   ;;  %v1309_v29 = vld [vmem:[%s1374_s26 + $0xe8] sm:$0xff]  }
  0x16   : > { %1189 = vmatprep.subr.bf16.mxu0 %v1284_v4  ;;  %1264 = vmatprep.subr.bf16.mxu1 %v1284_v4  ;;  %v1310_v30 = vld [vmem:[%s1374_s26 + $0x60] sm:$0xff]   ;;  %v1312_v31 = vld [vmem:[%s1374_s26 + $0xf0] sm:$0xff]   ;;  %v1311_v32 = vld [vmem:[%s1374_s26 + $0x68] sm:$0xff]  }
  0x17   : > { %v1313_v33 = vld [vmem:[%s1374_s26 + $0xf8] sm:$0xff]   ;;  %v1314_v34 = vld [vmem:[%s1374_s26 + $0x70] sm:$0xff]   ;;  %v1316_v35 = vld [vmem:[%s1374_s26 + $0x100] sm:$0xff]  }
  0x18   : > { %v1315_v36 = vld [vmem:[%s1374_s26 + $0x78] sm:$0xff]   ;;  %v1317_v37 = vld [vmem:[%s1374_s26 + $0x108] sm:$0xff]   ;;  %v1318_v38 = vld [vmem:[%s1374_s26 + $0x80] sm:$0xff]  }
  0x19   : > { %1190 = vmatpush3.bf16.msra.mxu0 %v1284_v4  ;;  %1269 = vmatpush3.bf16.msra.mxu1 %v1284_v4  ;;  %v1319_v39 = vld [vmem:[%s1374_s26 + $0x88] sm:$0xff]  }
  0x1a   : > { %1191 = vmatprep.subr.bf16.mxu0 %v1285_v6  ;;  %1265 = vmatprep.subr.bf16.mxu1 %v1285_v6 }
  0x1d   : > { %1192 = vmatpush3.bf16.msra.mxu0 %v1285_v6  ;;  %1270 = vmatpush3.bf16.msra.mxu1 %v1285_v6 }
  0x20   : > { %1194 = vmatmul.mubr.msk.bf16.vlgmr.msra.gmra.mxu0 %vm456_vm1, %v1287_v8  ;;  %1230 = vmatmul.mubr.msk.bf16.vlgmr.msra.gmra.mxu1 %vm456_vm1, %v1289_v9 }
  0x21   : > { %1197 = vmatprep.mubr.msk.bf16.mxu0 %vm456_vm1, %v1290_v10  ;;  %1233 = vmatprep.mubr.msk.bf16.mxu1 %vm456_vm1, %v1292_v11 }
  0x28   : > { %1198 = vmatmul.mubr.msk.bf16.gmra.mxu0 %vm456_vm1, %v1291_v12  ;;  %1234 = vmatmul.mubr.msk.bf16.gmra.mxu1 %vm456_vm1, %v1293_v13 }
  0x29   : > { %1201 = vmatprep.mubr.msk.bf16.mxu0 %vm456_vm1, %v1294_v14  ;;  %1237 = vmatprep.mubr.msk.bf16.mxu1 %vm456_vm1, %v1296_v15 }
  0x30   : > { %1202 = vmatmul.mubr.msk.bf16.gmra.mxu0 %vm456_vm1, %v1295_v16  ;;  %1238 = vmatmul.mubr.msk.bf16.gmra.mxu1 %vm456_vm1, %v1297_v17 }
  0x31   : > { %1205 = vmatprep.mubr.msk.bf16.mxu0 %vm456_vm1, %v1298_v18  ;;  %1241 = vmatprep.mubr.msk.bf16.mxu1 %vm456_vm1, %v1300_v19 }
  0x38   : > { %1206 = vmatmul.mubr.msk.bf16.gmra.mxu0 %vm456_vm1, %v1299_v20  ;;  %1242 = vmatmul.mubr.msk.bf16.gmra.mxu1 %vm456_vm1, %v1301_v21 }
  0x39   : > { %1209 = vmatprep.mubr.msk.bf16.mxu0 %vm456_vm1, %v1302_v22  ;;  %1245 = vmatprep.mubr.msk.bf16.mxu1 %vm456_vm1, %v1304_v23 }
  0x40   : > { %1210 = vmatmul.mubr.msk.bf16.gmra.mxu0 %vm456_vm1, %v1303_v24  ;;  %1246 = vmatmul.mubr.msk.bf16.gmra.mxu1 %vm456_vm1, %v1305_v25 }
  0x41   : > { %1213 = vmatprep.mubr.msk.bf16.mxu0 %vm456_vm1, %v1306_v26  ;;  %1249 = vmatprep.mubr.msk.bf16.mxu1 %vm456_vm1, %v1308_v27 }
  0x48   : > { %1214 = vmatmul.mubr.msk.bf16.gmra.mxu0 %vm456_vm1, %v1307_v28  ;;  %1250 = vmatmul.mubr.msk.bf16.gmra.mxu1 %vm456_vm1, %v1309_v29 }
  0x49   : > { %1217 = vmatprep.mubr.msk.bf16.mxu0 %vm456_vm1, %v1310_v30  ;;  %1253 = vmatprep.mubr.msk.bf16.mxu1 %vm456_vm1, %v1312_v31 }
  0x50   : > { %1218 = vmatmul.mubr.msk.bf16.gmra.mxu0 %vm456_vm1, %v1311_v32  ;;  %1254 = vmatmul.mubr.msk.bf16.gmra.mxu1 %vm456_vm1, %v1313_v33 }
  0x51   : > { %1221 = vmatprep.mubr.msk.bf16.mxu0 %vm456_vm1, %v1314_v34  ;;  %1257 = vmatprep.mubr.msk.bf16.mxu1 %vm456_vm1, %v1316_v35 }
  0x58   : > { %1222 = vmatmul.mubr.msk.bf16.gmra.mxu0 %vm456_vm1, %v1315_v36  ;;  %1258 = vmatmul.mubr.msk.bf16.gmra.mxu1 %vm456_vm1, %v1317_v37 }
  0x59   : > { %1225 = vmatprep.mubr.msk.bf16.mxu0 %vm456_vm1, %v1318_v38 }
  0x60   : > { %1226 = vmatmul.mubr.msk.bf16.gmra.mxu0 %vm456_vm1, %v1319_v39 }
  0xe0   : > { %v1195_v41 = vpop.f32.mrf.mxu0  ;;  %v1231_v42 = vpop.f32.mrf.mxu1 }
  0xe1   : > { %v606_v43 = vadd.f32 %v1195_v41, %v1450_v40  ;;  %v750_v44 = vadd.f32 %v1231_v42, %v1450_v40 }
  0xe2   : > { %v597_v45 = vpop.f32.mrf.mxu0  ;;  %v741_v46 = vpop.f32.mrf.mxu1 }
  0xe3   : > { %v870_v47 = vmax.f32 %v606_v43, 0.0  ;;  %v598_v48 = vadd.f32 %v1450_v40, %v597_v45  ;;  %v906_v49 = vmax.f32 %v750_v44, 0.0  ;;  %v742_v50 = vadd.f32 %v1450_v40, %v741_v46 }
  0xe4   : > { %v1196_v51 = vpop.f32.mrf.mxu0  ;;  %v1232_v52 = vpop.f32.mrf.mxu1 }
  0xe5   : > { %939 = vst.msk [vmem:[%s1458_s7 + $0x10] sm:$0xff] %vm936_vm2, %v870_v47  ;;  %v868_v53 = vmax.f32 %v598_v48, 0.0  ;;  %975 = vst.msk [vmem:[%s1458_s7 + $0x130] sm:$0xff] %vm936_vm2, %v906_v49  ;;  %v609_v54 = vadd.f32 %v1196_v51, %v1450_v40  ;;  %v904_v55 = vmax.f32 %v742_v50, 0.0  ;;  %v753_v56 = vadd.f32 %v1232_v52, %v1450_v40 }
  0xe6   : > { %v600_v57 = vpop.f32.mrf.mxu0  ;;  %v744_v58 = vpop.f32.mrf.mxu1 }
  0xe7   : > { %937 = vst.msk [vmem:[%s1458_s7] sm:$0xff] %vm936_vm2, %v868_v53  ;;  %v871_v59 = vmax.f32 %v609_v54, 0.0  ;;  %973 = vst.msk [vmem:[%s1458_s7 + $0x120] sm:$0xff] %vm936_vm2, %v904_v55  ;;  %v601_v60 = vadd.f32 %v1450_v40, %v600_v57  ;;  %v907_v61 = vmax.f32 %v753_v56, 0.0  ;;  %v745_v62 = vadd.f32 %v1450_v40, %v744_v58 }
  0xe8   : > { %v1199_v63 = vpop.f32.mrf.mxu0  ;;  %v1235_v0 = vpop.f32.mrf.mxu1 }
  0xe9   : > { %940 = vst.msk [vmem:[%s1458_s7 + $0x18] sm:$0xff] %vm936_vm2, %v871_v59  ;;  %v869_v1 = vmax.f32 %v601_v60, 0.0  ;;  %976 = vst.msk [vmem:[%s1458_s7 + $0x138] sm:$0xff] %vm936_vm2, %v907_v61  ;;  %v622_v2 = vadd.f32 %v1199_v63, %v1450_v40  ;;  %v905_v3 = vmax.f32 %v745_v62, 0.0  ;;  %v766_v4 = vadd.f32 %v1235_v0, %v1450_v40 }
  0xea   : > { %v613_v5 = vpop.f32.mrf.mxu0  ;;  %v757_v6 = vpop.f32.mrf.mxu1 }
  0xeb   : > { %938 = vst.msk [vmem:[%s1458_s7 + $0x8] sm:$0xff] %vm936_vm2, %v869_v1  ;;  %v874_v7 = vmax.f32 %v622_v2, 0.0  ;;  %974 = vst.msk [vmem:[%s1458_s7 + $0x128] sm:$0xff] %vm936_vm2, %v905_v3  ;;  %v614_v8 = vadd.f32 %v1450_v40, %v613_v5  ;;  %v910_v9 = vmax.f32 %v766_v4, 0.0  ;;  %v758_v10 = vadd.f32 %v1450_v40, %v757_v6 }
  0xec   : > { %v1200_v11 = vpop.f32.mrf.mxu0  ;;  %v1236_v12 = vpop.f32.mrf.mxu1 }
  0xed   : > { %943 = vst.msk [vmem:[%s1458_s7 + $0x30] sm:$0xff] %vm936_vm2, %v874_v7  ;;  %v872_v13 = vmax.f32 %v614_v8, 0.0  ;;  %979 = vst.msk [vmem:[%s1458_s7 + $0x150] sm:$0xff] %vm936_vm2, %v910_v9  ;;  %v625_v14 = vadd.f32 %v1200_v11, %v1450_v40  ;;  %v908_v15 = vmax.f32 %v758_v10, 0.0  ;;  %v769_v16 = vadd.f32 %v1236_v12, %v1450_v40 }
  0xee   : > { %v616_v17 = vpop.f32.mrf.mxu0  ;;  %v760_v18 = vpop.f32.mrf.mxu1 }
  0xef   : > { %941 = vst.msk [vmem:[%s1458_s7 + $0x20] sm:$0xff] %vm936_vm2, %v872_v13  ;;  %v875_v19 = vmax.f32 %v625_v14, 0.0  ;;  %977 = vst.msk [vmem:[%s1458_s7 + $0x140] sm:$0xff] %vm936_vm2, %v908_v15  ;;  %v617_v20 = vadd.f32 %v1450_v40, %v616_v17  ;;  %v911_v21 = vmax.f32 %v769_v16, 0.0  ;;  %v761_v22 = vadd.f32 %v1450_v40, %v760_v18 }
  0xf0   : > { %v1203_v23 = vpop.f32.mrf.mxu0  ;;  %v1239_v24 = vpop.f32.mrf.mxu1 }
  0xf1   : > { %944 = vst.msk [vmem:[%s1458_s7 + $0x38] sm:$0xff] %vm936_vm2, %v875_v19  ;;  %v873_v25 = vmax.f32 %v617_v20, 0.0  ;;  %980 = vst.msk [vmem:[%s1458_s7 + $0x158] sm:$0xff] %vm936_vm2, %v911_v21  ;;  %v638_v26 = vadd.f32 %v1203_v23, %v1450_v40  ;;  %v909_v27 = vmax.f32 %v761_v22, 0.0  ;;  %v782_v28 = vadd.f32 %v1239_v24, %v1450_v40 }
  0xf2   : > { %v629_v29 = vpop.f32.mrf.mxu0  ;;  %v773_v30 = vpop.f32.mrf.mxu1 }
  0xf3   : > { %942 = vst.msk [vmem:[%s1458_s7 + $0x28] sm:$0xff] %vm936_vm2, %v873_v25  ;;  %v878_v31 = vmax.f32 %v638_v26, 0.0  ;;  %978 = vst.msk [vmem:[%s1458_s7 + $0x148] sm:$0xff] %vm936_vm2, %v909_v27  ;;  %v630_v32 = vadd.f32 %v1450_v40, %v629_v29  ;;  %v914_v33 = vmax.f32 %v782_v28, 0.0  ;;  %v774_v34 = vadd.f32 %v1450_v40, %v773_v30 }
  0xf4   : > { %v1204_v35 = vpop.f32.mrf.mxu0  ;;  %v1240_v36 = vpop.f32.mrf.mxu1 }
  0xf5   : > { %947 = vst.msk [vmem:[%s1458_s7 + $0x50] sm:$0xff] %vm936_vm2, %v878_v31  ;;  %v876_v37 = vmax.f32 %v630_v32, 0.0  ;;  %983 = vst.msk [vmem:[%s1458_s7 + $0x170] sm:$0xff] %vm936_vm2, %v914_v33  ;;  %v641_v38 = vadd.f32 %v1204_v35, %v1450_v40  ;;  %v912_v39 = vmax.f32 %v774_v34, 0.0  ;;  %v785_v41 = vadd.f32 %v1240_v36, %v1450_v40 }
  0xf6   : > { %v632_v42 = vpop.f32.mrf.mxu0  ;;  %v776_v43 = vpop.f32.mrf.mxu1 }
  0xf7   : > { %945 = vst.msk [vmem:[%s1458_s7 + $0x40] sm:$0xff] %vm936_vm2, %v876_v37  ;;  %v879_v44 = vmax.f32 %v641_v38, 0.0  ;;  %981 = vst.msk [vmem:[%s1458_s7 + $0x160] sm:$0xff] %vm936_vm2, %v912_v39  ;;  %v633_v45 = vadd.f32 %v1450_v40, %v632_v42  ;;  %v915_v46 = vmax.f32 %v785_v41, 0.0  ;;  %v777_v47 = vadd.f32 %v1450_v40, %v776_v43 }
  0xf8   : > { %v1207_v48 = vpop.f32.mrf.mxu0  ;;  %v1243_v49 = vpop.f32.mrf.mxu1 }
  0xf9   : > { %948 = vst.msk [vmem:[%s1458_s7 + $0x58] sm:$0xff] %vm936_vm2, %v879_v44  ;;  %v877_v50 = vmax.f32 %v633_v45, 0.0  ;;  %984 = vst.msk [vmem:[%s1458_s7 + $0x178] sm:$0xff] %vm936_vm2, %v915_v46  ;;  %v654_v51 = vadd.f32 %v1207_v48, %v1450_v40  ;;  %v913_v52 = vmax.f32 %v777_v47, 0.0  ;;  %v798_v53 = vadd.f32 %v1243_v49, %v1450_v40 }
  0xfa   : > { %v645_v54 = vpop.f32.mrf.mxu0  ;;  %v789_v55 = vpop.f32.mrf.mxu1 }
  0xfb   : > { %946 = vst.msk [vmem:[%s1458_s7 + $0x48] sm:$0xff] %vm936_vm2, %v877_v50  ;;  %v882_v56 = vmax.f32 %v654_v51, 0.0  ;;  %982 = vst.msk [vmem:[%s1458_s7 + $0x168] sm:$0xff] %vm936_vm2, %v913_v52  ;;  %v646_v57 = vadd.f32 %v1450_v40, %v645_v54  ;;  %v918_v58 = vmax.f32 %v798_v53, 0.0  ;;  %v790_v59 = vadd.f32 %v1450_v40, %v789_v55 }
  0xfc   : > { %v1208_v60 = vpop.f32.mrf.mxu0  ;;  %v1244_v61 = vpop.f32.mrf.mxu1 }
  0xfd   : > { %951 = vst.msk [vmem:[%s1458_s7 + $0x70] sm:$0xff] %vm936_vm2, %v882_v56  ;;  %v880_v62 = vmax.f32 %v646_v57, 0.0  ;;  %987 = vst.msk [vmem:[%s1458_s7 + $0x190] sm:$0xff] %vm936_vm2, %v918_v58  ;;  %v657_v63 = vadd.f32 %v1208_v60, %v1450_v40  ;;  %v916_v0 = vmax.f32 %v790_v59, 0.0  ;;  %v801_v1 = vadd.f32 %v1244_v61, %v1450_v40 }
  0xfe   : > { %v648_v2 = vpop.f32.mrf.mxu0  ;;  %v792_v3 = vpop.f32.mrf.mxu1 }
  0xff   : > { %949 = vst.msk [vmem:[%s1458_s7 + $0x60] sm:$0xff] %vm936_vm2, %v880_v62  ;;  %v883_v4 = vmax.f32 %v657_v63, 0.0  ;;  %985 = vst.msk [vmem:[%s1458_s7 + $0x180] sm:$0xff] %vm936_vm2, %v916_v0  ;;  %v649_v5 = vadd.f32 %v1450_v40, %v648_v2  ;;  %v919_v6 = vmax.f32 %v801_v1, 0.0  ;;  %v793_v7 = vadd.f32 %v1450_v40, %v792_v3 }
 0x100   : > { %v1211_v8 = vpop.f32.mrf.mxu0  ;;  %v1247_v9 = vpop.f32.mrf.mxu1 }
 0x101   : > { %952 = vst.msk [vmem:[%s1458_s7 + $0x78] sm:$0xff] %vm936_vm2, %v883_v4  ;;  %v881_v10 = vmax.f32 %v649_v5, 0.0  ;;  %988 = vst.msk [vmem:[%s1458_s7 + $0x198] sm:$0xff] %vm936_vm2, %v919_v6  ;;  %v670_v11 = vadd.f32 %v1211_v8, %v1450_v40  ;;  %v917_v12 = vmax.f32 %v793_v7, 0.0  ;;  %v814_v13 = vadd.f32 %v1247_v9, %v1450_v40 }
 0x102   : > { %v661_v14 = vpop.f32.mrf.mxu0  ;;  %v805_v15 = vpop.f32.mrf.mxu1 }
 0x103   : > { %950 = vst.msk [vmem:[%s1458_s7 + $0x68] sm:$0xff] %vm936_vm2, %v881_v10  ;;  %v886_v16 = vmax.f32 %v670_v11, 0.0  ;;  %986 = vst.msk [vmem:[%s1458_s7 + $0x188] sm:$0xff] %vm936_vm2, %v917_v12  ;;  %v662_v17 = vadd.f32 %v1450_v40, %v661_v14  ;;  %v922_v18 = vmax.f32 %v814_v13, 0.0  ;;  %v806_v19 = vadd.f32 %v1450_v40, %v805_v15 }
 0x104   : > { %v1212_v20 = vpop.f32.mrf.mxu0  ;;  %v1248_v21 = vpop.f32.mrf.mxu1 }
 0x105   : > { %955 = vst.msk [vmem:[%s1458_s7 + $0x90] sm:$0xff] %vm936_vm2, %v886_v16  ;;  %v884_v22 = vmax.f32 %v662_v17, 0.0  ;;  %991 = vst.msk [vmem:[%s1458_s7 + $0x1b0] sm:$0xff] %vm936_vm2, %v922_v18  ;;  %v673_v23 = vadd.f32 %v1212_v20, %v1450_v40  ;;  %v920_v24 = vmax.f32 %v806_v19, 0.0  ;;  %v817_v25 = vadd.f32 %v1248_v21, %v1450_v40 }
 0x106   : > { %v664_v26 = vpop.f32.mrf.mxu0  ;;  %v808_v27 = vpop.f32.mrf.mxu1 }
 0x107   : > { %953 = vst.msk [vmem:[%s1458_s7 + $0x80] sm:$0xff] %vm936_vm2, %v884_v22  ;;  %v887_v28 = vmax.f32 %v673_v23, 0.0  ;;  %989 = vst.msk [vmem:[%s1458_s7 + $0x1a0] sm:$0xff] %vm936_vm2, %v920_v24  ;;  %v665_v29 = vadd.f32 %v1450_v40, %v664_v26  ;;  %v923_v30 = vmax.f32 %v817_v25, 0.0  ;;  %v809_v31 = vadd.f32 %v1450_v40, %v808_v27 }
 0x108   : > { %v1215_v32 = vpop.f32.mrf.mxu0  ;;  %v1251_v33 = vpop.f32.mrf.mxu1 }
 0x109   : > { %956 = vst.msk [vmem:[%s1458_s7 + $0x98] sm:$0xff] %vm936_vm2, %v887_v28  ;;  %v885_v34 = vmax.f32 %v665_v29, 0.0  ;;  %992 = vst.msk [vmem:[%s1458_s7 + $0x1b8] sm:$0xff] %vm936_vm2, %v923_v30  ;;  %v686_v35 = vadd.f32 %v1215_v32, %v1450_v40  ;;  %v921_v36 = vmax.f32 %v809_v31, 0.0  ;;  %v830_v37 = vadd.f32 %v1251_v33, %v1450_v40 }
 0x10a   : > { %v677_v38 = vpop.f32.mrf.mxu0  ;;  %v821_v39 = vpop.f32.mrf.mxu1 }
 0x10b   : > { %954 = vst.msk [vmem:[%s1458_s7 + $0x88] sm:$0xff] %vm936_vm2, %v885_v34  ;;  %v890_v41 = vmax.f32 %v686_v35, 0.0  ;;  %990 = vst.msk [vmem:[%s1458_s7 + $0x1a8] sm:$0xff] %vm936_vm2, %v921_v36  ;;  %v678_v42 = vadd.f32 %v1450_v40, %v677_v38  ;;  %v926_v43 = vmax.f32 %v830_v37, 0.0  ;;  %v822_v44 = vadd.f32 %v1450_v40, %v821_v39 }
 0x10c   : > { %v1216_v45 = vpop.f32.mrf.mxu0  ;;  %v1252_v46 = vpop.f32.mrf.mxu1 }
 0x10d   : > { %959 = vst.msk [vmem:[%s1458_s7 + $0xb0] sm:$0xff] %vm936_vm2, %v890_v41  ;;  %v888_v47 = vmax.f32 %v678_v42, 0.0  ;;  %995 = vst.msk [vmem:[%s1458_s7 + $0x1d0] sm:$0xff] %vm936_vm2, %v926_v43  ;;  %v689_v48 = vadd.f32 %v1216_v45, %v1450_v40  ;;  %v924_v49 = vmax.f32 %v822_v44, 0.0  ;;  %v833_v50 = vadd.f32 %v1252_v46, %v1450_v40 }
 0x10e   : > { %v680_v51 = vpop.f32.mrf.mxu0  ;;  %v824_v52 = vpop.f32.mrf.mxu1 }
 0x10f   : > { %957 = vst.msk [vmem:[%s1458_s7 + $0xa0] sm:$0xff] %vm936_vm2, %v888_v47  ;;  %v891_v53 = vmax.f32 %v689_v48, 0.0  ;;  %993 = vst.msk [vmem:[%s1458_s7 + $0x1c0] sm:$0xff] %vm936_vm2, %v924_v49  ;;  %v681_v54 = vadd.f32 %v1450_v40, %v680_v51  ;;  %v927_v55 = vmax.f32 %v833_v50, 0.0  ;;  %v825_v56 = vadd.f32 %v1450_v40, %v824_v52 }
 0x110   : > { %v1219_v57 = vpop.f32.mrf.mxu0  ;;  %v1255_v58 = vpop.f32.mrf.mxu1 }
 0x111   : > { %960 = vst.msk [vmem:[%s1458_s7 + $0xb8] sm:$0xff] %vm936_vm2, %v891_v53  ;;  %v889_v59 = vmax.f32 %v681_v54, 0.0  ;;  %996 = vst.msk [vmem:[%s1458_s7 + $0x1d8] sm:$0xff] %vm936_vm2, %v927_v55  ;;  %v702_v60 = vadd.f32 %v1219_v57, %v1450_v40  ;;  %v925_v61 = vmax.f32 %v825_v56, 0.0  ;;  %v846_v62 = vadd.f32 %v1255_v58, %v1450_v40 }
 0x112   : > { %v693_v63 = vpop.f32.mrf.mxu0  ;;  %v837_v0 = vpop.f32.mrf.mxu1 }
 0x113   : > { %958 = vst.msk [vmem:[%s1458_s7 + $0xa8] sm:$0xff] %vm936_vm2, %v889_v59  ;;  %v894_v1 = vmax.f32 %v702_v60, 0.0  ;;  %994 = vst.msk [vmem:[%s1458_s7 + $0x1c8] sm:$0xff] %vm936_vm2, %v925_v61  ;;  %v694_v2 = vadd.f32 %v1450_v40, %v693_v63  ;;  %v930_v3 = vmax.f32 %v846_v62, 0.0  ;;  %v838_v4 = vadd.f32 %v1450_v40, %v837_v0 }
 0x114   : > { %v1220_v5 = vpop.f32.mrf.mxu0  ;;  %v1256_v6 = vpop.f32.mrf.mxu1 }
 0x115   : > { %963 = vst.msk [vmem:[%s1458_s7 + $0xd0] sm:$0xff] %vm936_vm2, %v894_v1  ;;  %v892_v7 = vmax.f32 %v694_v2, 0.0  ;;  %999 = vst.msk [vmem:[%s1458_s7 + $0x1f0] sm:$0xff] %vm936_vm2, %v930_v3  ;;  %v705_v8 = vadd.f32 %v1220_v5, %v1450_v40  ;;  %v928_v9 = vmax.f32 %v838_v4, 0.0  ;;  %v849_v10 = vadd.f32 %v1256_v6, %v1450_v40 }
 0x116   : > { %v696_v11 = vpop.f32.mrf.mxu0  ;;  %v840_v12 = vpop.f32.mrf.mxu1 }
 0x117   : > { %961 = vst.msk [vmem:[%s1458_s7 + $0xc0] sm:$0xff] %vm936_vm2, %v892_v7  ;;  %v895_v13 = vmax.f32 %v705_v8, 0.0  ;;  %997 = vst.msk [vmem:[%s1458_s7 + $0x1e0] sm:$0xff] %vm936_vm2, %v928_v9  ;;  %v697_v14 = vadd.f32 %v1450_v40, %v696_v11  ;;  %v931_v15 = vmax.f32 %v849_v10, 0.0  ;;  %v841_v16 = vadd.f32 %v1450_v40, %v840_v12 }
 0x118   : > { %v1223_v17 = vpop.f32.mrf.mxu0  ;;  %v1259_v18 = vpop.f32.mrf.mxu1 }
 0x119   : > { %964 = vst.msk [vmem:[%s1458_s7 + $0xd8] sm:$0xff] %vm936_vm2, %v895_v13  ;;  %v893_v19 = vmax.f32 %v697_v14, 0.0  ;;  %1000 = vst.msk [vmem:[%s1458_s7 + $0x1f8] sm:$0xff] %vm936_vm2, %v931_v15  ;;  %v718_v20 = vadd.f32 %v1223_v17, %v1450_v40  ;;  %v929_v21 = vmax.f32 %v841_v16, 0.0  ;;  %v862_v22 = vadd.f32 %v1259_v18, %v1450_v40 }
 0x11a   : > { %v709_v23 = vpop.f32.mrf.mxu0  ;;  %v853_v24 = vpop.f32.mrf.mxu1 }
 0x11b   : > { %962 = vst.msk [vmem:[%s1458_s7 + $0xc8] sm:$0xff] %vm936_vm2, %v893_v19  ;;  %v898_v25 = vmax.f32 %v718_v20, 0.0  ;;  %998 = vst.msk [vmem:[%s1458_s7 + $0x1e8] sm:$0xff] %vm936_vm2, %v929_v21  ;;  %v710_v26 = vadd.f32 %v1450_v40, %v709_v23  ;;  %v934_v27 = vmax.f32 %v862_v22, 0.0  ;;  %v854_v28 = vadd.f32 %v1450_v40, %v853_v24 }
 0x11c   : > { %v1224_v29 = vpop.f32.mrf.mxu0  ;;  %v1260_v30 = vpop.f32.mrf.mxu1 }
 0x11d   : > { %967 = vst.msk [vmem:[%s1458_s7 + $0xf0] sm:$0xff] %vm936_vm2, %v898_v25  ;;  %v896_v31 = vmax.f32 %v710_v26, 0.0  ;;  %1003 = vst.msk [vmem:[%s1458_s7 + $0x210] sm:$0xff] %vm936_vm2, %v934_v27  ;;  %v721_v32 = vadd.f32 %v1224_v29, %v1450_v40  ;;  %v932_v33 = vmax.f32 %v854_v28, 0.0  ;;  %v865_v34 = vadd.f32 %v1260_v30, %v1450_v40 }
 0x11e   : > { %v712_v35 = vpop.f32.mrf.mxu0  ;;  %v856_v36 = vpop.f32.mrf.mxu1 }
 0x11f   : > { %965 = vst.msk [vmem:[%s1458_s7 + $0xe0] sm:$0xff] %vm936_vm2, %v896_v31  ;;  %v899_v37 = vmax.f32 %v721_v32, 0.0  ;;  %1001 = vst.msk [vmem:[%s1458_s7 + $0x200] sm:$0xff] %vm936_vm2, %v932_v33  ;;  %v713_v38 = vadd.f32 %v1450_v40, %v712_v35  ;;  %v935_v39 = vmax.f32 %v865_v34, 0.0  ;;  %v857_v41 = vadd.f32 %v1450_v40, %v856_v36 }
 0x120   : > { %v1227_v42 = vpop.f32.mrf.mxu0 }
 0x121   : > { %968 = vst.msk [vmem:[%s1458_s7 + $0xf8] sm:$0xff] %vm936_vm2, %v899_v37  ;;  %v897_v43 = vmax.f32 %v713_v38, 0.0  ;;  %1004 = vst.msk [vmem:[%s1458_s7 + $0x218] sm:$0xff] %vm936_vm2, %v935_v39  ;;  %v734_v44 = vadd.f32 %v1227_v42, %v1450_v40  ;;  %v933_v45 = vmax.f32 %v857_v41, 0.0 }
 0x122   : > { %v725_v46 = vpop.f32.mrf.mxu0 }
 0x123   : > { %966 = vst.msk [vmem:[%s1458_s7 + $0xe8] sm:$0xff] %vm936_vm2, %v897_v43  ;;  %v902_v47 = vmax.f32 %v734_v44, 0.0  ;;  %1002 = vst.msk [vmem:[%s1458_s7 + $0x208] sm:$0xff] %vm936_vm2, %v933_v45  ;;  %v726_v48 = vadd.f32 %v1450_v40, %v725_v46 }
 0x124   : > { %v1228_v49 = vpop.f32.mrf.mxu0 }
 0x125   : > { %971 = vst.msk [vmem:[%s1458_s7 + $0x110] sm:$0xff] %vm936_vm2, %v902_v47  ;;  %v900_v50 = vmax.f32 %v726_v48, 0.0  ;;  %v737_v51 = vadd.f32 %v1228_v49, %v1450_v40 }
 0x126   : > { %v728_v52 = vpop.f32.mrf.mxu0 }
 0x127   : > { %969 = vst.msk [vmem:[%s1458_s7 + $0x100] sm:$0xff] %vm936_vm2, %v900_v50  ;;  %v903_v53 = vmax.f32 %v737_v51, 0.0  ;;  %v729_v54 = vadd.f32 %v1450_v40, %v728_v52 }
 0x129   : > { %972 = vst.msk [vmem:[%s1458_s7 + $0x118] sm:$0xff] %vm936_vm2, %v903_v53  ;;  %v901_v55 = vmax.f32 %v729_v54, 0.0 }
 0x12b   : > { %970 = vst.msk [vmem:[%s1458_s7 + $0x108] sm:$0xff] %vm936_vm2, %v901_v55 }
 0x12c PF: > { %s13_s12 = sadd.s32 1, %s1326_s12  }
 0x12d   : > { %p10_p4 = scmp.ge.s32.totalorder %s13_s12, 4  }
 0x12f   :  { %12 = sbr.rel (!%p10_p4) target bundleno = 1 (0x1), region = 62 }

// kernel: cnn_forward.7
= control target key start
LH: loop header
LB: loop body
LE: loop exit
PB: predicated region body
PF: predicated region fallthrough
CT: control target
= control target key end

     0   :  { %s692_s12 = smov 0   ;;  %s824_s0 = inlined_call_operand.vmem [shape: bf16[256,144], index: 0, kind: input, shape index: {}]   ;;  %s825_s1 = inlined_call_operand.vmem [shape: bf16[144,32], index: 1, kind: input, shape index: {}]   ;;  %s826_s2 = inlined_call_operand.vmem [shape: f32[1,32], index: 2, kind: input, shape index: {}]   ;;  %s827_s3 = inlined_call_operand.vmem [shape: f32[256,32], index: 3, kind: output, shape index: {}]  }
   0x1 LB: > { %s556_s13 = sadd.s32 4294967295, %s669_s12   ;;  %p560_p0 = scmp.ge.s32.totalorder %s669_s12, 1  ;;  %s669_s12 = sphi %s692_s12, %s13_s12  }
   0x2   : > { %p139_p1 = scmp.lt.s32.totalorder %s669_s12, 3 }
   0x4   : > { %p140_p2 = pnand %p560_p0, %p139_p1 }
   0x5   : > { %s561_s16 = sshll.u32 (!%p140_p2), %s556_s13, 4 }
   0x6   : > { %143 = sbr.rel (%p140_p2) target bundleno = 274 (0x112), region = 32  ;;  %p165_p3 = scmp.lt.s32.totalorder (!%p140_p2), %s561_s16, 31 }
   0xb   : > { %v630_v0 = vld [vmem:[%s825_s1 + $0x38] sm:$0xff]   ;;  %v671_v1 = vmov 0   ;;  %v631_v2 = vld [vmem:[%s825_s1 + $0x30] sm:$0xff]   ;;  %s829_s16 = smov (!%p165_p3, %s561_s16), 31  ;;  %v632_v3 = vld [vmem:[%s825_s1 + $0x28] sm:$0xff]   ;;  %vm345_vm0 = vcmask 130048  }
   0xc   : > { %370 = vmatprep.subr.bf16.mxu0 %v671_v1  ;;  %603 = vmatprep.subr.bf16.mxu1 %v671_v1  ;;  %s602_s21 = sshll.u32 %s829_s16, 3  ;;  %v633_v4 = vld [vmem:[%s825_s1 + $0x20] sm:$0xff]   ;;  %v634_v7 = vld [vmem:[%s825_s1 + $0x18] sm:$0xff]   ;;  %v635_v8 = vld [vmem:[%s825_s1 + $0x10] sm:$0xff]   ;;  %vm483_vm1 = vcmask 261120  }
   0xd   : > { %371 = vmatpush1.bf16.msra.mxu0 %v630_v0  ;;  %612 = vmatpush1.bf16.msra.mxu1 %v630_v0  ;;  %s717_s24 = scalar_lea.vmem %s824_s0, %s602_s21  ;;  %v636_v9 = vld [vmem:[%s825_s1 + $0x8] sm:$0xff]   ;;  %v637_v10 = vld [vmem:[%s825_s1] sm:$0xff]   ;;  %s773_s15 = scalar_lea.vmem %s827_s3, %s602_s21 }
   0xe   : > { %372 = vmatprep.subr.bf16.mxu0 %v671_v1  ;;  %604 = vmatprep.subr.bf16.mxu1 %v671_v1  ;;  %v641_v5 = vld [vmem:[%s717_s24 + $0x4] ss:$8 sps:$4 sm:$0xff]   ;;  %v639_v12 = vld [vmem:[%s717_s24] ss:$8 sps:$4 sm:$0xff]   ;;  %v645_v14 = vld [vmem:[%s717_s24 + $0x14] ss:$8 sps:$4 sm:$0xff]  }
   0xf   : > { %v644_v6 = vld [vmem:[%s717_s24 + $0x44] ss:$8 sps:$4 sm:$0xff]   ;;  %592 = vmatprep.mubr.msk.bf16.mxu0 %vm345_vm0, %v641_v5  ;;  %v642_v13 = vld [vmem:[%s717_s24 + $0x40] ss:$8 sps:$4 sm:$0xff]   ;;  %v647_v15 = vld [vmem:[%s717_s24 + $0x54] ss:$8 sps:$4 sm:$0xff]  }
  0x10   : > { %596 = vmatprep.mubr.msk.bf16.mxu1 %vm345_vm0, %v644_v6  ;;  %v638_v11 = vld [vmem:[%s825_s1 + $0x40] sm:$0xff]   ;;  %v649_v16 = vld [vmem:[%s717_s24 + $0x10] ss:$8 sps:$4 sm:$0xff]   ;;  %v657_v22 = vld [vmem:[%s717_s24 + $0x34] ss:$8 sps:$4 sm:$0xff]  }
  0x11   : > { %373 = vmatpush1.bf16.msra.mxu0 %v631_v2  ;;  %613 = vmatpush1.bf16.msra.mxu1 %v631_v2  ;;  %v650_v17 = vld [vmem:[%s717_s24 + $0x50] ss:$8 sps:$4 sm:$0xff]   ;;  %v651_v18 = vld [vmem:[%s717_s24 + $0x24] ss:$8 sps:$4 sm:$0xff]   ;;  %v655_v20 = vld [vmem:[%s717_s24 + $0x20] ss:$8 sps:$4 sm:$0xff]  }
  0x12   : > { %374 = vmatprep.subr.bf16.mxu0 %v671_v1  ;;  %605 = vmatprep.subr.bf16.mxu1 %v671_v1  ;;  %v653_v19 = vld [vmem:[%s717_s24 + $0x64] ss:$8 sps:$4 sm:$0xff]   ;;  %v656_v21 = vld [vmem:[%s717_s24 + $0x60] ss:$8 sps:$4 sm:$0xff]   ;;  %v659_v23 = vld [vmem:[%s717_s24 + $0x74] ss:$8 sps:$4 sm:$0xff]  }
  0x13   : > { %v661_v24 = vld [vmem:[%s717_s24 + $0x30] ss:$8 sps:$4 sm:$0xff]   ;;  %v764_v26 = vld [vmem:[%s826_s2] ss:$0 sm:$0xff] }
  0x14   : > { %v662_v25 = vld [vmem:[%s717_s24 + $0x70] ss:$8 sps:$4 sm:$0xff]  }
  0x15   : > { %375 = vmatpush1.bf16.msra.mxu0 %v632_v3  ;;  %614 = vmatpush1.bf16.msra.mxu1 %v632_v3 }
  0x16   : > { %376 = vmatprep.subr.bf16.mxu0 %v671_v1  ;;  %606 = vmatprep.subr.bf16.mxu1 %v671_v1 }
  0x19   : > { %377 = vmatpush1.bf16.msra.mxu0 %v633_v4  ;;  %615 = vmatpush1.bf16.msra.mxu1 %v633_v4 }
  0x1a   : > { %378 = vmatprep.subr.bf16.mxu0 %v671_v1  ;;  %607 = vmatprep.subr.bf16.mxu1 %v671_v1 }
  0x1d   : > { %379 = vmatpush1.bf16.msra.mxu0 %v634_v7  ;;  %616 = vmatpush1.bf16.msra.mxu1 %v634_v7 }
  0x1e   : > { %380 = vmatprep.subr.bf16.mxu0 %v671_v1  ;;  %608 = vmatprep.subr.bf16.mxu1 %v671_v1 }
  0x21   : > { %381 = vmatpush1.bf16.msra.mxu0 %v635_v8  ;;  %617 = vmatpush1.bf16.msra.mxu1 %v635_v8 }
  0x22   : > { %382 = vmatprep.subr.bf16.mxu0 %v671_v1  ;;  %609 = vmatprep.subr.bf16.mxu1 %v671_v1 }
  0x25   : > { %383 = vmatpush1.bf16.msra.mxu0 %v636_v9  ;;  %618 = vmatpush1.bf16.msra.mxu1 %v636_v9 }
  0x26   : > { %384 = vmatprep.subr.bf16.mxu0 %v671_v1  ;;  %610 = vmatprep.subr.bf16.mxu1 %v671_v1 }
  0x29   : > { %385 = vmatpush1.bf16.msra.mxu0 %v637_v10  ;;  %619 = vmatpush1.bf16.msra.mxu1 %v637_v10 }
  0x2a   : > { %400 = vmatprep.subr.bf16.mxu0 %v671_v1  ;;  %611 = vmatprep.subr.bf16.mxu1 %v671_v1 }
  0x2d   : > { %401 = vmatpush2.bf16.msra.mxu0 %v638_v11  ;;  %620 = vmatpush2.bf16.msra.mxu1 %v638_v11 }
  0x30   : > { %403 = vmatmul.mubr.bf16.vlgmr.msra.gmra.mxu0 %v639_v12  ;;  %435 = vmatmul.mubr.bf16.vlgmr.msra.gmra.mxu1 %v642_v13 }
  0x31   : > { %593 = vmatprep.mubr.msk.bf16.mxu0 %vm345_vm0, %v645_v14  ;;  %597 = vmatprep.mubr.msk.bf16.mxu1 %vm345_vm0, %v647_v15 }
  0x38   : > { %411 = vmatmul.mubr.bf16.gmra.mxu0 %v649_v16  ;;  %443 = vmatmul.mubr.bf16.gmra.mxu1 %v650_v17 }
  0x39   : > { %594 = vmatprep.mubr.msk.bf16.mxu0 %vm345_vm0, %v651_v18  ;;  %598 = vmatprep.mubr.msk.bf16.mxu1 %vm345_vm0, %v653_v19 }
  0x40   : > { %419 = vmatmul.mubr.bf16.gmra.mxu0 %v655_v20  ;;  %451 = vmatmul.mubr.bf16.gmra.mxu1 %v656_v21 }
  0x41   : > { %595 = vmatprep.mubr.msk.bf16.mxu0 %vm345_vm0, %v657_v22  ;;  %599 = vmatprep.mubr.msk.bf16.mxu1 %vm345_vm0, %v659_v23 }
  0x48   : > { %427 = vmatmul.mubr.bf16.gmra.mxu0 %v661_v24  ;;  %459 = vmatmul.mubr.bf16.gmra.mxu1 %v662_v25 }
  0xf0   : > { %v404_v27 = vpop.f32.mrf.mxu0  ;;  %v436_v28 = vpop.f32.mrf.mxu1 }
  0xf1   : > { %v405_v29 = vadd.f32 %v764_v26, %v404_v27  ;;  %v437_v30 = vadd.f32 %v764_v26, %v436_v28 }
  0xf2   : > { %v406_v31 = vpop.f32.mrf.mxu0  ;;  %v438_v32 = vpop.f32.mrf.mxu1 }
  0xf3   : > { %v467_v33 = vmax.f32 %v405_v29, 0.0  ;;  %v475_v34 = vmax.f32 %v437_v30, 0.0 }
  0xf4   : > { %v407_v35 = vpop.f32.mrf.mxu0  ;;  %v439_v36 = vpop.f32.mrf.mxu1 }
  0xf5   : > { %484 = vst.msk [vmem:[%s773_s15] sm:$0xff] %vm483_vm1, %v467_v33  ;;  %492 = vst.msk [vmem:[%s773_s15 + $0x40] sm:$0xff] %vm483_vm1, %v475_v34  ;;  %v408_v37 = vadd.f32 %v764_v26, %v407_v35  ;;  %v440_v38 = vadd.f32 %v764_v26, %v439_v36 }
  0xf6   : > { %v409_v39 = vpop.f32.mrf.mxu0  ;;  %v441_v40 = vpop.f32.mrf.mxu1 }
  0xf7   : > { %v468_v41 = vmax.f32 %v408_v37, 0.0  ;;  %v476_v42 = vmax.f32 %v440_v38, 0.0 }
  0xf8   : > { %v412_v43 = vpop.f32.mrf.mxu0  ;;  %v444_v44 = vpop.f32.mrf.mxu1 }
  0xf9   : > { %485 = vst.msk [vmem:[%s773_s15 + $0x8] sm:$0xff] %vm483_vm1, %v468_v41  ;;  %493 = vst.msk [vmem:[%s773_s15 + $0x48] sm:$0xff] %vm483_vm1, %v476_v42  ;;  %v413_v45 = vadd.f32 %v764_v26, %v412_v43  ;;  %v445_v46 = vadd.f32 %v764_v26, %v444_v44 }
  0xfa   : > { %v414_v47 = vpop.f32.mrf.mxu0  ;;  %v446_v48 = vpop.f32.mrf.mxu1 }
  0xfb   : > { %v469_v49 = vmax.f32 %v413_v45, 0.0  ;;  %v477_v50 = vmax.f32 %v445_v46, 0.0 }
  0xfc   : > { %v415_v51 = vpop.f32.mrf.mxu0  ;;  %v447_v52 = vpop.f32.mrf.mxu1 }
  0xfd   : > { %486 = vst.msk [vmem:[%s773_s15 + $0x10] sm:$0xff] %vm483_vm1, %v469_v49  ;;  %494 = vst.msk [vmem:[%s773_s15 + $0x50] sm:$0xff] %vm483_vm1, %v477_v50  ;;  %v416_v53 = vadd.f32 %v764_v26, %v415_v51  ;;  %v448_v54 = vadd.f32 %v764_v26, %v447_v52 }
  0xfe   : > { %v417_v55 = vpop.f32.mrf.mxu0  ;;  %v449_v56 = vpop.f32.mrf.mxu1 }
  0xff   : > { %v470_v57 = vmax.f32 %v416_v53, 0.0  ;;  %v478_v58 = vmax.f32 %v448_v54, 0.0 }
 0x100   : > { %v420_v59 = vpop.f32.mrf.mxu0  ;;  %v452_v60 = vpop.f32.mrf.mxu1 }
 0x101   : > { %487 = vst.msk [vmem:[%s773_s15 + $0x18] sm:$0xff] %vm483_vm1, %v470_v57  ;;  %495 = vst.msk [vmem:[%s773_s15 + $0x58] sm:$0xff] %vm483_vm1, %v478_v58  ;;  %v421_v61 = vadd.f32 %v764_v26, %v420_v59  ;;  %v453_v62 = vadd.f32 %v764_v26, %v452_v60 }
 0x102   : > { %v422_v63 = vpop.f32.mrf.mxu0  ;;  %v454_v0 = vpop.f32.mrf.mxu1 }
 0x103   : > { %v471_v1 = vmax.f32 %v421_v61, 0.0  ;;  %v479_v2 = vmax.f32 %v453_v62, 0.0 }
 0x104   : > { %v423_v3 = vpop.f32.mrf.mxu0  ;;  %v455_v4 = vpop.f32.mrf.mxu1 }
 0x105   : > { %488 = vst.msk [vmem:[%s773_s15 + $0x20] sm:$0xff] %vm483_vm1, %v471_v1  ;;  %496 = vst.msk [vmem:[%s773_s15 + $0x60] sm:$0xff] %vm483_vm1, %v479_v2  ;;  %v424_v5 = vadd.f32 %v764_v26, %v423_v3  ;;  %v456_v6 = vadd.f32 %v764_v26, %v455_v4 }
 0x106   : > { %v425_v7 = vpop.f32.mrf.mxu0  ;;  %v457_v8 = vpop.f32.mrf.mxu1 }
 0x107   : > { %v472_v9 = vmax.f32 %v424_v5, 0.0  ;;  %v480_v10 = vmax.f32 %v456_v6, 0.0 }
 0x108   : > { %v428_v11 = vpop.f32.mrf.mxu0  ;;  %v460_v12 = vpop.f32.mrf.mxu1 }
 0x109   : > { %489 = vst.msk [vmem:[%s773_s15 + $0x28] sm:$0xff] %vm483_vm1, %v472_v9  ;;  %497 = vst.msk [vmem:[%s773_s15 + $0x68] sm:$0xff] %vm483_vm1, %v480_v10  ;;  %v429_v13 = vadd.f32 %v764_v26, %v428_v11  ;;  %v461_v14 = vadd.f32 %v764_v26, %v460_v12 }
 0x10a   : > { %v430_v15 = vpop.f32.mrf.mxu0  ;;  %v462_v16 = vpop.f32.mrf.mxu1 }
 0x10b   : > { %v473_v17 = vmax.f32 %v429_v13, 0.0  ;;  %v481_v18 = vmax.f32 %v461_v14, 0.0 }
 0x10c   : > { %v431_v19 = vpop.f32.mrf.mxu0  ;;  %v463_v20 = vpop.f32.mrf.mxu1 }
 0x10d   : > { %490 = vst.msk [vmem:[%s773_s15 + $0x30] sm:$0xff] %vm483_vm1, %v473_v17  ;;  %498 = vst.msk [vmem:[%s773_s15 + $0x70] sm:$0xff] %vm483_vm1, %v481_v18  ;;  %v432_v21 = vadd.f32 %v764_v26, %v431_v19  ;;  %v464_v22 = vadd.f32 %v764_v26, %v463_v20 }
 0x10e   : > { %v433_v23 = vpop.f32.mrf.mxu0  ;;  %v465_v24 = vpop.f32.mrf.mxu1 }
 0x10f   : > { %v474_v25 = vmax.f32 %v432_v21, 0.0  ;;  %v482_v27 = vmax.f32 %v464_v22, 0.0 }
 0x111   : > { %491 = vst.msk [vmem:[%s773_s15 + $0x38] sm:$0xff] %vm483_vm1, %v474_v25  ;;  %499 = vst.msk [vmem:[%s773_s15 + $0x78] sm:$0xff] %vm483_vm1, %v482_v27 }
 0x112 PF: > { %s13_s12 = sadd.s32 1, %s669_s12  }
 0x113   : > { %p10_p4 = scmp.ge.s32.totalorder %s13_s12, 4  }
 0x115   :  { %12 = sbr.rel (!%p10_p4) target bundleno = 1 (0x1), region = 62 }

// kernel: cnn_forward.8
= control target key start
LH: loop header
LB: loop body
LE: loop exit
PB: predicated region body
PF: predicated region fallthrough
CT: control target
= control target key end

     0   :  { %vm242_vm0 = vcmask 261120   ;;  %vm393_vm1 = vcmask 523264   ;;  %s698_s1 = inlined_call_operand.vmem [shape: bf16[288,64], index: 1, kind: input, shape index: {}]   ;;  %s699_s0 = inlined_call_operand.vmem [shape: bf16[64,288], index: 0, kind: input, shape index: {}]   ;;  %s700_s2 = inlined_call_operand.vmem [shape: f32[1,64], index: 2, kind: input, shape index: {}]   ;;  %s701_s3 = inlined_call_operand.vmem [shape: f32[64,64], index: 3, kind: output, shape index: {}]  }
   0x1   :  { %v515_v0 = vld [vmem:[%s698_s1 + $0x78] sm:$0xff]   ;;  %v517_v2 = vld [vmem:[%s698_s1 + $0x70] sm:$0xff]   ;;  %v519_v4 = vld [vmem:[%s698_s1 + $0x68] sm:$0xff]  }
   0x2   :  { %v516_v1 = vld [vmem:[%s698_s1 + $0x38] sm:$0xff]   ;;  %441 = vmatprep.subr.bf16.mxu0 %v515_v0  ;;  %499 = vmatprep.subr.bf16.mxu1 %v515_v0  ;;  %v518_v3 = vld [vmem:[%s698_s1 + $0x30] sm:$0xff]   ;;  %v520_v5 = vld [vmem:[%s698_s1 + $0x28] sm:$0xff]  }
   0x3   :  { %442 = vmatpush3.bf16.msra.mxu0 %v516_v1  ;;  %507 = vmatpush3.bf16.msra.mxu1 %v516_v1  ;;  %v521_v6 = vld [vmem:[%s698_s1 + $0x60] sm:$0xff]   ;;  %v523_v8 = vld [vmem:[%s698_s1 + $0x58] sm:$0xff]   ;;  %v525_v10 = vld [vmem:[%s698_s1 + $0x50] sm:$0xff]  }
   0x4   :  { %443 = vmatprep.subr.bf16.mxu0 %v517_v2  ;;  %500 = vmatprep.subr.bf16.mxu1 %v517_v2  ;;  %v522_v7 = vld [vmem:[%s698_s1 + $0x20] sm:$0xff]   ;;  %v524_v9 = vld [vmem:[%s698_s1 + $0x18] sm:$0xff]   ;;  %v526_v13 = vld [vmem:[%s698_s1 + $0x10] sm:$0xff]  }
   0x5   :  { %v533_v11 = vld [vmem:[%s699_s0 + $0x4] ss:$12 sps:$4 sm:$0xff]   ;;  %v536_v12 = vld [vmem:[%s699_s0 + $0x4c] ss:$12 sps:$4 sm:$0xff]   ;;  %v534_v20 = vld [vmem:[%s699_s0 + $0x48] ss:$12 sps:$4 sm:$0xff]  }
   0x6   :  { %v527_v14 = vld [vmem:[%s698_s1 + $0x48] sm:$0xff]   ;;  %287 = vmatprep.mubr.bf16.mxu0 %v533_v11  ;;  %311 = vmatprep.mubr.bf16.mxu1 %v536_v12  ;;  %v529_v16 = vld [vmem:[%s698_s1 + $0x40] sm:$0xff]   ;;  %v547_v28 = vld [vmem:[%s699_s0 + $0x30] ss:$12 sps:$4 sm:$0xff]  }
   0x7   :  { %444 = vmatpush3.bf16.msra.mxu0 %v518_v3  ;;  %508 = vmatpush3.bf16.msra.mxu1 %v518_v3  ;;  %v528_v15 = vld [vmem:[%s698_s1 + $0x8] sm:$0xff]   ;;  %v530_v17 = vld [vmem:[%s698_s1] sm:$0xff]   ;;  %v548_v29 = vld [vmem:[%s699_s0 + $0x50] ss:$12 sps:$4 sm:$0xff]  }
   0x8   :  { %445 = vmatprep.subr.bf16.mxu0 %v519_v4  ;;  %501 = vmatprep.subr.bf16.mxu1 %v519_v4  ;;  %v537_v18 = vld [vmem:[%s698_s1 + $0x88] sm:$0xff]   ;;  %v538_v22 = vld [vmem:[%s698_s1 + $0x80] sm:$0xff]  }
   0x9   :  { %v531_v19 = vld [vmem:[%s699_s0] ss:$12 sps:$4 sm:$0xff]   ;;  %v539_v21 = vld [vmem:[%s699_s0 + $0x1c] ss:$12 sps:$4 sm:$0xff]   ;;  %v542_v24 = vld [vmem:[%s699_s0 + $0x18] ss:$12 sps:$4 sm:$0xff]  }
   0xa   :  { %v541_v23 = vld [vmem:[%s699_s0 + $0x8] ss:$12 sps:$4 sm:$0xff]   ;;  %v543_v25 = vld [vmem:[%s699_s0 + $0x20] ss:$12 sps:$4 sm:$0xff]   ;;  %v546_v27 = vld [vmem:[%s699_s0 + $0x38] ss:$12 sps:$4 sm:$0xff]  }
   0xb   :  { %446 = vmatpush3.bf16.msra.mxu0 %v520_v5  ;;  %509 = vmatpush3.bf16.msra.mxu1 %v520_v5  ;;  %v544_v26 = vld [vmem:[%s699_s0 + $0x34] ss:$12 sps:$4 sm:$0xff]  }
   0xc   :  { %447 = vmatprep.subr.bf16.mxu0 %v521_v6  ;;  %502 = vmatprep.subr.bf16.mxu1 %v521_v6  ;;  %v406_v39 = vld [vmem:[%s700_s2] ss:$0 sm:$0xff] }
   0xf   :  { %448 = vmatpush3.bf16.msra.mxu0 %v522_v7  ;;  %510 = vmatpush3.bf16.msra.mxu1 %v522_v7 }
  0x10   :  { %449 = vmatprep.subr.bf16.mxu0 %v523_v8  ;;  %503 = vmatprep.subr.bf16.mxu1 %v523_v8 }
  0x13   :  { %450 = vmatpush3.bf16.msra.mxu0 %v524_v9  ;;  %511 = vmatpush3.bf16.msra.mxu1 %v524_v9 }
  0x14   :  { %451 = vmatprep.subr.bf16.mxu0 %v525_v10  ;;  %504 = vmatprep.subr.bf16.mxu1 %v525_v10 }
  0x17   :  { %452 = vmatpush3.bf16.msra.mxu0 %v526_v13  ;;  %512 = vmatpush3.bf16.msra.mxu1 %v526_v13 }
  0x18   :  { %453 = vmatprep.subr.bf16.mxu0 %v527_v14  ;;  %505 = vmatprep.subr.bf16.mxu1 %v527_v14 }
  0x1b   :  { %454 = vmatpush3.bf16.msra.mxu0 %v528_v15  ;;  %513 = vmatpush3.bf16.msra.mxu1 %v528_v15 }
  0x1c   :  { %455 = vmatprep.subr.bf16.mxu0 %v529_v16  ;;  %506 = vmatprep.subr.bf16.mxu1 %v529_v16 }
  0x1f   :  { %456 = vmatpush3.bf16.msra.mxu0 %v530_v17  ;;  %514 = vmatpush3.bf16.msra.mxu1 %v530_v17 }
  0x20   :  { %487 = vmatprep.subr.bf16.mxu1 %v537_v18 }
  0x22   :  { %288 = vmatmul.mubr.bf16.vlgmr.msra.gmra.mxu0 %v531_v19  ;;  %312 = vmatmul.mubr.bf16.vlgmr.msra.gmra.mxu1 %v534_v20 }
  0x23   :  { %488 = vmatpush3.bf16.msra.mxu1 %v537_v18  ;;  %295 = vmatprep.mubr.bf16.mxu0 %v539_v21 }
  0x24   :  { %489 = vmatprep.subr.bf16.mxu1 %v538_v22  ;;  %491 = vmatprep.mubr.msk.bf16.mxu1 %vm242_vm0, %v541_v23 }
  0x27   :  { %490 = vmatpush3.bf16.msra.mxu1 %v538_v22 }
  0x2a   :  { %296 = vmatmul.mubr.bf16.gmra.mxu0 %v542_v24  ;;  %492 = vmatmul.mubr.msk.bf16.vlgmr.msra.gmra.mxu1 %vm242_vm0, %v543_v25 }
  0x2b   :  { %303 = vmatprep.mubr.bf16.mxu0 %v544_v26  ;;  %495 = vmatprep.mubr.msk.bf16.mxu1 %vm242_vm0, %v546_v27 }
  0x32   :  { %304 = vmatmul.mubr.bf16.gmra.mxu0 %v547_v28  ;;  %496 = vmatmul.mubr.msk.bf16.gmra.mxu1 %vm242_vm0, %v548_v29 }
  0xe2   :  { %v457_v30 = vpop.f32.mrf.mxu0  ;;  %v475_v31 = vpop.f32.mrf.mxu1 }
  0xe4   :  { %v458_v32 = vpop.f32.mrf.mxu0  ;;  %v476_v33 = vpop.f32.mrf.mxu1 }
  0xe5   :  { %v459_v36 = vadd.f32 %v458_v32, %v457_v30  ;;  %v477_v44 = vadd.f32 %v476_v33, %v475_v31 }
  0xe6   :  { %v460_v34 = vpop.f32.mrf.mxu0  ;;  %v478_v35 = vpop.f32.mrf.mxu1 }
  0xe7   :  { %v290_v43 = vadd.f32 %v459_v36, %v406_v39  ;;  %v314_v56 = vadd.f32 %v477_v44, %v406_v39 }
  0xe8   :  { %v461_v37 = vpop.f32.mrf.mxu0  ;;  %v479_v38 = vpop.f32.mrf.mxu1 }
  0xe9   :  { %v462_v42 = vadd.f32 %v461_v37, %v460_v34  ;;  %v480_v57 = vadd.f32 %v479_v38, %v478_v35 }
  0xea   :  { %v463_v40 = vpop.f32.mrf.mxu0  ;;  %v493_v41 = vpop.f32.mrf.mxu1 }
  0xeb   :  { %v293_v53 = vadd.f32 %v462_v42, %v406_v39  ;;  %v317_v8 = vadd.f32 %v480_v57, %v406_v39 }
  0xec   :  { %v464_v45 = vpop.f32.mrf.mxu0  ;;  %v354_v46 = vpop.f32.mrf.mxu1 }
  0xed   :  { %v465_v47 = vadd.f32 %v464_v45, %v463_v40  ;;  %v355_v48 = vadd.f32 %v354_v46, %v290_v43 }
  0xee   :  { %v466_v49 = vpop.f32.mrf.mxu0  ;;  %v494_v50 = vpop.f32.mrf.mxu1 }
  0xef   :  { %v298_v51 = vadd.f32 %v465_v47, %v406_v39  ;;  %v385_v52 = vmax.f32 %v355_v48, 0.0 }
  0xf0   :  { %v467_v54 = vpop.f32.mrf.mxu0  ;;  %v357_v55 = vpop.f32.mrf.mxu1 }
  0xf1   :  { %v363_v58 = vadd.f32 %v493_v41, %v298_v51  ;;  %394 = vst.msk [vmem:[%s701_s3] sm:$0xff] %vm393_vm1, %v385_v52  ;;  %v468_v59 = vadd.f32 %v467_v54, %v466_v49  ;;  %v358_v60 = vadd.f32 %v357_v55, %v293_v53 }
  0xf2   :  { %v469_v61 = vpop.f32.mrf.mxu0  ;;  %v497_v62 = vpop.f32.mrf.mxu1 }
  0xf3   :  { %v387_v63 = vmax.f32 %v363_v58, 0.0  ;;  %v301_v0 = vadd.f32 %v468_v59, %v406_v39  ;;  %v386_v1 = vmax.f32 %v358_v60, 0.0  ;;  %v379_v2 = vadd.f32 %v497_v62, %v314_v56 }
  0xf4   :  { %v470_v3 = vpop.f32.mrf.mxu0  ;;  %v370_v4 = vpop.f32.mrf.mxu1 }
  0xf5   :  { %396 = vst.msk [vmem:[%s701_s3 + $0x10] sm:$0xff] %vm393_vm1, %v387_v63  ;;  %v366_v5 = vadd.f32 %v494_v50, %v301_v0  ;;  %395 = vst.msk [vmem:[%s701_s3 + $0x8] sm:$0xff] %vm393_vm1, %v386_v1  ;;  %v391_v6 = vmax.f32 %v379_v2, 0.0  ;;  %v471_v7 = vadd.f32 %v470_v3, %v469_v61 }
  0xf6   :  { %v472_v9 = vpop.f32.mrf.mxu0  ;;  %v498_v10 = vpop.f32.mrf.mxu1 }
  0xf7   :  { %v388_v11 = vmax.f32 %v366_v5, 0.0  ;;  %400 = vst.msk [vmem:[%s701_s3 + $0x30] sm:$0xff] %vm393_vm1, %v391_v6  ;;  %v306_v12 = vadd.f32 %v471_v7, %v406_v39  ;;  %v382_v13 = vadd.f32 %v498_v10, %v317_v8 }
  0xf8   :  { %v473_v14 = vpop.f32.mrf.mxu0  ;;  %v373_v20 = vpop.f32.mrf.mxu1 }
  0xf9   :  { %397 = vst.msk [vmem:[%s701_s3 + $0x18] sm:$0xff] %vm393_vm1, %v388_v11  ;;  %v371_v15 = vadd.f32 %v370_v4, %v306_v12  ;;  %v392_v16 = vmax.f32 %v382_v13, 0.0  ;;  %v474_v17 = vadd.f32 %v473_v14, %v472_v9 }
  0xfb   :  { %v389_v18 = vmax.f32 %v371_v15, 0.0  ;;  %401 = vst.msk [vmem:[%s701_s3 + $0x38] sm:$0xff] %vm393_vm1, %v392_v16  ;;  %v309_v19 = vadd.f32 %v474_v17, %v406_v39 }
  0xfd   :  { %398 = vst.msk [vmem:[%s701_s3 + $0x20] sm:$0xff] %vm393_vm1, %v389_v18  ;;  %v374_v21 = vadd.f32 %v373_v20, %v309_v19 }
  0xff   :  { %v390_v22 = vmax.f32 %v374_v21, 0.0 }
 0x101   :  { %399 = vst.msk [vmem:[%s701_s3 + $0x28] sm:$0xff] %vm393_vm1, %v390_v22 }

// kernel: cnn_forward.9
= control target key start
LH: loop header
LB: loop body
LE: loop exit
PB: predicated region body
PF: predicated region fallthrough
CT: control target
= control target key end

     0   :  { %s2846_s27 = smov 0   ;;  %s4317_s0 = inlined_call_operand.vmem [shape: f32[2,9,576], index: 0, kind: input, shape index: {}]   ;;  %s4318_s1 = inlined_call_operand.vmem [shape: f32[2,1,1], index: 1, kind: input, shape index: {}]   ;;  %s4319_s2 = inlined_call_operand.vmem [shape: f32[576,128], index: 2, kind: input, shape index: {}]   ;;  %s4320_s3 = inlined_call_operand.vmem [shape: f32[1,128], index: 3, kind: input, shape index: {}]   ;;  %s4321_s4 = inlined_call_operand.vmem [shape: f32[9,128,256], index: 4, kind: input, shape index: {}]   ;;  %s4322_s5 = inlined_call_operand.vmem [shape: f32[1,256], index: 5, kind: input, shape index: {}]   ;;  %s4323_s6 = inlined_call_operand.vmem [shape: f32[256,256], index: 6, kind: input, shape index: {}]   ;;  %s4324_s7 = inlined_call_operand.vmem [shape: f32[1,256], index: 7, kind: input, shape index: {}]   ;;  %s4325_s8 = inlined_call_operand.vmem [shape: f32[1,256], index: 8, kind: input, shape index: {}]   ;;  %s4326_s9 = inlined_call_operand.vmem [shape: f32[256,32], index: 9, kind: input, shape index: {}]   ;;  %s4327_s10 = inlined_call_operand.vmem [shape: f32[1,32], index: 10, kind: input, shape index: {}]   ;;  %s4328_s11 = inlined_call_operand.vmem [shape: f32[32,1], index: 11, kind: input, shape index: {}]   ;;  %s4329_s12 = inlined_call_operand.<no memory space> [shape: f32[1,1], index: 12, kind: input, shape index: {}]   ;;  %s4330_s13 = inlined_call_operand.vmem [shape: f32[2,1,1], index: 13, kind: output, shape index: {}]  }
   0x1   :  { %v18_v0 = vstv %s4329_s12 }
   0x2   :  { %19 = vst [vmem:[#allocation2] sm:$0x1] %v18_v0 }
   0x3 LB: > { %s2323_s28 = sadd.s32 4294967295, %s2767_s27   ;;  %p2327_p0 = scmp.ge.s32.totalorder %s2767_s27, 1  ;;  %s2767_s27 = sphi %s2846_s27, %s25_s27  }
   0x4   : > { %p397_p1 = scmp.lt.s32.totalorder %s2767_s27, 3 }
   0x6   : > { %p398_p2 = pnand %p2327_p0, %p397_p1 }
   0x7   : > { %p2949_p3 = scmp.lt.s32.totalorder (!%p398_p2), %s2323_s28, 1 }
   0x8   : > { %401 = sbr.rel (%p398_p2) target bundleno = 1201 (0x4b1), region = 72 }
   0xd   : > { %v494_v1 = vld [vmem:[%s4319_s2 + $0xf8] sm:$0xff]  ;;  %v493_v3 = vld [vmem:[%s4319_s2 + $0xf0] sm:$0xff]  ;;  %v492_v7 = vld [vmem:[%s4319_s2 + $0xe8] sm:$0xff]  ;;  %s4333_s28 = smov (!%p2949_p3, %s2323_s28), 1  ;;  %vm542_vm0 = vcmask 523264   ;;  %vm2772_vm1 = vmmov 0  }
   0xe   : > { %v478_v2 = vld [vmem:[%s4319_s2 + $0x78] sm:$0xff]  ;;  %2591 = vmatprep.subr.mxu0 %v494_v1  ;;  %v477_v5 = vld [vmem:[%s4319_s2 + $0x70] sm:$0xff]  ;;  %v476_v9 = vld [vmem:[%s4319_s2 + $0x68] sm:$0xff]  ;;  %s2747_s29 = smul.u32 80, %s4333_s28  ;;  %s449_s23 = scalar_lea.vmem %s4318_s1, %s4333_s28  ;;  %vm2191_vm2 = vcmask 261120   ;;  %vm2265_vm3 = vcmask 0  }
   0xf   : > { %v526_v4 = vld [vmem:[%s4319_s2 + $0x1f8] sm:$0xff]  ;;  %2592 = vmatpush3.msra.mxu0 %v478_v2  ;;  %v525_v8 = vld [vmem:[%s4319_s2 + $0x1f0] sm:$0xff]  ;;  %v524_v11 = vld [vmem:[%s4319_s2 + $0x1e8] sm:$0xff]  ;;  %s452_s30 = scalar_lea.vmem %s4330_s13, %s4333_s28 }
  0x10   : > { %v510_v6 = vld [vmem:[%s4319_s2 + $0x178] sm:$0xff]  ;;  %2629 = vmatprep.subr.mxu1 %v526_v4  ;;  %2593 = vmatprep.subr.mxu0 %v493_v3  ;;  %v509_v10 = vld [vmem:[%s4319_s2 + $0x170] sm:$0xff]  ;;  %v491_v12 = vld [vmem:[%s4319_s2 + $0xe0] sm:$0xff]  ;;  %s3035_s15 = scalar_lea.vmem %s4317_s0, %s2747_s29 }
  0x11   : > { %2630 = vmatpush3.msra.mxu1 %v510_v6  ;;  %2594 = vmatpush3.msra.mxu0 %v477_v5  ;;  %v508_v13 = vld [vmem:[%s4319_s2 + $0x168] sm:$0xff]  ;;  %v475_v14 = vld [vmem:[%s4319_s2 + $0x60] sm:$0xff]  ;;  %v490_v16 = vld [vmem:[%s4319_s2 + $0xd8] sm:$0xff] }
  0x12   : > { %2631 = vmatprep.subr.mxu1 %v525_v8  ;;  %2595 = vmatprep.subr.mxu0 %v492_v7  ;;  %v523_v15 = vld [vmem:[%s4319_s2 + $0x1e0] sm:$0xff]  ;;  %v474_v18 = vld [vmem:[%s4319_s2 + $0x58] sm:$0xff]  ;;  %v489_v20 = vld [vmem:[%s4319_s2 + $0xd0] sm:$0xff] }
  0x13   : > { %2632 = vmatpush3.msra.mxu1 %v509_v10  ;;  %2596 = vmatpush3.msra.mxu0 %v476_v9  ;;  %v507_v17 = vld [vmem:[%s4319_s2 + $0x160] sm:$0xff]  ;;  %v522_v19 = vld [vmem:[%s4319_s2 + $0x1d8] sm:$0xff]  ;;  %v473_v22 = vld [vmem:[%s4319_s2 + $0x50] sm:$0xff] }
  0x14   : > { %2633 = vmatprep.subr.mxu1 %v524_v11  ;;  %2597 = vmatprep.subr.mxu0 %v491_v12  ;;  %v506_v21 = vld [vmem:[%s4319_s2 + $0x158] sm:$0xff]  ;;  %v521_v23 = vld [vmem:[%s4319_s2 + $0x1d0] sm:$0xff]  ;;  %v488_v24 = vld [vmem:[%s4319_s2 + $0xc8] sm:$0xff] }
  0x15   : > { %2634 = vmatpush3.msra.mxu1 %v508_v13  ;;  %2598 = vmatpush3.msra.mxu0 %v475_v14  ;;  %v505_v25 = vld [vmem:[%s4319_s2 + $0x150] sm:$0xff]  ;;  %v472_v26 = vld [vmem:[%s4319_s2 + $0x48] sm:$0xff]  ;;  %v487_v28 = vld [vmem:[%s4319_s2 + $0xc0] sm:$0xff] }
  0x16   : > { %2635 = vmatprep.subr.mxu1 %v523_v15  ;;  %2599 = vmatprep.subr.mxu0 %v490_v16  ;;  %v520_v27 = vld [vmem:[%s4319_s2 + $0x1c8] sm:$0xff]  ;;  %v471_v30 = vld [vmem:[%s4319_s2 + $0x40] sm:$0xff]  ;;  %v486_v32 = vld [vmem:[%s4319_s2 + $0xb8] sm:$0xff] }
  0x17   : > { %2636 = vmatpush3.msra.mxu1 %v507_v17  ;;  %2600 = vmatpush3.msra.mxu0 %v474_v18  ;;  %v504_v29 = vld [vmem:[%s4319_s2 + $0x148] sm:$0xff]  ;;  %v519_v31 = vld [vmem:[%s4319_s2 + $0x1c0] sm:$0xff]  ;;  %v470_v34 = vld [vmem:[%s4319_s2 + $0x38] sm:$0xff] }
  0x18   : > { %2637 = vmatprep.subr.mxu1 %v522_v19  ;;  %2601 = vmatprep.subr.mxu0 %v489_v20  ;;  %v503_v33 = vld [vmem:[%s4319_s2 + $0x140] sm:$0xff]  ;;  %v518_v35 = vld [vmem:[%s4319_s2 + $0x1b8] sm:$0xff]  ;;  %v485_v36 = vld [vmem:[%s4319_s2 + $0xb0] sm:$0xff] }
  0x19   : > { %2638 = vmatpush3.msra.mxu1 %v506_v21  ;;  %2602 = vmatpush3.msra.mxu0 %v473_v22  ;;  %v502_v37 = vld [vmem:[%s4319_s2 + $0x138] sm:$0xff]  ;;  %v469_v38 = vld [vmem:[%s4319_s2 + $0x30] sm:$0xff]  ;;  %v484_v40 = vld [vmem:[%s4319_s2 + $0xa8] sm:$0xff] }
  0x1a   : > { %2639 = vmatprep.subr.mxu1 %v521_v23  ;;  %2603 = vmatprep.subr.mxu0 %v488_v24  ;;  %v517_v39 = vld [vmem:[%s4319_s2 + $0x1b0] sm:$0xff]  ;;  %v468_v42 = vld [vmem:[%s4319_s2 + $0x28] sm:$0xff]  ;;  %v483_v44 = vld [vmem:[%s4319_s2 + $0xa0] sm:$0xff] }
  0x1b   : > { %2640 = vmatpush3.msra.mxu1 %v505_v25  ;;  %2604 = vmatpush3.msra.mxu0 %v472_v26  ;;  %v501_v41 = vld [vmem:[%s4319_s2 + $0x130] sm:$0xff]  ;;  %v516_v43 = vld [vmem:[%s4319_s2 + $0x1a8] sm:$0xff]  ;;  %v467_v46 = vld [vmem:[%s4319_s2 + $0x20] sm:$0xff] }
  0x1c   : > { %2641 = vmatprep.subr.mxu1 %v520_v27  ;;  %2605 = vmatprep.subr.mxu0 %v487_v28  ;;  %v500_v45 = vld [vmem:[%s4319_s2 + $0x128] sm:$0xff]  ;;  %v515_v47 = vld [vmem:[%s4319_s2 + $0x1a0] sm:$0xff]  ;;  %v482_v48 = vld [vmem:[%s4319_s2 + $0x98] sm:$0xff] }
  0x1d   : > { %2642 = vmatpush3.msra.mxu1 %v504_v29  ;;  %2606 = vmatpush3.msra.mxu0 %v471_v30  ;;  %v499_v49 = vld [vmem:[%s4319_s2 + $0x120] sm:$0xff]  ;;  %v466_v50 = vld [vmem:[%s4319_s2 + $0x18] sm:$0xff]  ;;  %v481_v52 = vld [vmem:[%s4319_s2 + $0x90] sm:$0xff] }
  0x1e   : > { %2643 = vmatprep.subr.mxu1 %v519_v31  ;;  %2607 = vmatprep.subr.mxu0 %v486_v32  ;;  %v514_v51 = vld [vmem:[%s4319_s2 + $0x198] sm:$0xff]  ;;  %v465_v54 = vld [vmem:[%s4319_s2 + $0x10] sm:$0xff]  ;;  %v480_v56 = vld [vmem:[%s4319_s2 + $0x88] sm:$0xff] }
  0x1f   : > { %2644 = vmatpush3.msra.mxu1 %v503_v33  ;;  %2608 = vmatpush3.msra.mxu0 %v470_v34  ;;  %v498_v53 = vld [vmem:[%s4319_s2 + $0x118] sm:$0xff]  ;;  %v513_v55 = vld [vmem:[%s4319_s2 + $0x190] sm:$0xff]  ;;  %v464_v58 = vld [vmem:[%s4319_s2 + $0x8] sm:$0xff] }
  0x20   : > { %2645 = vmatprep.subr.mxu1 %v518_v35  ;;  %2609 = vmatprep.subr.mxu0 %v485_v36  ;;  %v497_v57 = vld [vmem:[%s4319_s2 + $0x110] sm:$0xff]  ;;  %v512_v59 = vld [vmem:[%s4319_s2 + $0x188] sm:$0xff]  ;;  %v479_v60 = vld [vmem:[%s4319_s2 + $0x80] sm:$0xff] }
  0x21   : > { %2646 = vmatpush3.msra.mxu1 %v502_v37  ;;  %2610 = vmatpush3.msra.mxu0 %v469_v38  ;;  %v454_v61 = vld [vmem:[%s3035_s15 + $0x8] sm:$0xff]  ;;  %v463_v62 = vld [vmem:[%s4319_s2] sm:$0xff]  ;;  %v534_v2 = vld [vmem:[%s4319_s2 + $0x238] sm:$0xff] }
  0x22   : > { %2647 = vmatprep.subr.mxu1 %v517_v39  ;;  %2611 = vmatprep.subr.mxu0 %v484_v40  ;;  %v496_v63 = vld [vmem:[%s4319_s2 + $0x108] sm:$0xff]  ;;  %v453_v0 = vld [vmem:[%s3035_s15] sm:$0xff]  ;;  %v456_v4 = vld [vmem:[%s3035_s15 + $0x18] sm:$0xff] }
  0x23   : > { %2648 = vmatpush3.msra.mxu1 %v501_v41  ;;  %2612 = vmatpush3.msra.mxu0 %v468_v42  ;;  %v511_v1 = vld [vmem:[%s4319_s2 + $0x180] sm:$0xff]  ;;  %v455_v5 = vld [vmem:[%s3035_s15 + $0x10] sm:$0xff]  ;;  %v532_v8 = vld [vmem:[%s4319_s2 + $0x228] sm:$0xff] }
  0x24   : > { %2649 = vmatprep.subr.mxu1 %v516_v43  ;;  %2613 = vmatprep.subr.mxu0 %v483_v44  ;;  %v495_v3 = vld [vmem:[%s4319_s2 + $0x100] sm:$0xff]  ;;  %v533_v6 = vld [vmem:[%s4319_s2 + $0x230] sm:$0xff]  ;;  %v458_v9 = vld [vmem:[%s3035_s15 + $0x28] sm:$0x1] }
  0x25   : > { %2650 = vmatpush3.msra.mxu1 %v500_v45  ;;  %2614 = vmatpush3.msra.mxu0 %v467_v46  ;;  %v459_v7 = vld [vmem:[%s3035_s15 + $0x30] sm:$0x1]  ;;  %v461_v10 = vld [vmem:[%s3035_s15 + $0x40] sm:$0x1]  ;;  %v460_v12 = vld [vmem:[%s3035_s15 + $0x38] sm:$0x1] }
  0x26   : > { %2651 = vmatprep.subr.mxu1 %v515_v47  ;;  %2615 = vmatprep.subr.mxu0 %v482_v48  ;;  %v531_v11 = vld [vmem:[%s4319_s2 + $0x220] sm:$0xff]  ;;  %v530_v14 = vld [vmem:[%s4319_s2 + $0x218] sm:$0xff]  ;;  %v807_v16 = vld [vmem:[%s4321_s4 + $0xf0] sm:$0xff] }
  0x27   : > { %2652 = vmatpush3.msra.mxu1 %v499_v49  ;;  %2616 = vmatpush3.msra.mxu0 %v466_v50  ;;  %v457_v13 = vld [vmem:[%s3035_s15 + $0x20] sm:$0xff]  ;;  %v808_v15 = vld [vmem:[%s4321_s4 + $0xf8] sm:$0xff]  ;;  %v529_v17 = vld [vmem:[%s4319_s2 + $0x210] sm:$0xff] }
  0x28   : > { %2653 = vmatprep.subr.mxu1 %v514_v51  ;;  %2617 = vmatprep.subr.mxu0 %v481_v52  ;;  %v806_v18 = vld [vmem:[%s4321_s4 + $0xe8] sm:$0xff]  ;;  %v805_v19 = vld [vmem:[%s4321_s4 + $0xe0] sm:$0xff]  ;;  %v804_v21 = vld [vmem:[%s4321_s4 + $0xd8] sm:$0xff] }
  0x29   : > { %2654 = vmatpush3.msra.mxu1 %v498_v53  ;;  %2618 = vmatpush3.msra.mxu0 %v465_v54  ;;  %v528_v20 = vld [vmem:[%s4319_s2 + $0x208] sm:$0xff]  ;;  %v803_v22 = vld [vmem:[%s4321_s4 + $0xd0] sm:$0xff]  ;;  %v527_v23 = vld [vmem:[%s4319_s2 + $0x200] sm:$0xff] }
  0x2a   : > { %2655 = vmatprep.subr.mxu1 %v513_v55  ;;  %2619 = vmatprep.subr.mxu0 %v480_v56  ;;  %v802_v24 = vld [vmem:[%s4321_s4 + $0xc8] sm:$0xff]  ;;  %v801_v25 = vld [vmem:[%s4321_s4 + $0xc0] sm:$0xff]  ;;  %v2363_v27 = vld [vmem:[%s4321_s4 + $0x1f8] sm:$0xff] }
  0x2b   : > { %2656 = vmatpush3.msra.mxu1 %v497_v57  ;;  %2620 = vmatpush3.msra.mxu0 %v464_v58  ;;  %v462_v26 = vld [vmem:[%s3035_s15 + $0x48] sm:$0x1]  ;;  %v2362_v28 = vld [vmem:[%s4321_s4 + $0x1f0] sm:$0xff]  ;;  %v800_v29 = vld [vmem:[%s4321_s4 + $0xb8] sm:$0xff] }
  0x2c   : > { %2657 = vmatprep.subr.mxu1 %v512_v59  ;;  %2621 = vmatprep.subr.mxu0 %v479_v60  ;;  %v2361_v30 = vld [vmem:[%s4321_s4 + $0x1e8] sm:$0xff]  ;;  %v799_v31 = vld [vmem:[%s4321_s4 + $0xb0] sm:$0xff]  ;;  %v2360_v32 = vld [vmem:[%s4321_s4 + $0x1e0] sm:$0xff] }
  0x2d   : > { %613 = vmatprep.mubr.f32.mxu0 %v454_v61  ;;  %2622 = vmatpush3.msra.mxu0 %v463_v62  ;;  %v2359_v33 = vld [vmem:[%s4321_s4 + $0x1d8] sm:$0xff]  ;;  %v2358_v34 = vld [vmem:[%s4321_s4 + $0x1d0] sm:$0xff]  ;;  %v2357_v35 = vld [vmem:[%s4321_s4 + $0x1c8] sm:$0xff] }
  0x2e   : > { %2658 = vmatpush3.msra.mxu1 %v496_v63  ;;  %614 = vmatmul.mubr.f32.vlgmr.msra.gmra.mxu0 %v453_v0  ;;  %v2356_v36 = vld [vmem:[%s4321_s4 + $0x1c0] sm:$0xff]  ;;  %v798_v37 = vld [vmem:[%s4321_s4 + $0xa8] sm:$0xff]  ;;  %v2355_v38 = vld [vmem:[%s4321_s4 + $0x1b8] sm:$0xff] }
  0x2f   : > { %2659 = vmatprep.subr.mxu1 %v511_v1  ;;  %2717 = vmatprep.subr.mxu0 %v534_v2  ;;  %v797_v39 = vld [vmem:[%s4321_s4 + $0xa0] sm:$0xff]  ;;  %v2354_v40 = vld [vmem:[%s4321_s4 + $0x1b0] sm:$0xff]  ;;  %v796_v41 = vld [vmem:[%s4321_s4 + $0x98] sm:$0xff] }
  0x30   : > { %2660 = vmatpush3.msra.mxu1 %v495_v3  ;;  %688 = vmatprep.mubr.f32.mxu1 %v456_v4  ;;  %v2353_v42 = vld [vmem:[%s4321_s4 + $0x1a8] sm:$0xff]  ;;  %v795_v43 = vld [vmem:[%s4321_s4 + $0x90] sm:$0xff]  ;;  %v2352_v44 = vld [vmem:[%s4321_s4 + $0x1a0] sm:$0xff] }
  0x31   : > { %2718 = vmatpush3.msra.mxu0 %v534_v2  ;;  %689 = vmatmul.mubr.f32.vlgmr.msra.gmra.mxu1 %v455_v5  ;;  %v794_v45 = vld [vmem:[%s4321_s4 + $0x88] sm:$0xff]  ;;  %v2351_v46 = vld [vmem:[%s4321_s4 + $0x198] sm:$0xff]  ;;  %v793_v47 = vld [vmem:[%s4321_s4 + $0x80] sm:$0xff] }
  0x32   : > { %2719 = vmatprep.subr.mxu0 %v533_v6  ;;  %618 = vmatprep.mubr.f32.mxu0 %v459_v7  ;;  %v2350_v48 = vld [vmem:[%s4321_s4 + $0x190] sm:$0xff]  ;;  %v792_v49 = vld [vmem:[%s4321_s4 + $0x78] sm:$0xff]  ;;  %v2349_v50 = vld [vmem:[%s4321_s4 + $0x188] sm:$0xff] }
  0x33   : > { %2720 = vmatpush3.msra.mxu0 %v533_v6  ;;  %693 = vmatprep.mubr.f32.mxu1 %v461_v10  ;;  %v791_v51 = vld [vmem:[%s4321_s4 + $0x70] sm:$0xff]  ;;  %v2348_v52 = vld [vmem:[%s4321_s4 + $0x180] sm:$0xff]  ;;  %v790_v53 = vld [vmem:[%s4321_s4 + $0x68] sm:$0xff] }
  0x34   : > { %2721 = vmatprep.subr.mxu0 %v532_v8  ;;  %619 = vmatmul.mubr.f32.gmra.mxu0 %v458_v9  ;;  %v2347_v54 = vld [vmem:[%s4321_s4 + $0x178] sm:$0xff]  ;;  %v789_v55 = vld [vmem:[%s4321_s4 + $0x60] sm:$0xff]  ;;  %v2346_v56 = vld [vmem:[%s4321_s4 + $0x170] sm:$0xff] }
  0x35   : > { %2722 = vmatpush3.msra.mxu0 %v532_v8  ;;  %694 = vmatmul.mubr.f32.gmra.mxu1 %v460_v12  ;;  %v788_v57 = vld [vmem:[%s4321_s4 + $0x58] sm:$0xff]  ;;  %v2345_v58 = vld [vmem:[%s4321_s4 + $0x168] sm:$0xff]  ;;  %v787_v59 = vld [vmem:[%s4321_s4 + $0x50] sm:$0xff] }
  0x36   : > { %2723 = vmatprep.subr.mxu0 %v531_v11  ;;  %2733 = vmatprep.mubr.msk.f32.mxu0 %vm542_vm0, %v457_v13  ;;  %v2344_v60 = vld [vmem:[%s4321_s4 + $0x160] sm:$0xff]  ;;  %v786_v61 = vld [vmem:[%s4321_s4 + $0x48] sm:$0xff]  ;;  %v2343_v62 = vld [vmem:[%s4321_s4 + $0x158] sm:$0xff] }
  0x37   : > { %2724 = vmatpush3.msra.mxu0 %v531_v11  ;;  %809 = vmatprep.subr.mxu1 %v808_v15  ;;  %v785_v63 = vld [vmem:[%s4321_s4 + $0x40] sm:$0xff]  ;;  %v2342_v0 = vld [vmem:[%s4321_s4 + $0x150] sm:$0xff]  ;;  %v784_v1 = vld [vmem:[%s4321_s4 + $0x38] sm:$0xff] }
  0x38   : > { %2725 = vmatprep.subr.mxu0 %v530_v14  ;;  %810 = vmatpush1.msra.mxu1 %v807_v16  ;;  %v2341_v2 = vld [vmem:[%s4321_s4 + $0x148] sm:$0xff]  ;;  %v783_v3 = vld [vmem:[%s4321_s4 + $0x30] sm:$0xff]  ;;  %v2340_v4 = vld [vmem:[%s4321_s4 + $0x140] sm:$0xff] }
  0x39   : > { %2726 = vmatpush3.msra.mxu0 %v530_v14  ;;  %811 = vmatprep.subr.mxu1 %v806_v18  ;;  %v782_v5 = vld [vmem:[%s4321_s4 + $0x28] sm:$0xff]  ;;  %v2339_v6 = vld [vmem:[%s4321_s4 + $0x138] sm:$0xff]  ;;  %v781_v7 = vld [vmem:[%s4321_s4 + $0x20] sm:$0xff] }
  0x3a   : > { %2727 = vmatprep.subr.mxu0 %v529_v17  ;;  %812 = vmatpush1.msra.mxu1 %v805_v19  ;;  %v2338_v8 = vld [vmem:[%s4321_s4 + $0x130] sm:$0xff]  ;;  %v780_v9 = vld [vmem:[%s4321_s4 + $0x18] sm:$0xff]  ;;  %v2337_v10 = vld [vmem:[%s4321_s4 + $0x128] sm:$0xff]  ;;  %v2769_v19 = vmov 0.0  }
  0x3b   : > { %2728 = vmatpush3.msra.mxu0 %v529_v17  ;;  %813 = vmatprep.subr.mxu1 %v804_v21  ;;  %v779_v11 = vld [vmem:[%s4321_s4 + $0x10] sm:$0xff]  ;;  %v2336_v12 = vld [vmem:[%s4321_s4 + $0x120] sm:$0xff]  ;;  %v778_v13 = vld [vmem:[%s4321_s4 + $0x8] sm:$0xff] }
  0x3c   : > { %2729 = vmatprep.subr.mxu0 %v528_v20  ;;  %814 = vmatpush1.msra.mxu1 %v803_v22  ;;  %v2335_v14 = vld [vmem:[%s4321_s4 + $0x118] sm:$0xff]  ;;  %v777_v15 = vld [vmem:[%s4321_s4] sm:$0xff]  ;;  %v2334_v16 = vld [vmem:[%s4321_s4 + $0x110] sm:$0xff] }
  0x3d   : > { %2730 = vmatpush3.msra.mxu0 %v528_v20  ;;  %815 = vmatprep.subr.mxu1 %v802_v24  ;;  %v2333_v17 = vld [vmem:[%s4321_s4 + $0x108] sm:$0xff]  ;;  %v2395_v18 = vld [vmem:[%s4321_s4 + $0x2f8] sm:$0xff]  ;;  %v2332_v20 = vld [vmem:[%s4321_s4 + $0x100] sm:$0xff] }
  0x3e   : > { %2731 = vmatprep.subr.mxu0 %v527_v23  ;;  %816 = vmatpush1.msra.mxu1 %v801_v25  ;;  %v2427_v21 = vld [vmem:[%s4321_s4 + $0x3f8] sm:$0xff] }
  0x3f   : > { %2732 = vmatpush3.msra.mxu0 %v527_v23  ;;  %817 = vmatprep.subr.mxu1 %v800_v29 }
  0x40   : > { %2734 = vmatmul.mubr.msk.f32.vlgmr.msra.gmra.mxu0 %vm542_vm0, %v462_v26  ;;  %935 = vmatprep.subr.mxu0 %v2363_v27 }
  0x41   : > { %936 = vmatpush1.msra.mxu0 %v2362_v28  ;;  %818 = vmatpush1.msra.mxu1 %v799_v31 }
  0x42   : > { %937 = vmatprep.subr.mxu0 %v2361_v30  ;;  %819 = vmatprep.subr.mxu1 %v798_v37  ;;  %v2329_v30 = vld [vmem:[%s4320_s3] ss:$0 sm:$0xff] }
  0x43   : > { %938 = vmatpush1.msra.mxu0 %v2360_v32  ;;  %820 = vmatpush1.msra.mxu1 %v797_v39 }
  0x44   : > { %939 = vmatprep.subr.mxu0 %v2359_v33  ;;  %821 = vmatprep.subr.mxu1 %v796_v41 }
  0x45   : > { %940 = vmatpush1.msra.mxu0 %v2358_v34  ;;  %822 = vmatpush1.msra.mxu1 %v795_v43 }
  0x46   : > { %941 = vmatprep.subr.mxu0 %v2357_v35  ;;  %823 = vmatprep.subr.mxu1 %v794_v45  ;;  %v2393_v45 = vld [vmem:[%s4321_s4 + $0x2e8] sm:$0xff] }
  0x47   : > { %942 = vmatpush1.msra.mxu0 %v2356_v36  ;;  %824 = vmatpush1.msra.mxu1 %v793_v47  ;;  %v2392_v47 = vld [vmem:[%s4321_s4 + $0x2e0] sm:$0xff] }
  0x48   : > { %943 = vmatprep.subr.mxu0 %v2355_v38  ;;  %825 = vmatprep.subr.mxu1 %v792_v49  ;;  %v2391_v49 = vld [vmem:[%s4321_s4 + $0x2d8] sm:$0xff] }
  0x49   : > { %944 = vmatpush1.msra.mxu0 %v2354_v40  ;;  %826 = vmatpush1.msra.mxu1 %v791_v51  ;;  %v2390_v51 = vld [vmem:[%s4321_s4 + $0x2d0] sm:$0xff] }
  0x4a   : > { %945 = vmatprep.subr.mxu0 %v2353_v42  ;;  %827 = vmatprep.subr.mxu1 %v790_v53  ;;  %v2389_v53 = vld [vmem:[%s4321_s4 + $0x2c8] sm:$0xff] }
  0x4b   : > { %946 = vmatpush1.msra.mxu0 %v2352_v44  ;;  %828 = vmatpush1.msra.mxu1 %v789_v55  ;;  %v2394_v44 = vld [vmem:[%s4321_s4 + $0x2f0] sm:$0xff]  ;;  %v2388_v55 = vld [vmem:[%s4321_s4 + $0x2c0] sm:$0xff] }
  0x4c   : > { %947 = vmatprep.subr.mxu0 %v2351_v46  ;;  %829 = vmatprep.subr.mxu1 %v788_v57  ;;  %v2387_v57 = vld [vmem:[%s4321_s4 + $0x2b8] sm:$0xff] }
  0x4d   : > { %948 = vmatpush1.msra.mxu0 %v2350_v48  ;;  %830 = vmatpush1.msra.mxu1 %v787_v59  ;;  %v2426_v48 = vld [vmem:[%s4321_s4 + $0x3f0] sm:$0xff] }
  0x4e   : > { %949 = vmatprep.subr.mxu0 %v2349_v50  ;;  %831 = vmatprep.subr.mxu1 %v786_v61  ;;  %v2425_v50 = vld [vmem:[%s4321_s4 + $0x3e8] sm:$0xff]  ;;  %v2386_v59 = vld [vmem:[%s4321_s4 + $0x2b0] sm:$0xff] }
  0x4f   : > { %950 = vmatpush1.msra.mxu0 %v2348_v52  ;;  %832 = vmatpush1.msra.mxu1 %v785_v63  ;;  %v2424_v52 = vld [vmem:[%s4321_s4 + $0x3e0] sm:$0xff]  ;;  %v2385_v61 = vld [vmem:[%s4321_s4 + $0x2a8] sm:$0xff] }
  0x50   : > { %951 = vmatprep.subr.mxu0 %v2347_v54  ;;  %833 = vmatprep.subr.mxu1 %v784_v1  ;;  %v2423_v54 = vld [vmem:[%s4321_s4 + $0x3d8] sm:$0xff]  ;;  %v2384_v63 = vld [vmem:[%s4321_s4 + $0x2a0] sm:$0xff] }
  0x51   : > { %952 = vmatpush1.msra.mxu0 %v2346_v56  ;;  %834 = vmatpush1.msra.mxu1 %v783_v3  ;;  %v2422_v56 = vld [vmem:[%s4321_s4 + $0x3d0] sm:$0xff]  ;;  %v2383_v1 = vld [vmem:[%s4321_s4 + $0x298] sm:$0xff] }
  0x52   : > { %953 = vmatprep.subr.mxu0 %v2345_v58  ;;  %835 = vmatprep.subr.mxu1 %v782_v5  ;;  %v2421_v58 = vld [vmem:[%s4321_s4 + $0x3c8] sm:$0xff]  ;;  %v2382_v3 = vld [vmem:[%s4321_s4 + $0x290] sm:$0xff] }
  0x53   : > { %954 = vmatpush1.msra.mxu0 %v2344_v60  ;;  %836 = vmatpush1.msra.mxu1 %v781_v7  ;;  %v2420_v60 = vld [vmem:[%s4321_s4 + $0x3c0] sm:$0xff]  ;;  %v2381_v5 = vld [vmem:[%s4321_s4 + $0x288] sm:$0xff] }
  0x54   : > { %955 = vmatprep.subr.mxu0 %v2343_v62  ;;  %837 = vmatprep.subr.mxu1 %v780_v9  ;;  %v2419_v62 = vld [vmem:[%s4321_s4 + $0x3b8] sm:$0xff]  ;;  %v2380_v7 = vld [vmem:[%s4321_s4 + $0x280] sm:$0xff] }
  0x55   : > { %956 = vmatpush1.msra.mxu0 %v2342_v0  ;;  %838 = vmatpush1.msra.mxu1 %v779_v11  ;;  %v2418_v0 = vld [vmem:[%s4321_s4 + $0x3b0] sm:$0xff]  ;;  %v2379_v9 = vld [vmem:[%s4321_s4 + $0x278] sm:$0xff] }
  0x56   : > { %957 = vmatprep.subr.mxu0 %v2341_v2  ;;  %839 = vmatprep.subr.mxu1 %v778_v13  ;;  %v2417_v2 = vld [vmem:[%s4321_s4 + $0x3a8] sm:$0xff]  ;;  %v2378_v11 = vld [vmem:[%s4321_s4 + $0x270] sm:$0xff] }
  0x57   : > { %958 = vmatpush1.msra.mxu0 %v2340_v4  ;;  %840 = vmatpush1.msra.mxu1 %v777_v15  ;;  %v2416_v4 = vld [vmem:[%s4321_s4 + $0x3a0] sm:$0xff]  ;;  %v2377_v13 = vld [vmem:[%s4321_s4 + $0x268] sm:$0xff] }
  0x58   : > { %959 = vmatprep.subr.mxu0 %v2339_v6  ;;  %873 = vmatprep.mubr.f32.mxu1 %v2769_v19  ;;  %v2415_v6 = vld [vmem:[%s4321_s4 + $0x398] sm:$0xff]  ;;  %v2376_v15 = vld [vmem:[%s4321_s4 + $0x260] sm:$0xff] }
  0x59   : > { %960 = vmatpush1.msra.mxu0 %v2338_v8  ;;  %1060 = vmatprep.subr.mxu1 %v2395_v18  ;;  %v2414_v8 = vld [vmem:[%s4321_s4 + $0x390] sm:$0xff]  ;;  %v2409_v18 = vld [vmem:[%s4321_s4 + $0x368] sm:$0xff] }
  0x5a   : > { %961 = vmatprep.subr.mxu0 %v2337_v10  ;;  %999 = vmatprep.mubr.f32.mxu0 %v2769_v19  ;;  %v2413_v10 = vld [vmem:[%s4321_s4 + $0x388] sm:$0xff] }
  0x5b   : > { %962 = vmatpush1.msra.mxu0 %v2336_v12  ;;  %v2412_v12 = vld [vmem:[%s4321_s4 + $0x380] sm:$0xff] }
  0x5c   : > { %963 = vmatprep.subr.mxu0 %v2335_v14  ;;  %v2411_v14 = vld [vmem:[%s4321_s4 + $0x378] sm:$0xff] }
  0x5d   : > { %964 = vmatpush1.msra.mxu0 %v2334_v16  ;;  %v2410_v16 = vld [vmem:[%s4321_s4 + $0x370] sm:$0xff] }
  0x5e   : > { %965 = vmatprep.subr.mxu0 %v2333_v17  ;;  %v2375_v17 = vld [vmem:[%s4321_s4 + $0x258] sm:$0xff] }
  0x5f   : > { %966 = vmatpush1.msra.mxu0 %v2332_v20  ;;  %v2374_v20 = vld [vmem:[%s4321_s4 + $0x250] sm:$0xff] }
  0x60   : > { %1185 = vmatprep.subr.mxu0 %v2427_v21  ;;  %v2408_v21 = vld [vmem:[%s4321_s4 + $0x360] sm:$0xff] }
  0xee   : > { %v2623_v22 = vpop.f32.mrf.mxu0 }
  0xf0   : > { %v2624_v23 = vpop.f32.mrf.mxu0 }
  0xf1   : > { %v2661_v24 = vpop.f32.mrf.mxu1  ;;  %v2625_v32 = vadd.f32 %v2624_v23, %v2623_v22  ;;  %v2373_v22 = vld [vmem:[%s4321_s4 + $0x248] sm:$0xff]  ;;  %v2407_v23 = vld [vmem:[%s4321_s4 + $0x358] sm:$0xff] }
  0xf3   : > { %v2662_v25 = vpop.f32.mrf.mxu1  ;;  %v616_v35 = vadd.f32 %v2625_v32, %v2329_v30  ;;  %v2368_v32 = vld [vmem:[%s4321_s4 + $0x220] sm:$0xff] }
  0xf4   : > { %v2626_v26 = vpop.f32.mrf.mxu0  ;;  %v2663_v36 = vadd.f32 %v2662_v25, %v2661_v24  ;;  %v2372_v24 = vld [vmem:[%s4321_s4 + $0x240] sm:$0xff]  ;;  %v2406_v25 = vld [vmem:[%s4321_s4 + $0x350] sm:$0xff] }
  0xf5   : > { %v2664_v28 = vpop.f32.mrf.mxu1 }
  0xf6   : > { %v2627_v27 = vpop.f32.mrf.mxu0  ;;  %v691_v40 = vadd.f32 %v2663_v36, %v616_v35  ;;  %v2401_v35 = vld [vmem:[%s4321_s4 + $0x328] sm:$0xff]  ;;  %v2366_v36 = vld [vmem:[%s4321_s4 + $0x210] sm:$0xff] }
  0xf7   : > { %v2628_v29 = vadd.f32 %v2627_v27, %v2626_v26  ;;  %v2665_v31 = vpop.f32.mrf.mxu1  ;;  %v2371_v26 = vld [vmem:[%s4321_s4 + $0x238] sm:$0xff]  ;;  %v2405_v27 = vld [vmem:[%s4321_s4 + $0x348] sm:$0xff] }
  0xf8   : > { %v2666_v34 = vadd.f32 %v2665_v31, %v2664_v28  ;;  %v2370_v28 = vld [vmem:[%s4321_s4 + $0x230] sm:$0xff]  ;;  %v2403_v31 = vld [vmem:[%s4321_s4 + $0x338] sm:$0xff] }
  0xf9   : > { %v621_v33 = vadd.f32 %v2628_v29, %v2329_v30  ;;  %v2404_v29 = vld [vmem:[%s4321_s4 + $0x340] sm:$0xff]  ;;  %v2369_v30 = vld [vmem:[%s4321_s4 + $0x228] sm:$0xff] }
  0xfb   : > { %v696_v37 = vadd.f32 %v2666_v34, %v621_v33  ;;  %v2402_v33 = vld [vmem:[%s4321_s4 + $0x330] sm:$0xff]  ;;  %v2367_v34 = vld [vmem:[%s4321_s4 + $0x218] sm:$0xff] }
 0x100   : > { %v2735_v38 = vpop.f32.mrf.mxu0 }
 0x101   : > { %v3303_v39 = vadd.f32 %v2735_v38, %v696_v37  ;;  %v2400_v37 = vld [vmem:[%s4321_s4 + $0x320] sm:$0xff]  ;;  %v2365_v38 = vld [vmem:[%s4321_s4 + $0x208] sm:$0xff] }
 0x102   : > { %v765_v41 = vpop.f32.mrf.mxu0 }
 0x103   : > { %v766_v42 = vadd.f32 %v765_v41, %v691_v40  ;;  %v2399_v40 = vld [vmem:[%s4321_s4 + $0x318] sm:$0xff]  ;;  %v2364_v41 = vld [vmem:[%s4321_s4 + $0x200] sm:$0xff] }
 0x105   : > { %v3305_v43 = vmax.f32 %v766_v42, 0.0  ;;  %v2398_v42 = vld [vmem:[%s4321_s4 + $0x310] sm:$0xff] }
 0x107   : > { %874 = vmatmul.mubr.f32.vlgmr.msra.gmra.mxu1 %v3305_v43  ;;  %v933_v46 = vrot.slane %v3305_v43, 1 }
 0x108   : > { %1061 = vmatpush1.msra.mxu1 %v2394_v44  ;;  %1124 = vmatprep.mubr.f32.mxu1 %v2769_v19  ;;  %v2397_v44 = vld [vmem:[%s4321_s4 + $0x308] sm:$0xff] }
 0x109   : > { %1062 = vmatprep.subr.mxu1 %v2393_v45  ;;  %1000 = vmatmul.mubr.f32.vlgmr.msra.gmra.mxu0 %v933_v46  ;;  %v1058_v45 = vrot.slane %v3305_v43, 2  ;;  %v2459_v46 = vld [vmem:[%s4321_s4 + $0x4f8] sm:$0xff] }
 0x10a   : > { %1063 = vmatpush1.msra.mxu1 %v2392_v47  ;;  %1186 = vmatpush1.msra.mxu0 %v2426_v48  ;;  %v2396_v47 = vld [vmem:[%s4321_s4 + $0x300] sm:$0xff]  ;;  %v2458_v48 = vld [vmem:[%s4321_s4 + $0x4f0] sm:$0xff] }
 0x10b   : > { %1064 = vmatprep.subr.mxu1 %v2391_v49  ;;  %1187 = vmatprep.subr.mxu0 %v2425_v50  ;;  %v2457_v49 = vld [vmem:[%s4321_s4 + $0x4e8] sm:$0xff]  ;;  %v1183_v50 = vrot.slane %v3305_v43, 3 }
 0x10c   : > { %1065 = vmatpush1.msra.mxu1 %v2390_v51  ;;  %1188 = vmatpush1.msra.mxu0 %v2424_v52  ;;  %v2491_v51 = vld [vmem:[%s4321_s4 + $0x5f8] sm:$0xff]  ;;  %v2456_v52 = vld [vmem:[%s4321_s4 + $0x4e0] sm:$0xff] }
 0x10d   : > { %1066 = vmatprep.subr.mxu1 %v2389_v53  ;;  %1189 = vmatprep.subr.mxu0 %v2423_v54  ;;  %v2490_v53 = vld [vmem:[%s4321_s4 + $0x5f0] sm:$0xff]  ;;  %v2455_v54 = vld [vmem:[%s4321_s4 + $0x4d8] sm:$0xff] }
 0x10e   : > { %1067 = vmatpush1.msra.mxu1 %v2388_v55  ;;  %1190 = vmatpush1.msra.mxu0 %v2422_v56  ;;  %v2489_v55 = vld [vmem:[%s4321_s4 + $0x5e8] sm:$0xff]  ;;  %v2454_v56 = vld [vmem:[%s4321_s4 + $0x4d0] sm:$0xff] }
 0x10f   : > { %1068 = vmatprep.subr.mxu1 %v2387_v57  ;;  %1191 = vmatprep.subr.mxu0 %v2421_v58  ;;  %v2488_v57 = vld [vmem:[%s4321_s4 + $0x5e0] sm:$0xff]  ;;  %v2453_v58 = vld [vmem:[%s4321_s4 + $0x4c8] sm:$0xff] }
 0x110   : > { %1069 = vmatpush1.msra.mxu1 %v2386_v59  ;;  %1192 = vmatpush1.msra.mxu0 %v2420_v60  ;;  %v2487_v59 = vld [vmem:[%s4321_s4 + $0x5d8] sm:$0xff]  ;;  %v2452_v60 = vld [vmem:[%s4321_s4 + $0x4c0] sm:$0xff] }
 0x111   : > { %1070 = vmatprep.subr.mxu1 %v2385_v61  ;;  %1193 = vmatprep.subr.mxu0 %v2419_v62  ;;  %v2486_v61 = vld [vmem:[%s4321_s4 + $0x5d0] sm:$0xff]  ;;  %v2451_v62 = vld [vmem:[%s4321_s4 + $0x4b8] sm:$0xff] }
 0x112   : > { %1071 = vmatpush1.msra.mxu1 %v2384_v63  ;;  %1194 = vmatpush1.msra.mxu0 %v2418_v0  ;;  %v2485_v63 = vld [vmem:[%s4321_s4 + $0x5c8] sm:$0xff]  ;;  %v2450_v0 = vld [vmem:[%s4321_s4 + $0x4b0] sm:$0xff] }
 0x113   : > { %1072 = vmatprep.subr.mxu1 %v2383_v1  ;;  %1195 = vmatprep.subr.mxu0 %v2417_v2  ;;  %v2484_v1 = vld [vmem:[%s4321_s4 + $0x5c0] sm:$0xff]  ;;  %v2449_v2 = vld [vmem:[%s4321_s4 + $0x4a8] sm:$0xff] }
 0x114   : > { %1073 = vmatpush1.msra.mxu1 %v2382_v3  ;;  %1196 = vmatpush1.msra.mxu0 %v2416_v4  ;;  %v2483_v3 = vld [vmem:[%s4321_s4 + $0x5b8] sm:$0xff]  ;;  %v2448_v4 = vld [vmem:[%s4321_s4 + $0x4a0] sm:$0xff] }
 0x115   : > { %1074 = vmatprep.subr.mxu1 %v2381_v5  ;;  %1197 = vmatprep.subr.mxu0 %v2415_v6  ;;  %v2482_v5 = vld [vmem:[%s4321_s4 + $0x5b0] sm:$0xff]  ;;  %v2447_v6 = vld [vmem:[%s4321_s4 + $0x498] sm:$0xff] }
 0x116   : > { %1075 = vmatpush1.msra.mxu1 %v2380_v7  ;;  %1198 = vmatpush1.msra.mxu0 %v2414_v8  ;;  %v2481_v7 = vld [vmem:[%s4321_s4 + $0x5a8] sm:$0xff]  ;;  %v2446_v8 = vld [vmem:[%s4321_s4 + $0x490] sm:$0xff] }
 0x117   : > { %1076 = vmatprep.subr.mxu1 %v2379_v9  ;;  %1199 = vmatprep.subr.mxu0 %v2413_v10  ;;  %v2480_v9 = vld [vmem:[%s4321_s4 + $0x5a0] sm:$0xff]  ;;  %v2445_v10 = vld [vmem:[%s4321_s4 + $0x488] sm:$0xff] }
 0x118   : > { %1077 = vmatpush1.msra.mxu1 %v2378_v11  ;;  %1200 = vmatpush1.msra.mxu0 %v2412_v12  ;;  %v2479_v11 = vld [vmem:[%s4321_s4 + $0x598] sm:$0xff]  ;;  %v2444_v12 = vld [vmem:[%s4321_s4 + $0x480] sm:$0xff] }
 0x119   : > { %1078 = vmatprep.subr.mxu1 %v2377_v13  ;;  %1201 = vmatprep.subr.mxu0 %v2411_v14  ;;  %v2478_v13 = vld [vmem:[%s4321_s4 + $0x590] sm:$0xff]  ;;  %v2443_v14 = vld [vmem:[%s4321_s4 + $0x478] sm:$0xff] }
 0x11a   : > { %1079 = vmatpush1.msra.mxu1 %v2376_v15  ;;  %1202 = vmatpush1.msra.mxu0 %v2410_v16  ;;  %v2477_v15 = vld [vmem:[%s4321_s4 + $0x588] sm:$0xff]  ;;  %v2442_v16 = vld [vmem:[%s4321_s4 + $0x470] sm:$0xff] }
 0x11b   : > { %1080 = vmatprep.subr.mxu1 %v2375_v17  ;;  %1203 = vmatprep.subr.mxu0 %v2409_v18  ;;  %v2476_v17 = vld [vmem:[%s4321_s4 + $0x580] sm:$0xff]  ;;  %v2441_v18 = vld [vmem:[%s4321_s4 + $0x468] sm:$0xff] }
 0x11c   : > { %1081 = vmatpush1.msra.mxu1 %v2374_v20  ;;  %1204 = vmatpush1.msra.mxu0 %v2408_v21  ;;  %v2475_v20 = vld [vmem:[%s4321_s4 + $0x578] sm:$0xff]  ;;  %v2440_v21 = vld [vmem:[%s4321_s4 + $0x460] sm:$0xff] }
 0x11d   : > { %1082 = vmatprep.subr.mxu1 %v2373_v22  ;;  %1205 = vmatprep.subr.mxu0 %v2407_v23  ;;  %v2474_v22 = vld [vmem:[%s4321_s4 + $0x570] sm:$0xff]  ;;  %v2439_v23 = vld [vmem:[%s4321_s4 + $0x458] sm:$0xff] }
 0x11e   : > { %1083 = vmatpush1.msra.mxu1 %v2372_v24  ;;  %1206 = vmatpush1.msra.mxu0 %v2406_v25  ;;  %v2473_v24 = vld [vmem:[%s4321_s4 + $0x568] sm:$0xff]  ;;  %v2438_v25 = vld [vmem:[%s4321_s4 + $0x450] sm:$0xff] }
 0x11f   : > { %1084 = vmatprep.subr.mxu1 %v2371_v26  ;;  %1207 = vmatprep.subr.mxu0 %v2405_v27  ;;  %v2472_v26 = vld [vmem:[%s4321_s4 + $0x560] sm:$0xff]  ;;  %v2437_v27 = vld [vmem:[%s4321_s4 + $0x448] sm:$0xff] }
 0x120   : > { %1085 = vmatpush1.msra.mxu1 %v2370_v28  ;;  %1208 = vmatpush1.msra.mxu0 %v2404_v29  ;;  %v2471_v28 = vld [vmem:[%s4321_s4 + $0x558] sm:$0xff]  ;;  %v2436_v29 = vld [vmem:[%s4321_s4 + $0x440] sm:$0xff] }
 0x121   : > { %1086 = vmatprep.subr.mxu1 %v2369_v30  ;;  %1209 = vmatprep.subr.mxu0 %v2403_v31  ;;  %v2470_v30 = vld [vmem:[%s4321_s4 + $0x550] sm:$0xff]  ;;  %v2435_v31 = vld [vmem:[%s4321_s4 + $0x438] sm:$0xff] }
 0x122   : > { %1087 = vmatpush1.msra.mxu1 %v2368_v32  ;;  %1210 = vmatpush1.msra.mxu0 %v2402_v33  ;;  %v2469_v32 = vld [vmem:[%s4321_s4 + $0x548] sm:$0xff]  ;;  %v2434_v33 = vld [vmem:[%s4321_s4 + $0x430] sm:$0xff] }
 0x123   : > { %1088 = vmatprep.subr.mxu1 %v2367_v34  ;;  %1211 = vmatprep.subr.mxu0 %v2401_v35  ;;  %v2468_v34 = vld [vmem:[%s4321_s4 + $0x540] sm:$0xff]  ;;  %v2433_v35 = vld [vmem:[%s4321_s4 + $0x428] sm:$0xff] }
 0x124   : > { %1089 = vmatpush1.msra.mxu1 %v2366_v36  ;;  %1212 = vmatpush1.msra.mxu0 %v2400_v37  ;;  %v2467_v36 = vld [vmem:[%s4321_s4 + $0x538] sm:$0xff]  ;;  %v2432_v37 = vld [vmem:[%s4321_s4 + $0x420] sm:$0xff] }
 0x125   : > { %1090 = vmatprep.subr.mxu1 %v2365_v38  ;;  %1213 = vmatprep.subr.mxu0 %v2399_v40  ;;  %v2466_v38 = vld [vmem:[%s4321_s4 + $0x530] sm:$0xff]  ;;  %v2431_v40 = vld [vmem:[%s4321_s4 + $0x418] sm:$0xff] }
 0x126   : > { %1091 = vmatpush1.msra.mxu1 %v2364_v41  ;;  %1214 = vmatpush1.msra.mxu0 %v2398_v42  ;;  %v2465_v41 = vld [vmem:[%s4321_s4 + $0x528] sm:$0xff]  ;;  %v2430_v42 = vld [vmem:[%s4321_s4 + $0x410] sm:$0xff] }
 0x127   : > { %1125 = vmatmul.mubr.f32.vlgmr.msra.gmra.mxu1 %v1058_v45  ;;  %1215 = vmatprep.subr.mxu0 %v2397_v44  ;;  %v2464_v44 = vld [vmem:[%s4321_s4 + $0x520] sm:$0xff]  ;;  %v2429_v45 = vld [vmem:[%s4321_s4 + $0x408] sm:$0xff] }
 0x128   : > { %1310 = vmatprep.subr.mxu1 %v2459_v46  ;;  %1216 = vmatpush1.msra.mxu0 %v2396_v47  ;;  %v2463_v46 = vld [vmem:[%s4321_s4 + $0x518] sm:$0xff]  ;;  %v2428_v47 = vld [vmem:[%s4321_s4 + $0x400] sm:$0xff] }
 0x129   : > { %1249 = vmatprep.mubr.f32.mxu0 %v2769_v19  ;;  %1311 = vmatpush1.msra.mxu1 %v2458_v48  ;;  %v2462_v48 = vld [vmem:[%s4321_s4 + $0x510] sm:$0xff] }
 0x12a   : > { %1250 = vmatmul.mubr.f32.vlgmr.msra.gmra.mxu0 %v1183_v50  ;;  %1312 = vmatprep.subr.mxu1 %v2457_v49  ;;  %v2461_v49 = vld [vmem:[%s4321_s4 + $0x508] sm:$0xff]  ;;  %v1308_v50 = vrot.slane %v3305_v43, 4 }
 0x12b   : > { %1435 = vmatprep.subr.mxu0 %v2491_v51  ;;  %1313 = vmatpush1.msra.mxu1 %v2456_v52  ;;  %v2523_v51 = vld [vmem:[%s4321_s4 + $0x6f8] sm:$0xff]  ;;  %v2460_v52 = vld [vmem:[%s4321_s4 + $0x500] sm:$0xff] }
 0x12c   : > { %1436 = vmatpush1.msra.mxu0 %v2490_v53  ;;  %1314 = vmatprep.subr.mxu1 %v2455_v54  ;;  %v2522_v53 = vld [vmem:[%s4321_s4 + $0x6f0] sm:$0xff]  ;;  %v2521_v54 = vld [vmem:[%s4321_s4 + $0x6e8] sm:$0xff] }
 0x12d   : > { %1437 = vmatprep.subr.mxu0 %v2489_v55  ;;  %1315 = vmatpush1.msra.mxu1 %v2454_v56  ;;  %v1433_v55 = vrot.slane %v3305_v43, 5  ;;  %v2555_v56 = vld [vmem:[%s4321_s4 + $0x7f8] sm:$0xff] }
 0x12e   : > { %1438 = vmatpush1.msra.mxu0 %v2488_v57  ;;  %1316 = vmatprep.subr.mxu1 %v2453_v58  ;;  %v2520_v57 = vld [vmem:[%s4321_s4 + $0x6e0] sm:$0xff]  ;;  %v2554_v58 = vld [vmem:[%s4321_s4 + $0x7f0] sm:$0xff] }
 0x12f   : > { %1439 = vmatprep.subr.mxu0 %v2487_v59  ;;  %1317 = vmatpush1.msra.mxu1 %v2452_v60  ;;  %v2519_v59 = vld [vmem:[%s4321_s4 + $0x6d8] sm:$0xff]  ;;  %v2553_v60 = vld [vmem:[%s4321_s4 + $0x7e8] sm:$0xff] }
 0x130   : > { %1440 = vmatpush1.msra.mxu0 %v2486_v61  ;;  %1318 = vmatprep.subr.mxu1 %v2451_v62  ;;  %v2518_v61 = vld [vmem:[%s4321_s4 + $0x6d0] sm:$0xff]  ;;  %v2552_v62 = vld [vmem:[%s4321_s4 + $0x7e0] sm:$0xff] }
 0x131   : > { %1441 = vmatprep.subr.mxu0 %v2485_v63  ;;  %1319 = vmatpush1.msra.mxu1 %v2450_v0  ;;  %v2517_v63 = vld [vmem:[%s4321_s4 + $0x6c8] sm:$0xff]  ;;  %v2551_v0 = vld [vmem:[%s4321_s4 + $0x7d8] sm:$0xff] }
 0x132   : > { %1442 = vmatpush1.msra.mxu0 %v2484_v1  ;;  %1320 = vmatprep.subr.mxu1 %v2449_v2  ;;  %v2516_v1 = vld [vmem:[%s4321_s4 + $0x6c0] sm:$0xff]  ;;  %v2550_v2 = vld [vmem:[%s4321_s4 + $0x7d0] sm:$0xff] }
 0x133   : > { %1443 = vmatprep.subr.mxu0 %v2483_v3  ;;  %1321 = vmatpush1.msra.mxu1 %v2448_v4  ;;  %v2515_v3 = vld [vmem:[%s4321_s4 + $0x6b8] sm:$0xff]  ;;  %v2549_v4 = vld [vmem:[%s4321_s4 + $0x7c8] sm:$0xff] }
 0x134   : > { %1444 = vmatpush1.msra.mxu0 %v2482_v5  ;;  %1322 = vmatprep.subr.mxu1 %v2447_v6  ;;  %v2514_v5 = vld [vmem:[%s4321_s4 + $0x6b0] sm:$0xff]  ;;  %v2548_v6 = vld [vmem:[%s4321_s4 + $0x7c0] sm:$0xff] }
 0x135   : > { %1445 = vmatprep.subr.mxu0 %v2481_v7  ;;  %1323 = vmatpush1.msra.mxu1 %v2446_v8  ;;  %v2513_v7 = vld [vmem:[%s4321_s4 + $0x6a8] sm:$0xff]  ;;  %v2547_v8 = vld [vmem:[%s4321_s4 + $0x7b8] sm:$0xff] }
 0x136   : > { %1446 = vmatpush1.msra.mxu0 %v2480_v9  ;;  %1324 = vmatprep.subr.mxu1 %v2445_v10  ;;  %v2512_v9 = vld [vmem:[%s4321_s4 + $0x6a0] sm:$0xff]  ;;  %v2546_v10 = vld [vmem:[%s4321_s4 + $0x7b0] sm:$0xff] }
 0x137   : > { %1447 = vmatprep.subr.mxu0 %v2479_v11  ;;  %1325 = vmatpush1.msra.mxu1 %v2444_v12  ;;  %v2511_v11 = vld [vmem:[%s4321_s4 + $0x698] sm:$0xff]  ;;  %v2545_v12 = vld [vmem:[%s4321_s4 + $0x7a8] sm:$0xff] }
 0x138   : > { %1448 = vmatpush1.msra.mxu0 %v2478_v13  ;;  %1326 = vmatprep.subr.mxu1 %v2443_v14  ;;  %v2510_v13 = vld [vmem:[%s4321_s4 + $0x690] sm:$0xff]  ;;  %v2544_v14 = vld [vmem:[%s4321_s4 + $0x7a0] sm:$0xff] }
 0x139   : > { %1449 = vmatprep.subr.mxu0 %v2477_v15  ;;  %1327 = vmatpush1.msra.mxu1 %v2442_v16  ;;  %v2509_v15 = vld [vmem:[%s4321_s4 + $0x688] sm:$0xff]  ;;  %v2543_v16 = vld [vmem:[%s4321_s4 + $0x798] sm:$0xff] }
 0x13a   : > { %1450 = vmatpush1.msra.mxu0 %v2476_v17  ;;  %1328 = vmatprep.subr.mxu1 %v2441_v18  ;;  %v2508_v17 = vld [vmem:[%s4321_s4 + $0x680] sm:$0xff]  ;;  %v2542_v18 = vld [vmem:[%s4321_s4 + $0x790] sm:$0xff] }
 0x13b   : > { %1451 = vmatprep.subr.mxu0 %v2475_v20  ;;  %1329 = vmatpush1.msra.mxu1 %v2440_v21  ;;  %v2507_v20 = vld [vmem:[%s4321_s4 + $0x678] sm:$0xff]  ;;  %v2541_v21 = vld [vmem:[%s4321_s4 + $0x788] sm:$0xff] }
 0x13c   : > { %1452 = vmatpush1.msra.mxu0 %v2474_v22  ;;  %1330 = vmatprep.subr.mxu1 %v2439_v23  ;;  %v2506_v22 = vld [vmem:[%s4321_s4 + $0x670] sm:$0xff]  ;;  %v2540_v23 = vld [vmem:[%s4321_s4 + $0x780] sm:$0xff] }
 0x13d   : > { %1453 = vmatprep.subr.mxu0 %v2473_v24  ;;  %1331 = vmatpush1.msra.mxu1 %v2438_v25  ;;  %v2505_v24 = vld [vmem:[%s4321_s4 + $0x668] sm:$0xff]  ;;  %v2539_v25 = vld [vmem:[%s4321_s4 + $0x778] sm:$0xff] }
 0x13e   : > { %1454 = vmatpush1.msra.mxu0 %v2472_v26  ;;  %1332 = vmatprep.subr.mxu1 %v2437_v27  ;;  %v2504_v26 = vld [vmem:[%s4321_s4 + $0x660] sm:$0xff]  ;;  %v2538_v27 = vld [vmem:[%s4321_s4 + $0x770] sm:$0xff] }
 0x13f   : > { %1455 = vmatprep.subr.mxu0 %v2471_v28  ;;  %1333 = vmatpush1.msra.mxu1 %v2436_v29  ;;  %v2503_v28 = vld [vmem:[%s4321_s4 + $0x658] sm:$0xff]  ;;  %v2537_v29 = vld [vmem:[%s4321_s4 + $0x768] sm:$0xff] }
 0x140   : > { %1456 = vmatpush1.msra.mxu0 %v2470_v30  ;;  %1334 = vmatprep.subr.mxu1 %v2435_v31  ;;  %v2502_v30 = vld [vmem:[%s4321_s4 + $0x650] sm:$0xff]  ;;  %v2536_v31 = vld [vmem:[%s4321_s4 + $0x760] sm:$0xff] }
 0x141   : > { %1457 = vmatprep.subr.mxu0 %v2469_v32  ;;  %1335 = vmatpush1.msra.mxu1 %v2434_v33  ;;  %v2501_v32 = vld [vmem:[%s4321_s4 + $0x648] sm:$0xff]  ;;  %v2535_v33 = vld [vmem:[%s4321_s4 + $0x758] sm:$0xff] }
 0x142   : > { %1458 = vmatpush1.msra.mxu0 %v2468_v34  ;;  %1336 = vmatprep.subr.mxu1 %v2433_v35  ;;  %v2500_v34 = vld [vmem:[%s4321_s4 + $0x640] sm:$0xff]  ;;  %v2534_v35 = vld [vmem:[%s4321_s4 + $0x750] sm:$0xff] }
 0x143   : > { %1459 = vmatprep.subr.mxu0 %v2467_v36  ;;  %1337 = vmatpush1.msra.mxu1 %v2432_v37  ;;  %v2499_v36 = vld [vmem:[%s4321_s4 + $0x638] sm:$0xff]  ;;  %v2533_v37 = vld [vmem:[%s4321_s4 + $0x748] sm:$0xff] }
 0x144   : > { %1460 = vmatpush1.msra.mxu0 %v2466_v38  ;;  %1338 = vmatprep.subr.mxu1 %v2431_v40  ;;  %v2498_v38 = vld [vmem:[%s4321_s4 + $0x630] sm:$0xff]  ;;  %v2532_v40 = vld [vmem:[%s4321_s4 + $0x740] sm:$0xff] }
 0x145   : > { %1461 = vmatprep.subr.mxu0 %v2465_v41  ;;  %1339 = vmatpush1.msra.mxu1 %v2430_v42  ;;  %v2497_v41 = vld [vmem:[%s4321_s4 + $0x628] sm:$0xff]  ;;  %v2531_v42 = vld [vmem:[%s4321_s4 + $0x738] sm:$0xff] }
 0x146   : > { %1462 = vmatpush1.msra.mxu0 %v2464_v44  ;;  %1340 = vmatprep.subr.mxu1 %v2429_v45  ;;  %v2496_v44 = vld [vmem:[%s4321_s4 + $0x620] sm:$0xff]  ;;  %v2530_v45 = vld [vmem:[%s4321_s4 + $0x730] sm:$0xff] }
 0x147   : > { %1463 = vmatprep.subr.mxu0 %v2463_v46  ;;  %1341 = vmatpush1.msra.mxu1 %v2428_v47  ;;  %v2495_v46 = vld [vmem:[%s4321_s4 + $0x618] sm:$0xff]  ;;  %v2529_v47 = vld [vmem:[%s4321_s4 + $0x728] sm:$0xff] }
 0x148   : > { %1374 = vmatprep.mubr.f32.mxu1 %v2769_v19  ;;  %1464 = vmatpush1.msra.mxu0 %v2462_v48  ;;  %v2494_v48 = vld [vmem:[%s4321_s4 + $0x610] sm:$0xff] }
 0x149   : > { %1375 = vmatmul.mubr.f32.vlgmr.msra.gmra.mxu1 %v1308_v50  ;;  %1465 = vmatprep.subr.mxu0 %v2461_v49  ;;  %v2528_v49 = vld [vmem:[%s4321_s4 + $0x720] sm:$0xff]  ;;  %v2493_v50 = vld [vmem:[%s4321_s4 + $0x608] sm:$0xff] }
 0x14a   : > { %1560 = vmatprep.subr.mxu1 %v2523_v51  ;;  %1466 = vmatpush1.msra.mxu0 %v2460_v52  ;;  %v2527_v51 = vld [vmem:[%s4321_s4 + $0x718] sm:$0xff]  ;;  %v2492_v52 = vld [vmem:[%s4321_s4 + $0x600] sm:$0xff] }
 0x14b   : > { %1499 = vmatprep.mubr.f32.mxu0 %v2769_v19  ;;  %1561 = vmatpush1.msra.mxu1 %v2522_v53  ;;  %v2526_v53 = vld [vmem:[%s4321_s4 + $0x710] sm:$0xff] }
 0x14c   : > { %1500 = vmatmul.mubr.f32.vlgmr.msra.gmra.mxu0 %v1433_v55  ;;  %1562 = vmatprep.subr.mxu1 %v2521_v54  ;;  %v2525_v54 = vld [vmem:[%s4321_s4 + $0x708] sm:$0xff]  ;;  %v1558_v55 = vrot.slane %v3305_v43, 6 }
 0x14d   : > { %1685 = vmatprep.subr.mxu0 %v2555_v56  ;;  %1563 = vmatpush1.msra.mxu1 %v2520_v57  ;;  %v2587_v56 = vld [vmem:[%s4321_s4 + $0x8f8] sm:$0xff]  ;;  %v2524_v57 = vld [vmem:[%s4321_s4 + $0x700] sm:$0xff] }
 0x14e   : > { %1686 = vmatpush1.msra.mxu0 %v2554_v58  ;;  %1564 = vmatprep.subr.mxu1 %v2519_v59  ;;  %v2586_v58 = vld [vmem:[%s4321_s4 + $0x8f0] sm:$0xff]  ;;  %v2585_v59 = vld [vmem:[%s4321_s4 + $0x8e8] sm:$0xff] }
 0x14f   : > { %1687 = vmatprep.subr.mxu0 %v2553_v60  ;;  %1565 = vmatpush1.msra.mxu1 %v2518_v61  ;;  %v1683_v60 = vrot.slane %v3305_v43, 7  ;;  %v2584_v61 = vld [vmem:[%s4321_s4 + $0x8e0] sm:$0xff]  ;;  %v2581_v43 = vld [vmem:[%s4321_s4 + $0x8c8] sm:$0xff] }
 0x150   : > { %1688 = vmatpush1.msra.mxu0 %v2552_v62  ;;  %1566 = vmatprep.subr.mxu1 %v2517_v63  ;;  %v2583_v62 = vld [vmem:[%s4321_s4 + $0x8d8] sm:$0xff]  ;;  %v2582_v63 = vld [vmem:[%s4321_s4 + $0x8d0] sm:$0xff] }
 0x151   : > { %1689 = vmatprep.subr.mxu0 %v2551_v0  ;;  %1567 = vmatpush1.msra.mxu1 %v2516_v1  ;;  %v2580_v0 = vld [vmem:[%s4321_s4 + $0x8c0] sm:$0xff]  ;;  %v2579_v1 = vld [vmem:[%s4321_s4 + $0x8b8] sm:$0xff] }
 0x152   : > { %1690 = vmatpush1.msra.mxu0 %v2550_v2  ;;  %1568 = vmatprep.subr.mxu1 %v2515_v3  ;;  %v2578_v2 = vld [vmem:[%s4321_s4 + $0x8b0] sm:$0xff]  ;;  %v2577_v3 = vld [vmem:[%s4321_s4 + $0x8a8] sm:$0xff] }
 0x153   : > { %1691 = vmatprep.subr.mxu0 %v2549_v4  ;;  %1569 = vmatpush1.msra.mxu1 %v2514_v5  ;;  %v2576_v4 = vld [vmem:[%s4321_s4 + $0x8a0] sm:$0xff]  ;;  %v2575_v5 = vld [vmem:[%s4321_s4 + $0x898] sm:$0xff] }
 0x154   : > { %1692 = vmatpush1.msra.mxu0 %v2548_v6  ;;  %1570 = vmatprep.subr.mxu1 %v2513_v7  ;;  %v2574_v6 = vld [vmem:[%s4321_s4 + $0x890] sm:$0xff]  ;;  %v2573_v7 = vld [vmem:[%s4321_s4 + $0x888] sm:$0xff] }
 0x155   : > { %1693 = vmatprep.subr.mxu0 %v2547_v8  ;;  %1571 = vmatpush1.msra.mxu1 %v2512_v9  ;;  %v2572_v8 = vld [vmem:[%s4321_s4 + $0x880] sm:$0xff]  ;;  %v2571_v9 = vld [vmem:[%s4321_s4 + $0x878] sm:$0xff] }
 0x156   : > { %1694 = vmatpush1.msra.mxu0 %v2546_v10  ;;  %1572 = vmatprep.subr.mxu1 %v2511_v11  ;;  %v2570_v10 = vld [vmem:[%s4321_s4 + $0x870] sm:$0xff]  ;;  %v2569_v11 = vld [vmem:[%s4321_s4 + $0x868] sm:$0xff] }
 0x157   : > { %1695 = vmatprep.subr.mxu0 %v2545_v12  ;;  %1573 = vmatpush1.msra.mxu1 %v2510_v13  ;;  %v2568_v12 = vld [vmem:[%s4321_s4 + $0x860] sm:$0xff]  ;;  %v2567_v13 = vld [vmem:[%s4321_s4 + $0x858] sm:$0xff] }
 0x158   : > { %1696 = vmatpush1.msra.mxu0 %v2544_v14  ;;  %1574 = vmatprep.subr.mxu1 %v2509_v15  ;;  %v2566_v14 = vld [vmem:[%s4321_s4 + $0x850] sm:$0xff]  ;;  %v2565_v15 = vld [vmem:[%s4321_s4 + $0x848] sm:$0xff] }
 0x159   : > { %1697 = vmatprep.subr.mxu0 %v2543_v16  ;;  %1575 = vmatpush1.msra.mxu1 %v2508_v17  ;;  %v2564_v16 = vld [vmem:[%s4321_s4 + $0x840] sm:$0xff]  ;;  %v2563_v17 = vld [vmem:[%s4321_s4 + $0x838] sm:$0xff] }
 0x15a   : > { %1698 = vmatpush1.msra.mxu0 %v2542_v18  ;;  %1576 = vmatprep.subr.mxu1 %v2507_v20  ;;  %v2562_v18 = vld [vmem:[%s4321_s4 + $0x830] sm:$0xff]  ;;  %v2561_v20 = vld [vmem:[%s4321_s4 + $0x828] sm:$0xff] }
 0x15b   : > { %1699 = vmatprep.subr.mxu0 %v2541_v21  ;;  %1577 = vmatpush1.msra.mxu1 %v2506_v22  ;;  %v2560_v21 = vld [vmem:[%s4321_s4 + $0x820] sm:$0xff]  ;;  %v2559_v22 = vld [vmem:[%s4321_s4 + $0x818] sm:$0xff] }
 0x15c   : > { %1700 = vmatpush1.msra.mxu0 %v2540_v23  ;;  %1578 = vmatprep.subr.mxu1 %v2505_v24  ;;  %v2558_v23 = vld [vmem:[%s4321_s4 + $0x810] sm:$0xff]  ;;  %v2557_v24 = vld [vmem:[%s4321_s4 + $0x808] sm:$0xff] }
 0x15d   : > { %1701 = vmatprep.subr.mxu0 %v2539_v25  ;;  %1579 = vmatpush1.msra.mxu1 %v2504_v26  ;;  %v2556_v25 = vld [vmem:[%s4321_s4 + $0x800] sm:$0xff]  ;;  %v775_v26 = vmax.f32 %v3303_v39, 0.0 }
 0x15e   : > { %1702 = vmatpush1.msra.mxu0 %v2538_v27  ;;  %1580 = vmatprep.subr.mxu1 %v2503_v28  ;;  %v1942_v27 = vld [vmem:[%s4323_s6 + $0xf8] sm:$0xff]  ;;  %v1941_v28 = vld [vmem:[%s4323_s6 + $0xf0] sm:$0xff]  ;;  %v1939_v39 = vld [vmem:[%s4323_s6 + $0xe0] sm:$0xff] }
 0x15f   : > { %1703 = vmatprep.subr.mxu0 %v2537_v29  ;;  %1581 = vmatpush1.msra.mxu1 %v2502_v30  ;;  %v1940_v29 = vld [vmem:[%s4323_s6 + $0xe8] sm:$0xff]  ;;  %v1938_v30 = vld [vmem:[%s4323_s6 + $0xd8] sm:$0xff] }
 0x160   : > { %1704 = vmatpush1.msra.mxu0 %v2536_v31  ;;  %1582 = vmatprep.subr.mxu1 %v2501_v32  ;;  %v1937_v31 = vld [vmem:[%s4323_s6 + $0xd0] sm:$0xff]  ;;  %v1936_v32 = vld [vmem:[%s4323_s6 + $0xc8] sm:$0xff] }
 0x161   : > { %1705 = vmatprep.subr.mxu0 %v2535_v33  ;;  %1583 = vmatpush1.msra.mxu1 %v2500_v34  ;;  %v1935_v33 = vld [vmem:[%s4323_s6 + $0xc0] sm:$0xff]  ;;  %v1934_v34 = vld [vmem:[%s4323_s6 + $0xb8] sm:$0xff] }
 0x162   : > { %1706 = vmatpush1.msra.mxu0 %v2534_v35  ;;  %1584 = vmatprep.subr.mxu1 %v2499_v36  ;;  %v1933_v35 = vld [vmem:[%s4323_s6 + $0xb0] sm:$0xff]  ;;  %v1932_v36 = vld [vmem:[%s4323_s6 + $0xa8] sm:$0xff] }
 0x163   : > { %1707 = vmatprep.subr.mxu0 %v2533_v37  ;;  %1585 = vmatpush1.msra.mxu1 %v2498_v38  ;;  %v1931_v37 = vld [vmem:[%s4323_s6 + $0xa0] sm:$0xff]  ;;  %v1930_v38 = vld [vmem:[%s4323_s6 + $0x98] sm:$0xff] }
 0x164   : > { %1708 = vmatpush1.msra.mxu0 %v2532_v40  ;;  %1586 = vmatprep.subr.mxu1 %v2497_v41  ;;  %v1929_v40 = vld [vmem:[%s4323_s6 + $0x90] sm:$0xff]  ;;  %v1928_v41 = vld [vmem:[%s4323_s6 + $0x88] sm:$0xff] }
 0x165   : > { %1709 = vmatprep.subr.mxu0 %v2531_v42  ;;  %1587 = vmatpush1.msra.mxu1 %v2496_v44  ;;  %v1927_v42 = vld [vmem:[%s4323_s6 + $0x80] sm:$0xff]  ;;  %v1926_v44 = vld [vmem:[%s4323_s6 + $0x78] sm:$0xff] }
 0x166   : > { %1710 = vmatpush1.msra.mxu0 %v2530_v45  ;;  %1588 = vmatprep.subr.mxu1 %v2495_v46  ;;  %v1925_v45 = vld [vmem:[%s4323_s6 + $0x70] sm:$0xff]  ;;  %v1924_v46 = vld [vmem:[%s4323_s6 + $0x68] sm:$0xff] }
 0x167   : > { %1711 = vmatprep.subr.mxu0 %v2529_v47  ;;  %1589 = vmatpush1.msra.mxu1 %v2494_v48  ;;  %v1923_v47 = vld [vmem:[%s4323_s6 + $0x60] sm:$0xff]  ;;  %v1922_v48 = vld [vmem:[%s4323_s6 + $0x58] sm:$0xff] }
 0x168   : > { %1712 = vmatpush1.msra.mxu0 %v2528_v49  ;;  %1590 = vmatprep.subr.mxu1 %v2493_v50  ;;  %v1921_v49 = vld [vmem:[%s4323_s6 + $0x50] sm:$0xff]  ;;  %v1920_v50 = vld [vmem:[%s4323_s6 + $0x48] sm:$0xff] }
 0x169   : > { %1713 = vmatprep.subr.mxu0 %v2527_v51  ;;  %1591 = vmatpush1.msra.mxu1 %v2492_v52  ;;  %v1919_v51 = vld [vmem:[%s4323_s6 + $0x40] sm:$0xff]  ;;  %v1918_v52 = vld [vmem:[%s4323_s6 + $0x38] sm:$0xff] }
 0x16a   : > { %1624 = vmatprep.mubr.f32.mxu1 %v2769_v19  ;;  %1714 = vmatpush1.msra.mxu0 %v2526_v53  ;;  %v1917_v53 = vld [vmem:[%s4323_s6 + $0x30] sm:$0xff] }
 0x16b   : > { %1625 = vmatmul.mubr.f32.vlgmr.msra.gmra.mxu1 %v1558_v55  ;;  %1715 = vmatprep.subr.mxu0 %v2525_v54  ;;  %v1916_v54 = vld [vmem:[%s4323_s6 + $0x28] sm:$0xff]  ;;  %v1915_v55 = vld [vmem:[%s4323_s6 + $0x20] sm:$0xff] }
 0x16c   : > { %1808 = vmatprep.subr.mxu1 %v2587_v56  ;;  %1716 = vmatpush1.msra.mxu0 %v2524_v57  ;;  %v1914_v56 = vld [vmem:[%s4323_s6 + $0x18] sm:$0xff]  ;;  %v1913_v57 = vld [vmem:[%s4323_s6 + $0x10] sm:$0xff] }
 0x16d   : > { %1749 = vmatprep.mubr.f32.mxu0 %v2769_v19  ;;  %1809 = vmatpush1.msra.mxu1 %v2586_v58  ;;  %v1912_v58 = vld [vmem:[%s4323_s6 + $0x8] sm:$0xff] }
 0x16e   : > { %1750 = vmatmul.mubr.f32.vlgmr.msra.gmra.mxu0 %v1683_v60  ;;  %1810 = vmatprep.subr.mxu1 %v2585_v59  ;;  %v1911_v59 = vld [vmem:[%s4323_s6] sm:$0xff]  ;;  %v1974_v60 = vld [vmem:[%s4323_s6 + $0x1f8] sm:$0xff] }
 0x16f   : > { %1811 = vmatpush1.msra.mxu1 %v2584_v61  ;;  %1872 = vmatprep.mubr.f32.mxu1 %v2769_v19  ;;  %v1973_v61 = vld [vmem:[%s4323_s6 + $0x1f0] sm:$0xff] }
 0x170   : > { %1812 = vmatprep.subr.mxu1 %v2583_v62  ;;  %1997 = vmatprep.subr.mxu0 %v1942_v27  ;;  %v1972_v62 = vld [vmem:[%s4323_s6 + $0x1e8] sm:$0xff]  ;;  %v1943_v27 = vld [vmem:[%s4323_s6 + $0x100] sm:$0xff] }
 0x171   : > { %1813 = vmatpush1.msra.mxu1 %v2582_v63  ;;  %1998 = vmatpush1.msra.mxu0 %v1941_v28  ;;  %v1971_v63 = vld [vmem:[%s4323_s6 + $0x1e0] sm:$0xff]  ;;  %v2113_v28 = vld [vmem:[%s4326_s9 + $0xf8] sm:$0xff] }
 0x172   : > { %1814 = vmatprep.subr.mxu1 %v2581_v43  ;;  %1999 = vmatprep.subr.mxu0 %v1940_v29  ;;  %v1970_v43 = vld [vmem:[%s4323_s6 + $0x1d8] sm:$0xff] }
 0x173   : > { %1815 = vmatpush1.msra.mxu1 %v2580_v0  ;;  %2000 = vmatpush1.msra.mxu0 %v1939_v39  ;;  %v1969_v0 = vld [vmem:[%s4323_s6 + $0x1d0] sm:$0xff]  ;;  %v2097_v29 = vld [vmem:[%s4326_s9 + $0x78] sm:$0xff] }
 0x174   : > { %1816 = vmatprep.subr.mxu1 %v2579_v1  ;;  %2001 = vmatprep.subr.mxu0 %v1938_v30  ;;  %v1968_v1 = vld [vmem:[%s4323_s6 + $0x1c8] sm:$0xff]  ;;  %v2112_v39 = vld [vmem:[%s4326_s9 + $0xf0] sm:$0xff]  ;;  %v2770_v30 = vmov 0  }
 0x175   : > { %1817 = vmatpush1.msra.mxu1 %v2578_v2  ;;  %2002 = vmatpush1.msra.mxu0 %v1937_v31  ;;  %v1967_v2 = vld [vmem:[%s4323_s6 + $0x1c0] sm:$0xff] }
 0x176   : > { %1818 = vmatprep.subr.mxu1 %v2577_v3  ;;  %2003 = vmatprep.subr.mxu0 %v1936_v32  ;;  %v1966_v3 = vld [vmem:[%s4323_s6 + $0x1b8] sm:$0xff]  ;;  %v1899_v31 = vld [vmem:[%s449_s23] sm:$0x1]  ;;  %v2096_v32 = vld [vmem:[%s4326_s9 + $0x70] sm:$0xff] }
 0x177   : > { %1819 = vmatpush1.msra.mxu1 %v2576_v4  ;;  %2004 = vmatpush1.msra.mxu0 %v1935_v33  ;;  %v1965_v4 = vld [vmem:[%s4323_s6 + $0x1b0] sm:$0xff]  ;;  %v2111_v33 = vld [vmem:[%s4326_s9 + $0xe8] sm:$0xff] }
 0x178   : > { %1820 = vmatprep.subr.mxu1 %v2575_v5  ;;  %2005 = vmatprep.subr.mxu0 %v1934_v34  ;;  %v1964_v5 = vld [vmem:[%s4323_s6 + $0x1a8] sm:$0xff] }
 0x179   : > { %1821 = vmatpush1.msra.mxu1 %v2574_v6  ;;  %2006 = vmatpush1.msra.mxu0 %v1933_v35  ;;  %v1963_v6 = vld [vmem:[%s4323_s6 + $0x1a0] sm:$0xff]  ;;  %v2095_v34 = vld [vmem:[%s4326_s9 + $0x68] sm:$0xff] }
 0x17a   : > { %1822 = vmatprep.subr.mxu1 %v2573_v7  ;;  %2007 = vmatprep.subr.mxu0 %v1932_v36  ;;  %v1962_v7 = vld [vmem:[%s4323_s6 + $0x198] sm:$0xff]  ;;  %v2110_v35 = vld [vmem:[%s4326_s9 + $0xe0] sm:$0xff] }
 0x17b   : > { %1823 = vmatpush1.msra.mxu1 %v2572_v8  ;;  %2008 = vmatpush1.msra.mxu0 %v1931_v37  ;;  %v1961_v8 = vld [vmem:[%s4323_s6 + $0x190] sm:$0xff]  ;;  %v2094_v36 = vld [vmem:[%s4326_s9 + $0x60] sm:$0xff]  ;;  %v2109_v37 = vld [vmem:[%s4326_s9 + $0xd8] sm:$0xff] }
 0x17c   : > { %1824 = vmatprep.subr.mxu1 %v2571_v9  ;;  %2009 = vmatprep.subr.mxu0 %v1930_v38  ;;  %v1960_v9 = vld [vmem:[%s4323_s6 + $0x188] sm:$0xff]  ;;  %v2093_v38 = vld [vmem:[%s4326_s9 + $0x58] sm:$0xff] }
 0x17d   : > { %1825 = vmatpush1.msra.mxu1 %v2570_v10  ;;  %2010 = vmatpush1.msra.mxu0 %v1929_v40  ;;  %v1959_v10 = vld [vmem:[%s4323_s6 + $0x180] sm:$0xff]  ;;  %v2108_v40 = vld [vmem:[%s4326_s9 + $0xd0] sm:$0xff] }
 0x17e   : > { %1826 = vmatprep.subr.mxu1 %v2569_v11  ;;  %2011 = vmatprep.subr.mxu0 %v1928_v41  ;;  %v1958_v11 = vld [vmem:[%s4323_s6 + $0x178] sm:$0xff]  ;;  %v2092_v41 = vld [vmem:[%s4326_s9 + $0x50] sm:$0xff] }
 0x17f   : > { %1827 = vmatpush1.msra.mxu1 %v2568_v12  ;;  %2012 = vmatpush1.msra.mxu0 %v1927_v42  ;;  %v1957_v12 = vld [vmem:[%s4323_s6 + $0x170] sm:$0xff]  ;;  %v2107_v42 = vld [vmem:[%s4326_s9 + $0xc8] sm:$0xff] }
 0x180   : > { %1828 = vmatprep.subr.mxu1 %v2567_v13  ;;  %2013 = vmatprep.subr.mxu0 %v1926_v44  ;;  %v1956_v13 = vld [vmem:[%s4323_s6 + $0x168] sm:$0xff] }
 0x181   : > { %1829 = vmatpush1.msra.mxu1 %v2566_v14  ;;  %2014 = vmatpush1.msra.mxu0 %v1925_v45  ;;  %v1955_v14 = vld [vmem:[%s4323_s6 + $0x160] sm:$0xff]  ;;  %v2091_v44 = vld [vmem:[%s4326_s9 + $0x48] sm:$0xff] }
 0x182   : > { %1830 = vmatprep.subr.mxu1 %v2565_v15  ;;  %2015 = vmatprep.subr.mxu0 %v1924_v46  ;;  %v1954_v15 = vld [vmem:[%s4323_s6 + $0x158] sm:$0xff]  ;;  %v2106_v45 = vld [vmem:[%s4326_s9 + $0xc0] sm:$0xff] }
 0x183   : > { %1831 = vmatpush1.msra.mxu1 %v2564_v16  ;;  %2016 = vmatpush1.msra.mxu0 %v1923_v47  ;;  %v1953_v16 = vld [vmem:[%s4323_s6 + $0x150] sm:$0xff]  ;;  %v2090_v46 = vld [vmem:[%s4326_s9 + $0x40] sm:$0xff]  ;;  %v2105_v47 = vld [vmem:[%s4326_s9 + $0xb8] sm:$0xff] }
 0x184   : > { %1832 = vmatprep.subr.mxu1 %v2563_v17  ;;  %2017 = vmatprep.subr.mxu0 %v1922_v48  ;;  %v1952_v17 = vld [vmem:[%s4323_s6 + $0x148] sm:$0xff]  ;;  %v2089_v48 = vld [vmem:[%s4326_s9 + $0x38] sm:$0xff] }
 0x185   : > { %1833 = vmatpush1.msra.mxu1 %v2562_v18  ;;  %2018 = vmatpush1.msra.mxu0 %v1921_v49  ;;  %v1951_v18 = vld [vmem:[%s4323_s6 + $0x140] sm:$0xff]  ;;  %v2104_v49 = vld [vmem:[%s4326_s9 + $0xb0] sm:$0xff] }
 0x186   : > { %1834 = vmatprep.subr.mxu1 %v2561_v20  ;;  %2019 = vmatprep.subr.mxu0 %v1920_v50  ;;  %v1950_v20 = vld [vmem:[%s4323_s6 + $0x138] sm:$0xff]  ;;  %v2088_v50 = vld [vmem:[%s4326_s9 + $0x30] sm:$0xff] }
 0x187   : > { %1835 = vmatpush1.msra.mxu1 %v2560_v21  ;;  %2020 = vmatpush1.msra.mxu0 %v1919_v51  ;;  %v1949_v21 = vld [vmem:[%s4323_s6 + $0x130] sm:$0xff]  ;;  %v2103_v51 = vld [vmem:[%s4326_s9 + $0xa8] sm:$0xff] }
 0x188   : > { %1836 = vmatprep.subr.mxu1 %v2559_v22  ;;  %2021 = vmatprep.subr.mxu0 %v1918_v52  ;;  %v1948_v22 = vld [vmem:[%s4323_s6 + $0x128] sm:$0xff] }
 0x189   : > { %1837 = vmatpush1.msra.mxu1 %v2558_v23  ;;  %2022 = vmatpush1.msra.mxu0 %v1917_v53  ;;  %v1947_v23 = vld [vmem:[%s4323_s6 + $0x120] sm:$0xff]  ;;  %v2087_v52 = vld [vmem:[%s4326_s9 + $0x28] sm:$0xff] }
 0x18a   : > { %1838 = vmatprep.subr.mxu1 %v2557_v24  ;;  %2023 = vmatprep.subr.mxu0 %v1916_v54  ;;  %v1946_v24 = vld [vmem:[%s4323_s6 + $0x118] sm:$0xff]  ;;  %v2102_v53 = vld [vmem:[%s4326_s9 + $0xa0] sm:$0xff] }
 0x18b   : > { %1839 = vmatpush1.msra.mxu1 %v2556_v25  ;;  %2024 = vmatpush1.msra.mxu0 %v1915_v55  ;;  %v1945_v25 = vld [vmem:[%s4323_s6 + $0x110] sm:$0xff]  ;;  %v2086_v54 = vld [vmem:[%s4326_s9 + $0x20] sm:$0xff]  ;;  %v2771_v55 = vmov 1966171168  }
 0x18c   : > { %1873 = vmatmul.mubr.f32.vlgmr.msra.gmra.mxu1 %v775_v26  ;;  %2025 = vmatprep.subr.mxu0 %v1914_v56  ;;  %v1944_v26 = vld [vmem:[%s4323_s6 + $0x108] sm:$0xff]  ;;  %v884_v56 = vunpack.c.l.s4 %v2771_v55 }
 0x18d   : > { %2026 = vmatpush1.msra.mxu0 %v1913_v57  ;;  %2760 = vset.pattern.permute.xlu0 %v2770_v30  ;;  %v886_v57 = vlaneseq }
 0x18e   : > { %2027 = vmatprep.subr.mxu0 %v1912_v58  ;;  %2677 = vmatprep.subr.mxu1 %v2113_v28 }
 0x18f   : > { %2028 = vmatpush1.msra.mxu0 %v1911_v59  ;;  %1903 = vperm.xlu0 %2760, %v1899_v31   ;;  %v885_v59 = vunpack.c.0.s8 %v884_v56 }
 0x190   : > { %2029 = vmatprep.subr.mxu0 %v1974_v60  ;;  %2678 = vmatpush3.msra.mxu1 %v2097_v29  ;;  %v887_v60 = vshrl.u32 %v886_v57, 7 }
 0x191   : > { %2030 = vmatpush2.msra.mxu0 %v1973_v61  ;;  %2679 = vmatprep.subr.mxu1 %v2112_v39 }
 0x192   : > { %2031 = vmatprep.subr.mxu0 %v1972_v62  ;;  %2680 = vmatpush3.msra.mxu1 %v2096_v32 }
 0x193   : > { %2032 = vmatpush2.msra.mxu0 %v1971_v63  ;;  %2681 = vmatprep.subr.mxu1 %v2111_v33 }
 0x194   : > { %2033 = vmatprep.subr.mxu0 %v1970_v43  ;;  %2682 = vmatpush3.msra.mxu1 %v2095_v34 }
 0x195   : > { %2034 = vmatpush2.msra.mxu0 %v1969_v0  ;;  %2683 = vmatprep.subr.mxu1 %v2110_v35  ;;  %v888_v0 = vsub.s32 %v885_v59, %v887_v60  ;;  %v2085_v59 = vld [vmem:[%s4326_s9 + $0x18] sm:$0xff] }
 0x196   : > { %2035 = vmatprep.subr.mxu0 %v1968_v1  ;;  %2684 = vmatpush3.msra.mxu1 %v2094_v36 }
 0x197   : > { %2036 = vmatpush2.msra.mxu0 %v1967_v2  ;;  %2685 = vmatprep.subr.mxu1 %v2109_v37 }
 0x198   : > { %2037 = vmatprep.subr.mxu0 %v1966_v3  ;;  %2686 = vmatpush3.msra.mxu1 %v2093_v38 }
 0x199   : > { %2038 = vmatpush2.msra.mxu0 %v1965_v4  ;;  %2687 = vmatprep.subr.mxu1 %v2108_v40 }
 0x19a   : > { %2039 = vmatprep.subr.mxu0 %v1964_v5  ;;  %2688 = vmatpush3.msra.mxu1 %v2092_v41 }
 0x19b   : > { %2040 = vmatpush2.msra.mxu0 %v1963_v6  ;;  %2689 = vmatprep.subr.mxu1 %v2107_v42 }
 0x19c   : > { %2041 = vmatprep.subr.mxu0 %v1962_v7  ;;  %2690 = vmatpush3.msra.mxu1 %v2091_v44 }
 0x19d   : > { %2042 = vmatpush2.msra.mxu0 %v1961_v8  ;;  %2691 = vmatprep.subr.mxu1 %v2106_v45 }
 0x19e   : > { %2043 = vmatprep.subr.mxu0 %v1960_v9  ;;  %2692 = vmatpush3.msra.mxu1 %v2090_v46 }
 0x19f   : > { %2044 = vmatpush2.msra.mxu0 %v1959_v10  ;;  %2693 = vmatprep.subr.mxu1 %v2105_v47 }
 0x1a0   : > { %2045 = vmatprep.subr.mxu0 %v1958_v11  ;;  %2694 = vmatpush3.msra.mxu1 %v2089_v48  ;;  %v776_v11 = vld [vmem:[%s4322_s5] sm:$0x3] }
 0x1a1   : > { %2046 = vmatpush2.msra.mxu0 %v1957_v12  ;;  %2695 = vmatprep.subr.mxu1 %v2104_v49 }
 0x1a2   : > { %2047 = vmatprep.subr.mxu0 %v1956_v13  ;;  %2696 = vmatpush3.msra.mxu1 %v2088_v50 }
 0x1a3   : > { %2048 = vmatpush2.msra.mxu0 %v1955_v14  ;;  %2697 = vmatprep.subr.mxu1 %v2103_v51 }
 0x1a4   : > { %2049 = vmatprep.subr.mxu0 %v1954_v15  ;;  %2698 = vmatpush3.msra.mxu1 %v2087_v52 }
 0x1a5   : > { %2050 = vmatpush2.msra.mxu0 %v1953_v16  ;;  %2699 = vmatprep.subr.mxu1 %v2102_v53  ;;  %v1982_v53 = vsub.s32 1, %v887_v60 }
 0x1a6   : > { %2051 = vmatprep.subr.mxu0 %v1952_v17  ;;  %2700 = vmatpush3.msra.mxu1 %v2086_v54  ;;  %v1908_v54 = vsub.s32 0, %v887_v60  ;;  %v2084_v60 = vld [vmem:[%s4326_s9 + $0x10] sm:$0xff] }
 0x1a7   : > { %2052 = vmatpush2.msra.mxu0 %v1951_v18 }
 0x1a8   : > { %2053 = vmatprep.subr.mxu0 %v1950_v20 }
 0x1a9   : > { %2054 = vmatpush2.msra.mxu0 %v1949_v21 }
 0x1aa   : > { %2055 = vmatprep.subr.mxu0 %v1948_v22 }
 0x1ab   : > { %2056 = vmatpush2.msra.mxu0 %v1947_v23 }
 0x1ac   : > { %2057 = vmatprep.subr.mxu0 %v1946_v24 }
 0x1ad   : > { %2058 = vmatpush2.msra.mxu0 %v1945_v25 }
 0x1ae   : > { %2059 = vmatprep.subr.mxu0 %v1944_v26 }
 0x1af   : > { %2060 = vmatpush2.msra.mxu0 %v1943_v27 }
 0x1c7   : > { %v875_v58 = vpop.f32.mrf.mxu1 }
 0x1c9   : > { %v877_v61 = vpop.f32.mrf.mxu1  ;;  %v1001_v62 = vpop.f32.mrf.mxu0 }
 0x1ca   : > { %v882_v43 = vcombine.low %v875_v58, %v877_v61  ;;  %v2101_v58 = vld [vmem:[%s4326_s9 + $0x98] sm:$0xff]  ;;  %v2100_v61 = vld [vmem:[%s4326_s9 + $0x90] sm:$0xff] }
 0x1cb   : > { %v1003_v1 = vpop.f32.mrf.mxu0  ;;  %2701 = vmatprep.subr.mxu1 %v2101_v58 }
 0x1cc   : > { %v889_v4 = vrot.slane %v882_v43, %v888_v0  ;;  %v1008_v5 = vcombine.low %v1001_v62, %v1003_v1  ;;  %2702 = vmatpush3.msra.mxu1 %v2085_v59  ;;  %v2099_v62 = vld [vmem:[%s4326_s9 + $0x88] sm:$0xff]  ;;  %v2098_v43 = vld [vmem:[%s4326_s9 + $0x80] sm:$0xff] }
 0x1cd   : > { %2703 = vmatprep.subr.mxu1 %v2100_v61 }
 0x1ce   : > { %v896_v9 = vrot.slane %v889_v4, %v888_v0  ;;  %v1015_v10 = vrot.slane %v1008_v5, %v888_v0  ;;  %2704 = vmatpush3.msra.mxu1 %v2084_v60 }
 0x1cf   : > { %2705 = vmatprep.subr.mxu1 %v2099_v62 }
 0x1d0   : > { %v898_v17 = vadd.f32 %v896_v9, %v776_v11  ;;  %v1022_v18 = vrot.slane %v1015_v10, %v888_v0 }
 0x1d2   : > { %v1024_v26 = vadd.f32 %v1022_v18, %v898_v17  ;;  %v2188_v17 = vld [vmem:[%s4328_s11 + $0x10] sm:$0xff]  ;;  %v2187_v18 = vld [vmem:[%s4328_s11 + $0x8] sm:$0xff] }
 0x1e7   : > { %v1126_v63 = vpop.f32.mrf.mxu1 }
 0x1e9   : > { %v1128_v2 = vpop.f32.mrf.mxu1 }
 0x1ea   : > { %v1251_v3 = vpop.f32.mrf.mxu0  ;;  %v1133_v7 = vcombine.low %v1126_v63, %v1128_v2  ;;  %v2083_v63 = vld [vmem:[%s4326_s9 + $0x8] sm:$0xff] }
 0x1eb   : > { %2706 = vmatpush3.msra.mxu1 %v2083_v63 }
 0x1ec   : > { %v1253_v8 = vpop.f32.mrf.mxu0  ;;  %v1140_v14 = vrot.slane %v1133_v7, %v888_v0  ;;  %2707 = vmatprep.subr.mxu1 %v2098_v43 }
 0x1ed   : > { %v1258_v15 = vcombine.low %v1251_v3, %v1253_v8  ;;  %v1900_v3 = vld [vmem:[%s4324_s7] sm:$0x3] }
 0x1ee   : > { %v1147_v22 = vrot.slane %v1140_v14, %v888_v0 }
 0x1ef   : > { %v1265_v23 = vrot.slane %v1258_v15, %v888_v0 }
 0x1f0   : > { %v1149_v29 = vadd.f32 %v1147_v22, %v1024_v26  ;;  %v2114_v22 = vld [vmem:[%s4327_s10] sm:$0x1] }
 0x1f1   : > { %v1272_v39 = vrot.slane %v1265_v23, %v888_v0 }
 0x1f3   : > { %v1274_v34 = vadd.f32 %v1272_v39, %v1149_v29 }
 0x209   : > { %v1376_v6 = vpop.f32.mrf.mxu1 }
 0x20a   : > { %v1904_v1 = vpop.permute.xlu0 %1903 }
 0x20b   : > { %v1378_v12 = vpop.f32.mrf.mxu1  ;;  %v1909_v2 = vrot.slane %v1904_v1, %v1908_v54 }
 0x20c   : > { %v1501_v13 = vpop.f32.mrf.mxu0  ;;  %v1383_v20 = vcombine.low %v1376_v6, %v1378_v12  ;;  %v2068_v6 = vld [vmem:[%s4325_s8] sm:$0x3] }
 0x20d   : > { %v1910_v4 = vmul.f32 %v1909_v2, %v1900_v3  ;;  %v2077_v9 = vrot.slane %v2068_v6, %v1982_v53  ;;  %v2073_v11 = vrot.slane %v2068_v6, %v1908_v54 }
 0x20e   : > { %v1503_v21 = vpop.f32.mrf.mxu0  ;;  %v1390_v27 = vrot.slane %v1383_v20, %v888_v0  ;;  %v2186_v20 = vld [vmem:[%s4328_s11] sm:$0xff] }
 0x20f   : > { %v1508_v28 = vcombine.low %v1501_v13, %v1503_v21  ;;  %v1990_v5 = vrot.slane %v1910_v4, %v1908_v54  ;;  %v1994_v7 = vrot.slane %v1910_v4, %v1982_v53 }
 0x210   : > { %v1397_v32 = vrot.slane %v1390_v27, %v888_v0  ;;  %v2190_v27 = vld [vmem:[#allocation2] sm:$0x1] }
 0x211   : > { %v1515_v33 = vrot.slane %v1508_v28, %v888_v0 }
 0x212   : > { %v1399_v37 = vadd.f32 %v1397_v32, %v1274_v34 }
 0x213   : > { %v1522_v38 = vrot.slane %v1515_v33, %v888_v0 }
 0x215   : > { %v1524_v44 = vadd.f32 %v1522_v38, %v1399_v37 }
 0x22b   : > { %v1626_v16 = vpop.f32.mrf.mxu1 }
 0x22d   : > { %v1628_v24 = vpop.f32.mrf.mxu1 }
 0x22e   : > { %v1751_v25 = vpop.f32.mrf.mxu0  ;;  %v1633_v30 = vcombine.low %v1626_v16, %v1628_v24  ;;  %v2189_v16 = vld [vmem:[%s4328_s11 + $0x18] sm:$0xff] }
 0x230   : > { %v1753_v31 = vpop.f32.mrf.mxu0  ;;  %v1640_v35 = vrot.slane %v1633_v30, %v888_v0 }
 0x231   : > { %v1758_v36 = vcombine.low %v1751_v25, %v1753_v31 }
 0x232   : > { %v1647_v40 = vrot.slane %v1640_v35, %v888_v0 }
 0x233   : > { %v1765_v41 = vrot.slane %v1758_v36, %v888_v0 }
 0x234   : > { %v1649_v46 = vadd.f32 %v1647_v40, %v1524_v44 }
 0x235   : > { %v1772_v47 = vrot.slane %v1765_v41, %v888_v0 }
 0x237   : > { %v1774_v50 = vadd.f32 %v1772_v47, %v1649_v46 }
 0x24c   : > { %v1874_v42 = vpop.f32.mrf.mxu1 }
 0x24e   : > { %v1876_v45 = vpop.f32.mrf.mxu1 }
 0x24f   : > { %v1881_v48 = vcombine.low %v1874_v42, %v1876_v45 }
 0x251   : > { %v1888_v49 = vrot.slane %v1881_v48, %v888_v0 }
 0x253   : > { %v1895_v51 = vrot.slane %v1888_v49, %v888_v0  ;;  %v2082_v0 = vld [vmem:[%s4326_s9] sm:$0xff] }
 0x254   : > { %2708 = vmatpush3.msra.mxu1 %v2082_v0 }
 0x255   : > { %v1897_v52 = vadd.f32 %v1895_v51, %v1774_v50  ;;  %2736 = vmatprep.subr.mxu1 %v2769_v19 }
 0x257   : > { %v1898_v55 = vmax.f32 %v1897_v52, 0.0 }
 0x259   : > { %v1983_v56 = vrot.slane %v1898_v55, %v1982_v53  ;;  %v1979_v57 = vrot.slane %v1898_v55, %v1908_v54 }
 0x25b   : > { %2061 = vmatprep.mubr.f32.mxu0 %v1983_v56 }
 0x25c   : > { %2062 = vmatmul.mubr.f32.vlgmr.msra.gmra.mxu0 %v1979_v57 }
 0x31c   : > { %v2063_v8 = vpop.f32.mrf.mxu0 }
 0x31d   : > { %v2064_v10 = vadd.f32 %v2063_v8, %v1990_v5 }
 0x31e   : > { %v2065_v12 = vpop.f32.mrf.mxu0 }
 0x31f   : > { %v2066_v13 = vadd.f32 %v2065_v12, %v1994_v7  ;;  %v2080_v15 = vadd.f32 %v2073_v11, %v2064_v10 }
 0x321   : > { %v2081_v14 = vadd.f32 %v2077_v9, %v2066_v13 }
 0x323   : > { %2179 = vmatprep.mubr.f32.mxu1 %v2081_v14 }
 0x324   : > { %2180 = vmatmul.mubr.f32.vlgmr.msra.gmra.mxu1 %v2080_v15 }
 0x325   : > { %2737 = vmatpush3.msra.mxu1 %v2189_v16  ;;  %2744 = vmatprep.mubr.msk.f32.mxu1 %vm2772_vm1, %v2769_v19 }
 0x326   : > { %2738 = vmatprep.subr.mxu1 %v2769_v19 }
 0x327   : > { %2739 = vmatpush3.msra.mxu1 %v2188_v17 }
 0x328   : > { %2740 = vmatprep.subr.mxu1 %v2769_v19 }
 0x329   : > { %2741 = vmatpush3.msra.mxu1 %v2187_v18 }
 0x32a   : > { %2742 = vmatprep.subr.mxu1 %v2769_v19 }
 0x32b   : > { %2743 = vmatpush3.msra.mxu1 %v2186_v20 }
 0x3e4   : > { %v2709_v21 = vpop.f32.mrf.mxu1 }
 0x3e6   : > { %v2710_v23 = vpop.f32.mrf.mxu1 }
 0x3e7   : > { %v2711_v24 = vadd.f32 %v2710_v23, %v2709_v21 }
 0x3e9   : > { %v2182_v25 = vadd.f32 %v2711_v24, %v2114_v22 }
 0x3eb   : > { %v2185_v26 = vmax.f32 %v2182_v25, 0.0 }
 0x3ed   : > { %2745 = vmatmul.mubr.msk.f32.vlgmr.msra.gmra.mxu1 %vm2191_vm2, %v2185_v26 }
 0x4ad   : > { %v2261_v28 = vpop.f32.mrf.mxu1 }
 0x4ae   : > { %v2262_v29 = vadd.f32 %v2261_v28, %v2190_v27 }
 0x4af   : > { %v2746_v19 = vpop.f32.mrf.mxu1 }
 0x4b0   : > { %2266 = vst.msk [vmem:[%s452_s30] sm:$0x1] %vm2265_vm3, %v2262_v29 }
 0x4b1 PF: > { %s25_s27 = sadd.s32 1, %s2767_s27  }
 0x4b2   : > { %p22_p4 = scmp.ge.s32.totalorder %s25_s27, 4  }
 0x4b4   :  { %24 = sbr.rel (!%p22_p4) target bundleno = 3 (0x3), region = 113 }

</bundles_post_ra>
